<compile_context>
chip_gen: v7x
topology: tpu7x:2x2x1
jax: 0.10.0
libtpu: 0.0.40
codegen_flags: <defaults>
</compile_context>

<pallas_src>
import functools

import jax
import jax.numpy as jnp
import numpy as np
from jax.experimental import pallas as pl
from jax.experimental.pallas import tpu as pltpu

_HIGHEST = jax.lax.Precision.HIGHEST


# ----------------------------------------------------------------------------
# Host-side structural constants (weight independent)
# ----------------------------------------------------------------------------
def _bilinear_matrix(in_size: int, out_size: int) -> np.ndarray:
    """A (out, in) with A @ v == 1-D bilinear resize of v, align_corners=True
    (matches torch.nn.UpsamplingBilinear2d; 2-D bilinear is separable)."""
    A = np.zeros((out_size, in_size), dtype=np.float64)
    if in_size == 1:
        A[:, 0] = 1.0
        return A
    scale = (in_size - 1) / (out_size - 1)
    for i in range(out_size):
        src = i * scale
        j0 = min(int(np.floor(src)), in_size - 1)
        j1 = min(j0 + 1, in_size - 1)
        f = src - j0
        A[i, j0] += 1.0 - f
        A[i, j1] += f
    return A


def _deconv_row_mats(H: int, K: int) -> np.ndarray:
    """Ldec (K, OH, H): Ldec[ky][i, h] = A[clip(i + ky - P, 0, OH-1), h].
    Folds bilinear row upsample + replication row pad + the ky conv-window shift."""
    OH, P = 2 * H, (K - 1) // 2
    A = _bilinear_matrix(H, OH)
    L = np.empty((K, OH, H), dtype=np.float64)
    for ky in range(K):
        rows = np.clip(np.arange(OH) + ky - P, 0, OH - 1)
        L[ky] = A[rows, :]
    return L.astype(np.float32)


def _deconv_col_sel(W: int, K: int) -> np.ndarray:
    """asel (K, OW, W): asel[kx][j, w] = A[clip(j + kx - P, 0, OW-1), w].
    Folds bilinear col upsample + replication col pad + the kx shift; contracted with
    the conv weights over kx to build the deconv right matrices."""
    OW, P = 2 * W, (K - 1) // 2
    A = _bilinear_matrix(W, OW)
    S = np.empty((K, OW, W), dtype=np.float64)
    for kx in range(K):
        rows = np.clip(np.arange(OW) + kx - P, 0, OW - 1)
        S[kx] = A[rows, :]
    return S.astype(np.float32)


def _conv_s2_row_mats(H: int, K: int) -> np.ndarray:
    """Lconv (K, H, OH) 0/1: Lconv[ky][i, r] = [r == clip(2i + ky - P, 0, OH-1)].
    Folds replication row pad + stride-2 row selection + the ky shift (exact)."""
    OH, P = 2 * H, (K - 1) // 2
    L = np.zeros((K, H, OH), dtype=np.float32)
    for ky in range(K):
        src = np.clip(2 * np.arange(H) + ky - P, 0, OH - 1)
        L[ky, np.arange(H), src] = 1.0
    return L


def _conv_s2_col_sel(W: int, K: int) -> np.ndarray:
    """ssel (K, OW, W) 0/1: ssel[kx][s, j] = [s == clip(2j + kx - P, 0, OW-1)].
    Folds replication col pad + stride-2 col selection + the kx shift (exact)."""
    OW, P = 2 * W, (K - 1) // 2
    S = np.zeros((K, OW, W), dtype=np.float32)
    for kx in range(K):
        src = np.clip(2 * np.arange(W) + kx - P, 0, OW - 1)
        S[kx, src, np.arange(W)] = 1.0
    return S


# ----------------------------------------------------------------------------
# Pallas kernel: one batch element (all channels, lane-packed) per grid step
# ----------------------------------------------------------------------------
def _upblock_kernel(x_ref, ldec_ref, lconv_ref, r1_ref, r2_ref, r3_ref, out_ref,
                    *, K, neg_slope):
    def dot32(a, b):
        # MXU matmul at fp32 contract precision (Precision.HIGHEST): keeps the
        # interpolation / channel-mixing contractions at ~f32 accuracy.
        return jnp.dot(a, b, preferred_element_type=jnp.float32, precision=_HIGHEST)

    def lrelu(v):                       # getAct('leakyrelu') -> LeakyReLU(0.1)
        return jnp.where(v >= 0, v, neg_slope * v)

    def stage(inp, l_ref, r_ref):
        # One Deconv/Conv block: sum_ky  L[ky] @ inp @ R[ky], identity norm, act.
        acc = dot32(dot32(l_ref[0], inp), r_ref[0])
        for ky in range(1, K):
            acc = acc + dot32(dot32(l_ref[ky], inp), r_ref[ky])
        return lrelu(acc)

    x = x_ref[0]                                   # (H, C*W)   lane-packed input
    h0 = stage(x, ldec_ref, r1_ref)                # (OH, C*OW) up_conv1
    l0 = stage(h0, lconv_ref, r2_ref)              # (H, C*W)   up_conv2 (stride 2)
    h1 = stage(l0 - x, ldec_ref, r3_ref)           # (OH, C*OW) up_conv3
    out_ref[0] = (h1 + h0).astype(out_ref.dtype)   # single lane-dense store


# ----------------------------------------------------------------------------
# Wrapper
# ----------------------------------------------------------------------------
def upblock_forward(x, w1, w2, w3, *, kernel_size=3, neg_slope=0.1):
    """Fused Pallas forward of UpBlock (netNorm='identity', LeakyReLU(0.1)).

    x: (N, C, H, W) float32; w1/w2/w3: (C, C, K, K) bias-free conv weights (OIHW).
    Returns (N, C, 2H, 2W) float32.
    """
    x = jnp.asarray(x, jnp.float32)
    w1 = jnp.asarray(w1, jnp.float32)
    w2 = jnp.asarray(w2, jnp.float32)
    w3 = jnp.asarray(w3, jnp.float32)
    N, C, H, W = x.shape
    K = int(kernel_size)
    OH, OW = 2 * H, 2 * W
    CW, COW = C * W, C * OW
    assert w1.shape == w2.shape == w3.shape == (C, C, K, K)

    # Structural constants.
    ldec = _deconv_row_mats(H, K)                    # (K, OH, H)
    lconv = _conv_s2_row_mats(H, K)                  # (K, H, OH)
    asel = jnp.asarray(_deconv_col_sel(W, K))        # (K, OW, W)
    ssel = jnp.asarray(_conv_s2_col_sel(W, K))       # (K, OW, W)

    # Fold the OIHW conv weights into the per-ky right matrices (tiny einsums over kx;
    # for inference these could be cached with the parameters).
    #   R_dec[ky][ci*W + w, co*OW + j]  = sum_kx w[co,ci,ky,kx] * asel[kx, j, w]
    #   R_conv[ky][ci*OW + s, co*W + j] = sum_kx w[co,ci,ky,kx] * ssel[kx, s, j]
    r1 = jnp.einsum('oiyx,xjz->yizoj', w1, asel, precision=_HIGHEST).reshape(K, CW, COW)
    r3 = jnp.einsum('oiyx,xjz->yizoj', w3, asel, precision=_HIGHEST).reshape(K, CW, COW)
    r2 = jnp.einsum('oiyx,xsj->yisoj', w2, ssel, precision=_HIGHEST).reshape(K, COW, CW)

    # Lane-dense packing (pure layout plumbing): channels live in the lane axis.
    x_packed = x.transpose(0, 2, 1, 3).reshape(N, H, CW)        # (N, H, C*W)

    kernel = functools.partial(_upblock_kernel, K=K, neg_slope=float(neg_slope))
    out_packed = pl.pallas_call(
        kernel,
        out_shape=jax.ShapeDtypeStruct((N, OH, COW), jnp.float32),
        grid=(N,),
        in_specs=[
            pl.BlockSpec((1, H, CW), lambda n: (n, 0, 0)),       # x (per batch element)
            pl.BlockSpec((K, OH, H), lambda n: (0, 0, 0)),       # Ldec  (shared)
            pl.BlockSpec((K, H, OH), lambda n: (0, 0, 0)),       # Lconv (shared)
            pl.BlockSpec((K, CW, COW), lambda n: (0, 0, 0)),     # R1
            pl.BlockSpec((K, COW, CW), lambda n: (0, 0, 0)),     # R2
            pl.BlockSpec((K, CW, COW), lambda n: (0, 0, 0)),     # R3
        ],
        out_specs=pl.BlockSpec((1, OH, COW), lambda n: (n, 0, 0)),
        compiler_params=pltpu.CompilerParams(
            dimension_semantics=("parallel",),     # N>=2 steps -> both v7x TCs busy
            vmem_limit_bytes=32 * 1024 * 1024),
    )(x_packed, ldec, lconv, r1, r2, r3)

    # Back to NCHW (layout plumbing only).
    return out_packed.reshape(N, OH, C, OW).transpose(0, 2, 1, 3)


class UpBlockPallas:
    """JAX/Pallas mirror of UpBlock(num_channels, kernel_size, cfg) with
    cfg.netNorm='identity' and cfg.netActivate='leakyrelu'."""

    def __init__(self, num_channels, kernel_size, key, weight_scale=0.1):
        k1, k2, k3 = jax.random.split(key, 3)
        shape = (num_channels, num_channels, kernel_size, kernel_size)
        self.kernel_size = kernel_size
        self.w1 = weight_scale * jax.random.normal(k1, shape, jnp.float32)
        self.w2 = weight_scale * jax.random.normal(k2, shape, jnp.float32)
        self.w3 = weight_scale * jax.random.normal(k3, shape, jnp.float32)

    def __call__(self, x):
        return upblock_forward(x, self.w1, self.w2, self.w3,
                               kernel_size=self.kernel_size)


# ----------------------------------------------------------------------------
# Pure-JAX (non-Pallas) reference for verification
# ----------------------------------------------------------------------------
def _upsample_bilinear2x_ref(v):
    """align_corners=True bilinear x2 (torch.nn.UpsamplingBilinear2d), NCHW."""
    _, _, H, W = v.shape

    def idx(in_size, out_size):
        src = np.arange(out_size, dtype=np.float64) * (in_size - 1) / (out_size - 1)
        j0 = np.minimum(np.floor(src).astype(np.int32), in_size - 1)
        j1 = np.minimum(j0 + 1, in_size - 1)
        f = (src - j0).astype(np.float32)
        return j0, j1, f

    i0, i1, fy = idx(H, 2 * H)
    j0, j1, fx = idx(W, 2 * W)
    vr = (v[:, :, i0, :] * (1.0 - fy)[None, None, :, None]
          + v[:, :, i1, :] * fy[None, None, :, None])
    return (vr[:, :, :, j0] * (1.0 - fx)[None, None, None, :]
            + vr[:, :, :, j1] * fx[None, None, None, :])


def upblock_reference(x, w1, w2, w3, *, neg_slope=0.1):
    K = w1.shape[-1]
    P = (K - 1) // 2
    hp = jax.lax.Precision.HIGHEST

    def rep_pad(v):
        return jnp.pad(v, ((0, 0), (0, 0), (P, P), (P, P)), mode='edge')

    def conv(v, w, stride):
        return jax.lax.conv_general_dilated(
            v, w, window_strides=(stride, stride), padding='VALID',
            dimension_numbers=('NCHW', 'OIHW', 'NCHW'), precision=hp)

    def lrelu(v):
        return jnp.where(v >= 0, v, neg_slope * v)

    def deconv_block(v, w):
        return lrelu(conv(rep_pad(_upsample_bilinear2x_ref(v)), w, 1))

    def conv_block(v, w):
        return lrelu(conv(rep_pad(v), w, 2))

    h0 = deconv_block(x, w1)
    l0 = conv_block(h0, w2)
    h1 = deconv_block(l0 - x, w3)
    return h1 + h0


if __name__ == "__main__":
    key = jax.random.PRNGKey(0)
    kx, kw = jax.random.split(key)
    N, C, H, W, K = 2, 4, 16, 16, 3

    x = jax.random.normal(kx, (N, C, H, W), dtype=jnp.float32)
    block = UpBlockPallas(num_channels=C, kernel_size=K, key=kw)

    y = jax.block_until_ready(block(x))
    ref = upblock_reference(x, block.w1, block.w2, block.w3)

    # With fp32 contract precision on the in-kernel MXU dots the observed error is
    # ~1e-5; the tolerance is kept conservative only so the check also survives
    # toolchains that fall back to bf16 MXU passes for f32 matmuls.
    np.testing.assert_allclose(np.asarray(y), np.asarray(ref), rtol=2e-2, atol=2e-2)
    assert y.shape == (N, C, 2 * H, 2 * W) and y.dtype == jnp.float32

    print("KERNEL_OK")
</pallas_src>

<mosaic_0001>
module attributes {stable_mosaic.version = 11 : i64} {
  func.func @_upblock_kernel(%arg0: i32, %arg1: memref<1x16x64xf32, #tpu.memory_space<vmem>>, %arg2: memref<3x32x16xf32, #tpu.memory_space<vmem>>, %arg3: memref<3x16x32xf32, #tpu.memory_space<vmem>>, %arg4: memref<3x64x128xf32, #tpu.memory_space<vmem>>, %arg5: memref<3x128x64xf32, #tpu.memory_space<vmem>>, %arg6: memref<3x64x128xf32, #tpu.memory_space<vmem>>, %arg7: memref<1x32x128xf32, #tpu.memory_space<vmem>>) attributes {dimension_semantics = [#tpu.dimension_semantics<parallel>], iteration_bounds = array<i64: 2>, scalar_prefetch = 0 : i64, scratch_operands = 0 : i64, tpu.core_type = #tpu.core_type<tc>, window_params = [{transform_indices = @transform_0, window_bounds = array<i64: 1, 16, 64>}, {pipeline_mode = #tpu.pipeline_mode<synchronous>, transform_indices = @transform_1, window_bounds = array<i64: 3, 32, 16>}, {pipeline_mode = #tpu.pipeline_mode<synchronous>, transform_indices = @transform_2, window_bounds = array<i64: 3, 16, 32>}, {pipeline_mode = #tpu.pipeline_mode<synchronous>, transform_indices = @transform_3, window_bounds = array<i64: 3, 64, 128>}, {pipeline_mode = #tpu.pipeline_mode<synchronous>, transform_indices = @transform_4, window_bounds = array<i64: 3, 128, 64>}, {pipeline_mode = #tpu.pipeline_mode<synchronous>, transform_indices = @transform_5, window_bounds = array<i64: 3, 64, 128>}, {transform_indices = @transform_6, window_bounds = array<i64: 1, 32, 128>}]} {
    %c0 = arith.constant 0 : index
    %c0_0 = arith.constant 0 : index
    %c0_1 = arith.constant 0 : index
    %0 = vector.load %arg1[%c0, %c0_0, %c0_1] : memref<1x16x64xf32, #tpu.memory_space<vmem>>, vector<1x16x64xf32>
    %1 = vector.shape_cast %0 : vector<1x16x64xf32> to vector<16x64xf32>
    %c0_2 = arith.constant 0 : index
    %c0_3 = arith.constant 0 : index
    %c0_4 = arith.constant 0 : index
    %2 = vector.load %arg2[%c0_2, %c0_3, %c0_4] : memref<3x32x16xf32, #tpu.memory_space<vmem>>, vector<1x32x16xf32>
    %3 = vector.shape_cast %2 : vector<1x32x16xf32> to vector<32x16xf32>
    %cst = arith.constant dense<0.000000e+00> : vector<32x64xf32>
    %4 = tpu.matmul %3, %1, %cst {dimension_numbers = #tpu.dot_dimension_numbers<[1], [0], [0], [1], [0, 0, 1, 1], [], []>, precision = #tpu.contract_precision<fp32>} : vector<32x16xf32>, vector<16x64xf32>, vector<32x64xf32> -> vector<32x64xf32>
    %c0_5 = arith.constant 0 : index
    %c0_6 = arith.constant 0 : index
    %c0_7 = arith.constant 0 : index
    %5 = vector.load %arg4[%c0_5, %c0_6, %c0_7] : memref<3x64x128xf32, #tpu.memory_space<vmem>>, vector<1x64x128xf32>
    %6 = vector.shape_cast %5 : vector<1x64x128xf32> to vector<64x128xf32>
    %cst_8 = arith.constant dense<0.000000e+00> : vector<32x128xf32>
    %7 = tpu.matmul %4, %6, %cst_8 {dimension_numbers = #tpu.dot_dimension_numbers<[1], [0], [0], [1], [0, 0, 1, 1], [], []>, precision = #tpu.contract_precision<fp32>} : vector<32x64xf32>, vector<64x128xf32>, vector<32x128xf32> -> vector<32x128xf32>
    %c1 = arith.constant 1 : index
    %c0_9 = arith.constant 0 : index
    %c0_10 = arith.constant 0 : index
    %8 = vector.load %arg2[%c1, %c0_9, %c0_10] : memref<3x32x16xf32, #tpu.memory_space<vmem>>, vector<1x32x16xf32>
    %9 = vector.shape_cast %8 : vector<1x32x16xf32> to vector<32x16xf32>
    %cst_11 = arith.constant dense<0.000000e+00> : vector<32x64xf32>
    %10 = tpu.matmul %9, %1, %cst_11 {dimension_numbers = #tpu.dot_dimension_numbers<[1], [0], [0], [1], [0, 0, 1, 1], [], []>, precision = #tpu.contract_precision<fp32>} : vector<32x16xf32>, vector<16x64xf32>, vector<32x64xf32> -> vector<32x64xf32>
    %c1_12 = arith.constant 1 : index
    %c0_13 = arith.constant 0 : index
    %c0_14 = arith.constant 0 : index
    %11 = vector.load %arg4[%c1_12, %c0_13, %c0_14] : memref<3x64x128xf32, #tpu.memory_space<vmem>>, vector<1x64x128xf32>
    %12 = vector.shape_cast %11 : vector<1x64x128xf32> to vector<64x128xf32>
    %cst_15 = arith.constant dense<0.000000e+00> : vector<32x128xf32>
    %13 = tpu.matmul %10, %12, %cst_15 {dimension_numbers = #tpu.dot_dimension_numbers<[1], [0], [0], [1], [0, 0, 1, 1], [], []>, precision = #tpu.contract_precision<fp32>} : vector<32x64xf32>, vector<64x128xf32>, vector<32x128xf32> -> vector<32x128xf32>
    %14 = arith.addf %7, %13 : vector<32x128xf32>
    %c2 = arith.constant 2 : index
    %c0_16 = arith.constant 0 : index
    %c0_17 = arith.constant 0 : index
    %15 = vector.load %arg2[%c2, %c0_16, %c0_17] : memref<3x32x16xf32, #tpu.memory_space<vmem>>, vector<1x32x16xf32>
    %16 = vector.shape_cast %15 : vector<1x32x16xf32> to vector<32x16xf32>
    %cst_18 = arith.constant dense<0.000000e+00> : vector<32x64xf32>
    %17 = tpu.matmul %16, %1, %cst_18 {dimension_numbers = #tpu.dot_dimension_numbers<[1], [0], [0], [1], [0, 0, 1, 1], [], []>, precision = #tpu.contract_precision<fp32>} : vector<32x16xf32>, vector<16x64xf32>, vector<32x64xf32> -> vector<32x64xf32>
    %c2_19 = arith.constant 2 : index
    %c0_20 = arith.constant 0 : index
    %c0_21 = arith.constant 0 : index
    %18 = vector.load %arg4[%c2_19, %c0_20, %c0_21] : memref<3x64x128xf32, #tpu.memory_space<vmem>>, vector<1x64x128xf32>
    %19 = vector.shape_cast %18 : vector<1x64x128xf32> to vector<64x128xf32>
    %cst_22 = arith.constant dense<0.000000e+00> : vector<32x128xf32>
    %20 = tpu.matmul %17, %19, %cst_22 {dimension_numbers = #tpu.dot_dimension_numbers<[1], [0], [0], [1], [0, 0, 1, 1], [], []>, precision = #tpu.contract_precision<fp32>} : vector<32x64xf32>, vector<64x128xf32>, vector<32x128xf32> -> vector<32x128xf32>
    %21 = arith.addf %14, %20 : vector<32x128xf32>
    %cst_23 = arith.constant 0.000000e+00 : f32
    %22 = vector.broadcast %cst_23 : f32 to vector<32x128xf32>
    %23 = arith.cmpf oge, %21, %22 : vector<32x128xf32>
    %cst_24 = arith.constant 1.000000e-01 : f32
    %24 = vector.broadcast %cst_24 : f32 to vector<32x128xf32>
    %25 = arith.mulf %24, %21 : vector<32x128xf32>
    %26 = arith.select %23, %21, %25 : vector<32x128xi1>, vector<32x128xf32>
    %c0_25 = arith.constant 0 : index
    %c0_26 = arith.constant 0 : index
    %c0_27 = arith.constant 0 : index
    %27 = vector.load %arg3[%c0_25, %c0_26, %c0_27] : memref<3x16x32xf32, #tpu.memory_space<vmem>>, vector<1x16x32xf32>
    %28 = vector.shape_cast %27 : vector<1x16x32xf32> to vector<16x32xf32>
    %cst_28 = arith.constant dense<0.000000e+00> : vector<16x128xf32>
    %29 = tpu.matmul %28, %26, %cst_28 {dimension_numbers = #tpu.dot_dimension_numbers<[1], [0], [0], [1], [0, 0, 1, 1], [], []>, precision = #tpu.contract_precision<fp32>} : vector<16x32xf32>, vector<32x128xf32>, vector<16x128xf32> -> vector<16x128xf32>
    %c0_29 = arith.constant 0 : index
    %c0_30 = arith.constant 0 : index
    %c0_31 = arith.constant 0 : index
    %30 = vector.load %arg5[%c0_29, %c0_30, %c0_31] : memref<3x128x64xf32, #tpu.memory_space<vmem>>, vector<1x128x64xf32>
    %31 = vector.shape_cast %30 : vector<1x128x64xf32> to vector<128x64xf32>
    %cst_32 = arith.constant dense<0.000000e+00> : vector<16x64xf32>
    %32 = tpu.matmul %29, %31, %cst_32 {dimension_numbers = #tpu.dot_dimension_numbers<[1], [0], [0], [1], [0, 0, 1, 1], [], []>, precision = #tpu.contract_precision<fp32>} : vector<16x128xf32>, vector<128x64xf32>, vector<16x64xf32> -> vector<16x64xf32>
    %c1_33 = arith.constant 1 : index
    %c0_34 = arith.constant 0 : index
    %c0_35 = arith.constant 0 : index
    %33 = vector.load %arg3[%c1_33, %c0_34, %c0_35] : memref<3x16x32xf32, #tpu.memory_space<vmem>>, vector<1x16x32xf32>
    %34 = vector.shape_cast %33 : vector<1x16x32xf32> to vector<16x32xf32>
    %cst_36 = arith.constant dense<0.000000e+00> : vector<16x128xf32>
    %35 = tpu.matmul %34, %26, %cst_36 {dimension_numbers = #tpu.dot_dimension_numbers<[1], [0], [0], [1], [0, 0, 1, 1], [], []>, precision = #tpu.contract_precision<fp32>} : vector<16x32xf32>, vector<32x128xf32>, vector<16x128xf32> -> vector<16x128xf32>
    %c1_37 = arith.constant 1 : index
    %c0_38 = arith.constant 0 : index
    %c0_39 = arith.constant 0 : index
    %36 = vector.load %arg5[%c1_37, %c0_38, %c0_39] : memref<3x128x64xf32, #tpu.memory_space<vmem>>, vector<1x128x64xf32>
    %37 = vector.shape_cast %36 : vector<1x128x64xf32> to vector<128x64xf32>
    %cst_40 = arith.constant dense<0.000000e+00> : vector<16x64xf32>
    %38 = tpu.matmul %35, %37, %cst_40 {dimension_numbers = #tpu.dot_dimension_numbers<[1], [0], [0], [1], [0, 0, 1, 1], [], []>, precision = #tpu.contract_precision<fp32>} : vector<16x128xf32>, vector<128x64xf32>, vector<16x64xf32> -> vector<16x64xf32>
    %39 = arith.addf %32, %38 : vector<16x64xf32>
    %c2_41 = arith.constant 2 : index
    %c0_42 = arith.constant 0 : index
    %c0_43 = arith.constant 0 : index
    %40 = vector.load %arg3[%c2_41, %c0_42, %c0_43] : memref<3x16x32xf32, #tpu.memory_space<vmem>>, vector<1x16x32xf32>
    %41 = vector.shape_cast %40 : vector<1x16x32xf32> to vector<16x32xf32>
    %cst_44 = arith.constant dense<0.000000e+00> : vector<16x128xf32>
    %42 = tpu.matmul %41, %26, %cst_44 {dimension_numbers = #tpu.dot_dimension_numbers<[1], [0], [0], [1], [0, 0, 1, 1], [], []>, precision = #tpu.contract_precision<fp32>} : vector<16x32xf32>, vector<32x128xf32>, vector<16x128xf32> -> vector<16x128xf32>
    %c2_45 = arith.constant 2 : index
    %c0_46 = arith.constant 0 : index
    %c0_47 = arith.constant 0 : index
    %43 = vector.load %arg5[%c2_45, %c0_46, %c0_47] : memref<3x128x64xf32, #tpu.memory_space<vmem>>, vector<1x128x64xf32>
    %44 = vector.shape_cast %43 : vector<1x128x64xf32> to vector<128x64xf32>
    %cst_48 = arith.constant dense<0.000000e+00> : vector<16x64xf32>
    %45 = tpu.matmul %42, %44, %cst_48 {dimension_numbers = #tpu.dot_dimension_numbers<[1], [0], [0], [1], [0, 0, 1, 1], [], []>, precision = #tpu.contract_precision<fp32>} : vector<16x128xf32>, vector<128x64xf32>, vector<16x64xf32> -> vector<16x64xf32>
    %46 = arith.addf %39, %45 : vector<16x64xf32>
    %cst_49 = arith.constant 0.000000e+00 : f32
    %47 = vector.broadcast %cst_49 : f32 to vector<16x64xf32>
    %48 = arith.cmpf oge, %46, %47 : vector<16x64xf32>
    %cst_50 = arith.constant 1.000000e-01 : f32
    %49 = vector.broadcast %cst_50 : f32 to vector<16x64xf32>
    %50 = arith.mulf %49, %46 : vector<16x64xf32>
    %51 = arith.select %48, %46, %50 : vector<16x64xi1>, vector<16x64xf32>
    %52 = arith.subf %51, %1 : vector<16x64xf32>
    %c0_51 = arith.constant 0 : index
    %c0_52 = arith.constant 0 : index
    %c0_53 = arith.constant 0 : index
    %53 = vector.load %arg2[%c0_51, %c0_52, %c0_53] : memref<3x32x16xf32, #tpu.memory_space<vmem>>, vector<1x32x16xf32>
    %54 = vector.shape_cast %53 : vector<1x32x16xf32> to vector<32x16xf32>
    %cst_54 = arith.constant dense<0.000000e+00> : vector<32x64xf32>
    %55 = tpu.matmul %54, %52, %cst_54 {dimension_numbers = #tpu.dot_dimension_numbers<[1], [0], [0], [1], [0, 0, 1, 1], [], []>, precision = #tpu.contract_precision<fp32>} : vector<32x16xf32>, vector<16x64xf32>, vector<32x64xf32> -> vector<32x64xf32>
    %c0_55 = arith.constant 0 : index
    %c0_56 = arith.constant 0 : index
    %c0_57 = arith.constant 0 : index
    %56 = vector.load %arg6[%c0_55, %c0_56, %c0_57] : memref<3x64x128xf32, #tpu.memory_space<vmem>>, vector<1x64x128xf32>
    %57 = vector.shape_cast %56 : vector<1x64x128xf32> to vector<64x128xf32>
    %cst_58 = arith.constant dense<0.000000e+00> : vector<32x128xf32>
    %58 = tpu.matmul %55, %57, %cst_58 {dimension_numbers = #tpu.dot_dimension_numbers<[1], [0], [0], [1], [0, 0, 1, 1], [], []>, precision = #tpu.contract_precision<fp32>} : vector<32x64xf32>, vector<64x128xf32>, vector<32x128xf32> -> vector<32x128xf32>
    %c1_59 = arith.constant 1 : index
    %c0_60 = arith.constant 0 : index
    %c0_61 = arith.constant 0 : index
    %59 = vector.load %arg2[%c1_59, %c0_60, %c0_61] : memref<3x32x16xf32, #tpu.memory_space<vmem>>, vector<1x32x16xf32>
    %60 = vector.shape_cast %59 : vector<1x32x16xf32> to vector<32x16xf32>
    %cst_62 = arith.constant dense<0.000000e+00> : vector<32x64xf32>
    %61 = tpu.matmul %60, %52, %cst_62 {dimension_numbers = #tpu.dot_dimension_numbers<[1], [0], [0], [1], [0, 0, 1, 1], [], []>, precision = #tpu.contract_precision<fp32>} : vector<32x16xf32>, vector<16x64xf32>, vector<32x64xf32> -> vector<32x64xf32>
    %c1_63 = arith.constant 1 : index
    %c0_64 = arith.constant 0 : index
    %c0_65 = arith.constant 0 : index
    %62 = vector.load %arg6[%c1_63, %c0_64, %c0_65] : memref<3x64x128xf32, #tpu.memory_space<vmem>>, vector<1x64x128xf32>
    %63 = vector.shape_cast %62 : vector<1x64x128xf32> to vector<64x128xf32>
    %cst_66 = arith.constant dense<0.000000e+00> : vector<32x128xf32>
    %64 = tpu.matmul %61, %63, %cst_66 {dimension_numbers = #tpu.dot_dimension_numbers<[1], [0], [0], [1], [0, 0, 1, 1], [], []>, precision = #tpu.contract_precision<fp32>} : vector<32x64xf32>, vector<64x128xf32>, vector<32x128xf32> -> vector<32x128xf32>
    %65 = arith.addf %58, %64 : vector<32x128xf32>
    %c2_67 = arith.constant 2 : index
    %c0_68 = arith.constant 0 : index
    %c0_69 = arith.constant 0 : index
    %66 = vector.load %arg2[%c2_67, %c0_68, %c0_69] : memref<3x32x16xf32, #tpu.memory_space<vmem>>, vector<1x32x16xf32>
    %67 = vector.shape_cast %66 : vector<1x32x16xf32> to vector<32x16xf32>
    %cst_70 = arith.constant dense<0.000000e+00> : vector<32x64xf32>
    %68 = tpu.matmul %67, %52, %cst_70 {dimension_numbers = #tpu.dot_dimension_numbers<[1], [0], [0], [1], [0, 0, 1, 1], [], []>, precision = #tpu.contract_precision<fp32>} : vector<32x16xf32>, vector<16x64xf32>, vector<32x64xf32> -> vector<32x64xf32>
    %c2_71 = arith.constant 2 : index
    %c0_72 = arith.constant 0 : index
    %c0_73 = arith.constant 0 : index
    %69 = vector.load %arg6[%c2_71, %c0_72, %c0_73] : memref<3x64x128xf32, #tpu.memory_space<vmem>>, vector<1x64x128xf32>
    %70 = vector.shape_cast %69 : vector<1x64x128xf32> to vector<64x128xf32>
    %cst_74 = arith.constant dense<0.000000e+00> : vector<32x128xf32>
    %71 = tpu.matmul %68, %70, %cst_74 {dimension_numbers = #tpu.dot_dimension_numbers<[1], [0], [0], [1], [0, 0, 1, 1], [], []>, precision = #tpu.contract_precision<fp32>} : vector<32x64xf32>, vector<64x128xf32>, vector<32x128xf32> -> vector<32x128xf32>
    %72 = arith.addf %65, %71 : vector<32x128xf32>
    %cst_75 = arith.constant 0.000000e+00 : f32
    %73 = vector.broadcast %cst_75 : f32 to vector<32x128xf32>
    %74 = arith.cmpf oge, %72, %73 : vector<32x128xf32>
    %cst_76 = arith.constant 1.000000e-01 : f32
    %75 = vector.broadcast %cst_76 : f32 to vector<32x128xf32>
    %76 = arith.mulf %75, %72 : vector<32x128xf32>
    %77 = arith.select %74, %72, %76 : vector<32x128xi1>, vector<32x128xf32>
    %78 = arith.addf %77, %26 : vector<32x128xf32>
    %c0_77 = arith.constant 0 : index
    %c0_78 = arith.constant 0 : index
    %c0_79 = arith.constant 0 : index
    %79 = vector.load %arg7[%c0_77, %c0_78, %c0_79] : memref<1x32x128xf32, #tpu.memory_space<vmem>>, vector<1x32x128xf32>
    %80 = vector.shape_cast %79 : vector<1x32x128xf32> to vector<32x128xf32>
    %81 = vector.shape_cast %78 : vector<32x128xf32> to vector<1x32x128xf32>
    tpu.vector_store %arg7[%c0_77, %c0_78, %c0_79], %81 {strides = array<i32>} : memref<1x32x128xf32, #tpu.memory_space<vmem>>, vector<1x32x128xf32>,
    return
  }
  func.func @transform_0(%arg0: i32) -> (i32, i32, i32) {
    %c0_i32 = arith.constant 0 : i32
    %c0_i32_0 = arith.constant 0 : i32
    %c0_i32_1 = arith.constant 0 : i32
    return %arg0, %c0_i32, %c0_i32_0 : i32, i32, i32
  }
  func.func @transform_1(%arg0: i32) -> (i32, i32, i32) {
    %c0_i32 = arith.constant 0 : i32
    %c0_i32_0 = arith.constant 0 : i32
    %c0_i32_1 = arith.constant 0 : i32
    %c0_i32_2 = arith.constant 0 : i32
    return %c0_i32, %c0_i32_0, %c0_i32_1 : i32, i32, i32
  }
  func.func @transform_2(%arg0: i32) -> (i32, i32, i32) {
    %c0_i32 = arith.constant 0 : i32
    %c0_i32_0 = arith.constant 0 : i32
    %c0_i32_1 = arith.constant 0 : i32
    %c0_i32_2 = arith.constant 0 : i32
    return %c0_i32, %c0_i32_0, %c0_i32_1 : i32, i32, i32
  }
  func.func @transform_3(%arg0: i32) -> (i32, i32, i32) {
    %c0_i32 = arith.constant 0 : i32
    %c0_i32_0 = arith.constant 0 : i32
    %c0_i32_1 = arith.constant 0 : i32
    %c0_i32_2 = arith.constant 0 : i32
    return %c0_i32, %c0_i32_0, %c0_i32_1 : i32, i32, i32
  }
  func.func @transform_4(%arg0: i32) -> (i32, i32, i32) {
    %c0_i32 = arith.constant 0 : i32
    %c0_i32_0 = arith.constant 0 : i32
    %c0_i32_1 = arith.constant 0 : i32
    %c0_i32_2 = arith.constant 0 : i32
    return %c0_i32, %c0_i32_0, %c0_i32_1 : i32, i32, i32
  }
  func.func @transform_5(%arg0: i32) -> (i32, i32, i32) {
    %c0_i32 = arith.constant 0 : i32
    %c0_i32_0 = arith.constant 0 : i32
    %c0_i32_1 = arith.constant 0 : i32
    %c0_i32_2 = arith.constant 0 : i32
    return %c0_i32, %c0_i32_0, %c0_i32_1 : i32, i32, i32
  }
  func.func @transform_6(%arg0: i32) -> (i32, i32, i32) {
    %c0_i32 = arith.constant 0 : i32
    %c0_i32_0 = arith.constant 0 : i32
    %c0_i32_1 = arith.constant 0 : i32
    return %arg0, %c0_i32, %c0_i32_0 : i32, i32, i32
  }
}

</mosaic_0001>

<bundles_post_ra>
// kernel: tpu_custom_call.1
= control target key start
LH: loop header
LB: loop body
LE: loop exit
PB: predicated region body
PF: predicated region fallthrough
CT: control target
= control target key end

     0   :  { %11 = vsyncpa [#allocation3], 0  ;;  %s19542_s0 = inlined_call_operand.vmem [shape: f32[2,16,64], index: 0, kind: input, shape index: {}]   ;;  %s19543_s1 = inlined_call_operand.vmem [shape: f32[3,32,16], index: 1, kind: input, shape index: {}]   ;;  %s19544_s2 = inlined_call_operand.vmem [shape: f32[3,16,32], index: 2, kind: input, shape index: {}]   ;;  %s19545_s3 = inlined_call_operand.vmem [shape: f32[3,64,128], index: 3, kind: input, shape index: {}]   ;;  %s19546_s4 = inlined_call_operand.vmem [shape: f32[3,128,64], index: 4, kind: input, shape index: {}]   ;;  %s19547_s5 = inlined_call_operand.vmem [shape: f32[3,64,128], index: 5, kind: input, shape index: {}]   ;;  %s19548_s6 = inlined_call_operand.hbm [shape: f32[2,32,128], index: 6, kind: output, shape index: {}]  }
   0x1   :  { %13 = vsyncpa [#allocation3 + $0x1], 0  ;;  %s16846_s21 = smov 0   ;;  %s16848_s22 = smov 0  }
   0x2   :  { %s16850_s23 = smov 0   ;;  %s16852_s24 = smov 0  }
   0x3 LB: > { %s16867_s25 = sadd.s32 4294967295, %s16806_s24   ;;  %s11791_s26 = sadd.s32 4294967294, %s16806_s24   ;;  %s16806_s24 = sphi %s16852_s24, %s19795_s24   ;;  %s16802_s23 = sphi %s16850_s23, %s19794_s23   ;;  %s16798_s22 = sphi %s16848_s22, %s19793_s22   ;;  %s16794_s21 = sphi %s16846_s21, %s19792_s21  }
   0x4   : > { %s16871_s27 = sadd.s32 1, %s16806_s24   ;;  %s157_s28 = sadd.s32 1, %s16802_s23 }
   0x5   : > { %s154_s29 = ssub.s32 %s16806_s24, %s16871_s27  ;;  %p167_p0 = scmp.ne.s32.totalorder %s16802_s23, %s16798_s22 }
   0x6   : > { %p155_p1 = scmp.eq.s32.totalorder %s154_s29, 0  ;;  %p168_p2 = scmp.eq.s32.totalorder %s16867_s25, 1 }
   0x7   : > { %p173_p3 = scmp.ne.s32.totalorder %s16798_s22, %s16794_s21  ;;  %p174_p4 = scmp.eq.s32.totalorder %s11791_s26, 1 }
   0x8   : > { %s16882_s30 = scalar_select %p155_p1, %s16802_s23, %s157_s28  }
   0x9   : > { %p16884_p5 = por %p168_p2, %p167_p0  ;;  %p16888_p6 = por %p174_p4, %p173_p3 }
   0xa   : > { %p11794_p7 = scmp.ge.s32.totalorder %s16806_s24, 1  ;;  %p215_p8 = scmp.lt.s32.totalorder %s16806_s24, 3 }
   0xc   : > { %p216_p9 = pnand %p11794_p7, %p215_p8 }
   0xe   : > { %219 = sbr.rel (%p216_p9) target bundleno = 3053 (0xbed), region = 44 }
  0x15   : > { %p245_p10 = scmp.lt.s32.totalorder %s16867_s25, 1  ;;  %v252_v0 = vld [vmem:[%s19543_s1] sm:$0xff]  ;;  %vm256_vm0 = vcmask 130048   ;;  %v253_v1 = vld [vmem:[%s19543_s1 + $0x8] sm:$0xff]  ;;  %v254_v2 = vld [vmem:[%s19543_s1 + $0x10] sm:$0xff]  ;;  %vm1479_vm1 = vcmask 523264  }
  0x16   : > { %v258_v3 = vsel %vm256_vm0, %v252_v0, 0  ;;  %v261_v4 = vsel %vm256_vm0, %v253_v1, 0  ;;  %v264_v5 = vsel %vm256_vm0, %v254_v2, 0  ;;  %v255_v6 = vld [vmem:[%s19543_s1 + $0x18] sm:$0xff]  ;;  %v11798_v7 = vld [vmem:[%s19543_s1 + $0x20] sm:$0xff]  ;;  %v11799_v8 = vld [vmem:[%s19543_s1 + $0x28] sm:$0xff] }
  0x17   : > { %s246_s26 = scalar_select %p245_p10, %s16867_s25, 1  ;;  %v16917_v9 = vand.u32 4294901760, %v258_v3  ;;  %v16919_v10 = vand.u32 4294901760, %v261_v4  ;;  %v16921_v11 = vand.u32 4294901760, %v264_v5  ;;  %v267_v12 = vsel %vm256_vm0, %v255_v6, 0  ;;  %v11800_v13 = vld [vmem:[%s19543_s1 + $0x30] sm:$0xff] }
  0x18   : > { %v16927_v14 = vand.u32 4294901760, %v267_v12  ;;  %v871_v15 = vsel %vm256_vm0, %v11798_v7, 0  ;;  %v874_v16 = vsel %vm256_vm0, %v11799_v8, 0  ;;  %v877_v17 = vsel %vm256_vm0, %v11800_v13, 0  ;;  %v11801_v31 = vld [vmem:[%s19543_s1 + $0x38] sm:$0xff]  ;;  %v11802_v8 = vld [vmem:[%s19545_s3 + $0x40] sm:$0xff] }
  0x19   : > { %s11879_s9 = sshll.u32 %s246_s26, 4  ;;  %v16933_v18 = vsub.f32 %v258_v3, %v16917_v9  ;;  %v16936_v19 = vsub.f32 %v261_v4, %v16919_v10  ;;  %v16939_v20 = vsub.f32 %v264_v5, %v16921_v11  ;;  %12975 = vmatprep.mubr.f32.mxu0 %v16917_v9  ;;  %v16942_v21 = vand.u32 4294901760, %v871_v15  ;;  %s242_s13 = sand.u32 1, %s16798_s22  }
  0x1a   : > { %s16947_s12 = scalar_lea.vmem %s19542_s0, %s11879_s9  ;;  %v16950_v22 = vsub.f32 %v267_v12, %v16927_v14  ;;  %v16952_v23 = vand.u32 4294901760, %v874_v16  ;;  %v16954_v24 = vand.u32 4294901760, %v877_v17  ;;  %v880_v43 = vsel %vm256_vm0, %v11801_v31, 0  ;;  %v11803_v12 = vld [vmem:[%s19545_s3 + $0x48] sm:$0xff]  ;;  %s11795_s14 = sshll.u32 %s242_s13, 5 }
  0x1b   : > { %19651 = vst [vmem:[#allocation5_spill] sm:$0xff] %v16942_v21  ;;  %v250_v25 = vld [vmem:[%s16947_s12] sm:$0xff]  ;;  %v251_v26 = vld [vmem:[%s16947_s12 + $0x8] sm:$0xff]  ;;  %v16959_v27 = vand.u32 4294901760, %v16933_v18  ;;  %v16962_v28 = vand.u32 4294901760, %v16936_v19  ;;  %v16965_v29 = vand.u32 4294901760, %v16939_v20  ;;  %v16968_v30 = vsub.f32 %v871_v15, %v16942_v21 }
  0x1c   : > { %19652 = vst [vmem:[#allocation6_spill] sm:$0xff] %v16950_v22  ;;  %19653 = vst [vmem:[#allocation7_spill] sm:$0xff] %v16952_v23  ;;  %v270_v32 = vand.u32 4294901760, %v250_v25  ;;  %v273_v33 = vand.u32 4294901760, %v251_v26  ;;  %v16974_v34 = vand.u32 4294901760, %v16950_v22  ;;  %v16977_v35 = vsub.f32 %v874_v16, %v16952_v23  ;;  %s244_s15 = scalar_lea.vmem [#allocation2], %s11795_s14 }
  0x1d   : > { %19654 = vst [vmem:[#allocation8_spill] sm:$0xff] %v16954_v24  ;;  %19655 = vst [vmem:[#allocation9_spill] sm:$0xff] %v16959_v27  ;;  %v339_v36 = vsub.f32 %v16933_v18, %v16959_v27  ;;  %v349_v37 = vsub.f32 %v16936_v19, %v16962_v28  ;;  %v359_v38 = vsub.f32 %v16939_v20, %v16965_v29  ;;  %v16986_v39 = vand.u32 4294901760, %v16968_v30  ;;  %s11729_s16 = sshll.u32 %s244_s15, 4  ;;  %s11880_s17 = sshll.u32 %s16867_s25, 9  ;;  %s19490_s16 = int_to_ptr.vmem [resolvable:$true] %s11729_s16 }
  0x1e   : > { %19656 = vst [vmem:[#allocation10_spill] sm:$0xff] %v16962_v28  ;;  %19657 = vst [vmem:[#allocation11_spill] sm:$0xff] %v16965_v29  ;;  %v16988_v40 = vpack.c.bf16 %v273_v33, %v270_v32  ;;  %v378_v41 = vsub.f32 %v250_v25, %v270_v32  ;;  %v385_v42 = vsub.f32 %v251_v26, %v273_v33  ;;  %v16999_v49 = vand.u32 4294901760, %v16977_v35  ;;  %s19496_s20 = scalar_lea.hbm %s19548_s6, %s11880_s17  ;;  %s19501_s25 = scalar_lea.sflag [#allocation3], %s242_s13 }
  0x1f   : > { %19658 = vst [vmem:[#allocation12_spill] sm:$0xff] %v16968_v30  ;;  %19659 = vst [vmem:[#allocation13_spill] sm:$0xff] %v16974_v34  ;;  %v16991_v44 = vand.u32 4294901760, %v339_v36  ;;  %v369_v45 = vsub.f32 %v16950_v22, %v16974_v34  ;;  %v16996_v46 = vand.u32 4294901760, %v349_v37  ;;  %v17003_v50 = vand.u32 4294901760, %v359_v38  ;;  %s16744_s26 = scalar_lea.vmem %s19490_s16, 512 }
  0x20   : > { %19660 = vst [vmem:[#allocation14_spill] sm:$0xff] %v16977_v35  ;;  %19661 = vst [vmem:[#allocation15_spill] sm:$0xff] %v16986_v39  ;;  %14942 = vmatprep.subr.bf16.mxu1 %v16988_v40  ;;  %v379_v47 = vand.u32 4294901760, %v378_v41  ;;  %v386_v48 = vand.u32 4294901760, %v385_v42  ;;  %v952_v51 = vsub.f32 %v16968_v30, %v16986_v39  ;;  %v17008_v52 = vsub.f32 %v877_v17, %v16954_v24  ;;  %p16745_p11 = scmp.ne.s32.totalorder %s19490_s16, %s16744_s26  ;;  %s16808_s28 = smov [#allocation2]  }
  0x21   : > { %19662 = vst [vmem:[#allocation16_spill] sm:$0xff] %v16999_v49  ;;  %14944 = vmatpush3.bf16.msra.mxu1 %v16988_v40  ;;  %12965 = vmatprep.mubr.f32.mxu1 %v16991_v44  ;;  %v17010_v53 = vand.u32 4294901760, %v880_v43  ;;  %v17020_v58 = vand.u32 4294901760, %v369_v45  ;;  %v962_v61 = vsub.f32 %v16977_v35, %v16999_v49  ;;  %v17035_v2 = vpack.c.bf16 %v385_v42, %v378_v41  ;;  %s16748_s29 = sshll.u32 %s16808_s28, 4  ;;  %s16749_s29 = int_to_ptr.vmem [resolvable:$false] %s16748_s29 }
  0x22   : > { %19663 = vst [vmem:[#allocation17_spill] sm:$0xff] %v17008_v52  ;;  %v380_v54 = vsub.f32 %v378_v41, %v379_v47  ;;  %v387_v55 = vsub.f32 %v385_v42, %v386_v48  ;;  %14966 = vmatprep.subr.bf16.mxu1 %v16988_v40  ;;  %v17014_v56 = vand.u32 4294901760, %v17008_v52  ;;  %v17026_v62 = vand.u32 4294901760, %v952_v51  ;;  %v11804_v41 = vld [vmem:[%s19545_s3 + $0x50] sm:$0xff]  ;;  %v11805_v42 = vld [vmem:[%s19545_s3 + $0x58] sm:$0xff]  ;;  %v11806_v51 = vld [vmem:[%s19545_s3 + $0x60] sm:$0xff]  ;;  %p16746_p12 = pnand %p16745_p11, %p16884_p5  ;;  %p16751_p0 = scmp.lt.s32.totalorder %s19490_s16, %s16749_s29 }
  0x23   : > { %19664 = vst [vmem:[#allocation18_spill] sm:$0xff] %v17010_v53  ;;  %v17017_v57 = vsub.f32 %v880_v43, %v17010_v53  ;;  %v17039_v3 = vand.u32 4294901760, %v962_v61  ;;  %v17063_v7 = vpack.c.bf16 %v386_v48, %v379_v47  ;;  %v1493_v13 = vand.u32 4294901760, %v11802_v8  ;;  %s16750_s9 = scalar_lea.vmem %s16749_s29, 1024 }
  0x24   : > { %19665 = vst [vmem:[#allocation19_spill] sm:$0xff] %v17014_v56  ;;  %12966 = vmatmul.mubr.f32.vlgmr.msra.gmra.mrb[0].mxu1 %v16996_v46  ;;  %v381_v59 = vand.u32 4294901760, %v380_v54  ;;  %v388_v60 = vand.u32 4294901760, %v387_v55  ;;  %19667 = vst [vmem:[#allocation21_spill] sm:$0xff] %v17026_v62  ;;  %v972_v63 = vsub.f32 %v17008_v52, %v17014_v56  ;;  %v1496_v15 = vand.u32 4294901760, %v11803_v12  ;;  %v11807_v54 = vld [vmem:[%s19545_s3 + $0x68] sm:$0xff]  ;;  %p16747_p13 = pneg %p16746_p12  ;;  %p16752_p1 = scmp.lt.s32.totalorder %s16750_s9, %s16744_s26 }
  0x25   : > { %19666 = vst [vmem:[#allocation20_spill] sm:$0xff] %v17017_v57  ;;  %12968 = vmatprep.mubr.f32.mxu1 %v17003_v50  ;;  %14968 = vmatpush3.bf16.msra.mxu1 %v16988_v40  ;;  %v17031_v0 = vand.u32 4294901760, %v17017_v57  ;;  %19669 = vst [vmem:[#allocation23_spill] sm:$0xff] %v17039_v3  ;;  %v17119_v17 = vsub.f32 %v11802_v8, %v1493_v13  ;;  %v1499_v43 = vand.u32 4294901760, %v11804_v41  ;;  %v1502_v45 = vand.u32 4294901760, %v11805_v42 }
  0x26   : > { %v17033_v1 = vpack.c.bf16 %v388_v60, %v381_v59  ;;  %v17045_v5 = vand.u32 4294901760, %v972_v63  ;;  %v17117_v16 = vpack.c.bf16 %v1496_v15, %v1493_v13  ;;  %v17121_v25 = vsub.f32 %v11803_v12, %v1496_v15  ;;  %v11808_v13 = vld [vmem:[%s19545_s3 + $0x70] sm:$0xff]  ;;  %v11809_v15 = vld [vmem:[%s19545_s3 + $0x78] sm:$0xff]  ;;  %p16753_p2 = por %p16752_p1, %p16751_p0 }
  0x27   : > { %19668 = vst [vmem:[#allocation22_spill] sm:$0xff] %v17031_v0  ;;  %v982_v4 = vsub.f32 %v17017_v57, %v17031_v0  ;;  %v19550_v26 = vand.u32 4294901760, %v17119_v17  ;;  %v1621_v47 = vsub.f32 %v11804_v41, %v1499_v43  ;;  %v1628_v48 = vsub.f32 %v11805_v42, %v1502_v45 }
  0x28   : > { %12969 = vmatmul.mubr.f32.gmra.mrb[2].mxu1 %v17020_v58  ;;  %14946 = vmatprep.subr.bf16.mxu0 %v17033_v1  ;;  %19670 = vst [vmem:[#allocation24_spill] sm:$0xff] %v17045_v5  ;;  %v19549_v31 = vand.u32 4294901760, %v17121_v25  ;;  %v1505_v60 = vand.u32 4294901760, %v11806_v51  ;;  %v1508_v61 = vand.u32 4294901760, %v11807_v54  ;;  %v1514_v41 = vand.u32 4294901760, %v11809_v15  ;;  %p16754_p3 = pnand %p16753_p2, %p16747_p13 }
  0x29   : > { %14948 = vmatpush3.bf16.msra.mxu0 %v17033_v1  ;;  %13025 = vmatprep.mubr.f32.mxu1 %v17026_v62  ;;  %v17051_v6 = vand.u32 4294901760, %v982_v4  ;;  %v1609_v32 = vsub.f32 %v17119_v17, %v19550_v26  ;;  %v1622_v55 = vand.u32 4294901760, %v1621_v47  ;;  %v1629_v59 = vand.u32 4294901760, %v1628_v48 }
  0x2a   : > { %14950 = vmatprep.subr.bf16.mxu0 %v17035_v2  ;;  %14970 = vmatprep.subr.bf16.mxu1 %v17033_v1  ;;  %v1616_v33 = vsub.f32 %v17121_v25, %v19549_v31  ;;  %v1635_v8 = vsub.f32 %v11806_v51, %v1505_v60  ;;  %v1642_v12 = vsub.f32 %v11807_v54, %v1508_v61  ;;  %vm4146_vm2 = vcmask 261120  }
  0x2b   : > { %19671 = vst [vmem:[#allocation25_spill] sm:$0xff] %v17051_v6  ;;  %v1610_v36 = vand.u32 4294901760, %v1609_v32  ;;  %v1623_v63 = vsub.f32 %v1621_v47, %v1622_v55  ;;  %v1630_v4 = vsub.f32 %v1628_v48, %v1629_v59  ;;  %v1656_v51 = vsub.f32 %v11809_v15, %v1514_v41 }
  0x2c   : > { %12976 = vmatmul.mubr.f32.vlgmr.msra.gmra.mrb[0].mxu0 %v16919_v10  ;;  %13026 = vmatmul.mubr.f32.vlgmr.msra.gmra.mrb[4].mxu1 %v17039_v3  ;;  %v1617_v37 = vand.u32 4294901760, %v1616_v33 }
  0x2d   : > { %12978 = vmatprep.mubr.f32.mxu0 %v16921_v11  ;;  %13028 = vmatprep.mubr.f32.mxu1 %v17045_v5  ;;  %v1624_v32 = vand.u32 4294901760, %v1623_v63  ;;  %v1631_v33 = vand.u32 4294901760, %v1630_v4 }
  0x2e   : > { %14952 = vmatpush3.bf16.msra.mxu0 %v17035_v2  ;;  %14972 = vmatpush3.bf16.msra.mxu1 %v17033_v1  ;;  %v15005_v38 = vpack.c.bf16 %v1617_v37, %v1610_v36  ;;  %v1636_v36 = vand.u32 4294901760, %v1635_v8  ;;  %v1643_v37 = vand.u32 4294901760, %v1642_v12 }
  0x2f   : > { %14954 = vmatprep.subr.bf16.mxu0 %v16988_v40  ;;  %14974 = vmatprep.subr.bf16.mxu1 %v17035_v2  ;;  %v15009_v42 = vpack.c.bf16 %v1631_v33, %v1624_v32 }
  0x30   : > { %12979 = vmatmul.mubr.f32.gmra.mrb[2].mxu0 %v16927_v14  ;;  %13029 = vmatmul.mubr.f32.gmra.mrb[6].mxu1 %v17051_v6  ;;  %v1637_v31 = vsub.f32 %v1635_v8, %v1636_v36  ;;  %v1644_v26 = vsub.f32 %v1642_v12, %v1643_v37 }
  0x31   : > { %12985 = vmatprep.mubr.f32.mxu0 %v16933_v18  ;;  %13035 = vmatprep.mubr.f32.mxu1 %v16942_v21 }
  0x32   : > { %v1638_v54 = vand.u32 4294901760, %v1637_v31  ;;  %v17157_v31 = vpack.c.bf16 %v1508_v61, %v1505_v60 }
  0x34   : > { %12986 = vmatmul.mubr.f32.vlgmr.msra.gmra.mrb[0].mxu0 %v16936_v19  ;;  %13036 = vmatmul.mubr.f32.vlgmr.msra.gmra.mrb[4].mxu1 %v16952_v23 }
  0x35   : > { %12988 = vmatprep.mubr.f32.mxu0 %v16939_v20  ;;  %13038 = vmatprep.mubr.f32.mxu1 %v16954_v24 }
  0x36   : > { %14956 = vmatpush3.bf16.msra.mxu0 %v16988_v40  ;;  %14976 = vmatpush3.bf16.msra.mxu1 %v17035_v2 }
  0x37   : > { %14958 = vmatprep.subr.bf16.mxu0 %v17063_v7  ;;  %14978 = vmatprep.subr.bf16.mxu1 %v16988_v40 }
  0x38   : > { %12989 = vmatmul.mubr.f32.gmra.mrb[2].mxu0 %v16950_v22  ;;  %13039 = vmatmul.mubr.f32.gmra.mrb[6].mxu1 %v17010_v53 }
  0x39   : > { %12995 = vmatprep.mubr.f32.mxu0 %v16959_v27  ;;  %13045 = vmatprep.mubr.f32.mxu1 %v16968_v30  ;;  %v17151_v30 = vpack.c.bf16 %v1502_v45, %v1499_v43  ;;  %v17172_v43 = vpack.c.bf16 %v1629_v59, %v1622_v55  ;;  %v17174_v45 = vpack.c.bf16 %v1643_v37, %v1636_v36  ;;  %v11811_v55 = vld [vmem:[%s19543_s1 + $0x48] sm:$0xff] }
  0x3a   : > { %v2845_v37 = vsel %vm256_vm0, %v11811_v55, 0 }
  0x3c   : > { %12996 = vmatmul.mubr.f32.vlgmr.msra.gmra.mrb[0].mxu0 %v16962_v28  ;;  %13046 = vmatmul.mubr.f32.vlgmr.msra.gmra.mrb[4].mxu1 %v16977_v35 }
  0x3d   : > { %12998 = vmatprep.mubr.f32.mxu0 %v16965_v29  ;;  %13048 = vmatprep.mubr.f32.mxu1 %v17008_v52 }
  0x3e   : > { %14960 = vmatpush3.bf16.msra.mxu0 %v17063_v7  ;;  %14980 = vmatpush3.bf16.msra.mxu1 %v16988_v40 }
  0x3f   : > { %14962 = vmatprep.subr.bf16.mxu0 %v16988_v40  ;;  %14982 = vmatprep.subr.bf16.mxu1 %v17063_v7 }
  0x40   : > { %12999 = vmatmul.mubr.f32.gmra.mrb[2].mxu0 %v16974_v34  ;;  %13049 = vmatmul.mubr.f32.gmra.mrb[6].mxu1 %v17017_v57 }
  0x41   : > { %13005 = vmatprep.mubr.f32.mxu0 %v16917_v9  ;;  %13055 = vmatprep.mubr.f32.mxu1 %v16986_v39  ;;  %v1657_v39 = vand.u32 4294901760, %v1656_v51 }
  0x43   : > { %v1658_v35 = vsub.f32 %v1656_v51, %v1657_v39 }
  0x44   : > { %13006 = vmatmul.mubr.f32.vlgmr.msra.gmra.mrb[0].mxu0 %v16919_v10  ;;  %13056 = vmatmul.mubr.f32.vlgmr.msra.gmra.mrb[4].mxu1 %v16999_v49 }
  0x45   : > { %13008 = vmatprep.mubr.f32.mxu0 %v16921_v11  ;;  %13058 = vmatprep.mubr.f32.mxu1 %v17014_v56  ;;  %v1645_v56 = vand.u32 4294901760, %v1644_v26  ;;  %v1659_v4 = vand.u32 4294901760, %v1658_v35  ;;  %v15021_v26 = vpack.c.bf16 %v17121_v25, %v17119_v17 }
  0x46   : > { %14964 = vmatpush3.bf16.msra.mxu0 %v16988_v40  ;;  %14984 = vmatpush3.bf16.msra.mxu1 %v17063_v7 }
  0x47   : > { %14986 = vmatprep.subr.bf16.mxu1 %v16988_v40  ;;  %15006 = vmatprep.subr.bf16.mxu0 %v15005_v38  ;;  %v15013_v57 = vpack.c.bf16 %v1645_v56, %v1638_v54  ;;  %v17167_v56 = vpack.c.bf16 %v1642_v12, %v1635_v8  ;;  %v11810_v8 = vld [vmem:[%s19543_s1 + $0x40] sm:$0xff]  ;;  %v11813_v54 = vld [vmem:[%s19543_s1 + $0x58] sm:$0xff] }
  0x48   : > { %13009 = vmatmul.mubr.f32.gmra.mrb[2].mxu0 %v16927_v14  ;;  %13059 = vmatmul.mubr.f32.gmra.mrb[6].mxu1 %v17031_v0 }
  0x49   : > { %13015 = vmatprep.mubr.f32.mxu0 %v16917_v9  ;;  %13065 = vmatprep.mubr.f32.mxu1 %v16942_v21 }
  0x4c   : > { %13016 = vmatmul.mubr.f32.vlgmr.msra.gmra.mrb[0].mxu0 %v16919_v10  ;;  %13066 = vmatmul.mubr.f32.vlgmr.msra.gmra.mrb[4].mxu1 %v16952_v23 }
  0x4d   : > { %13018 = vmatprep.mubr.f32.mxu0 %v16921_v11  ;;  %13068 = vmatprep.mubr.f32.mxu1 %v16954_v24 }
  0x4e   : > { %14988 = vmatpush3.bf16.msra.mxu1 %v16988_v40  ;;  %15008 = vmatpush3.bf16.msra.mxu0 %v15005_v38  ;;  %v1511_v38 = vand.u32 4294901760, %v11808_v13 }
  0x4f   : > { %14990 = vmatprep.subr.bf16.mxu1 %v17117_v16  ;;  %15010 = vmatprep.subr.bf16.mxu0 %v15009_v42 }
  0x50   : > { %13019 = vmatmul.mubr.f32.gmra.mrb[2].mxu0 %v16927_v14  ;;  %13069 = vmatmul.mubr.f32.gmra.mrb[6].mxu1 %v17010_v53  ;;  %v1649_v0 = vsub.f32 %v11808_v13, %v1511_v38  ;;  %v17161_v35 = vpack.c.bf16 %v1514_v41, %v1511_v38  ;;  %v11812_v41 = vld [vmem:[%s19543_s1 + $0x50] sm:$0xff] }
  0x51   : > { %13075 = vmatprep.mubr.f32.mxu1 %v16942_v21 }
  0x52   : > { %15012 = vmatpush3.bf16.msra.mxu0 %v15009_v42  ;;  %v1650_v49 = vand.u32 4294901760, %v1649_v0 }
  0x53   : > { %15014 = vmatprep.subr.bf16.mxu0 %v15013_v57 }
  0x54   : > { %13076 = vmatmul.mubr.f32.vlgmr.msra.gmra.mrb[4].mxu1 %v16952_v23  ;;  %v1651_v52 = vsub.f32 %v1649_v0, %v1650_v49  ;;  %v17176_v60 = vpack.c.bf16 %v1657_v39, %v1650_v49  ;;  %v2842_v49 = vsel %vm256_vm0, %v11810_v8, 0 }
  0x55   : > { %13078 = vmatprep.mubr.f32.mxu1 %v16954_v24  ;;  %14992 = vmatpush3.bf16.msra.mxu1 %v17117_v16  ;;  %v17197_v42 = vand.u32 4294901760, %v2842_v49 }
  0x56   : > { %15016 = vmatpush3.bf16.msra.mxu0 %v15013_v57  ;;  %v1652_v63 = vand.u32 4294901760, %v1651_v52  ;;  %14994 = vmatprep.subr.bf16.mxu1 %v17151_v30  ;;  %v17163_v52 = vpack.c.bf16 %v1628_v48, %v1621_v47  ;;  %v17170_v57 = vpack.c.bf16 %v1656_v51, %v1649_v0 }
  0x57   : > { %19672 = vst [vmem:[#allocation26_spill] sm:$0xff] %v17197_v42 }
  0x58   : > { %13079 = vmatmul.mubr.f32.gmra.mrb[6].mxu1 %v17010_v53  ;;  %v15017_v32 = vpack.c.bf16 %v1659_v4, %v1652_v63 }
  0x59   : > { %14996 = vmatpush3.bf16.msra.mxu1 %v17151_v30 }
  0x5a   : > { %15018 = vmatprep.subr.bf16.mxu0 %v15017_v32  ;;  %14998 = vmatprep.subr.bf16.mxu1 %v17157_v31 }
  0x5b   : > { %15020 = vmatpush3.bf16.msra.mxu0 %v15017_v32  ;;  %v17203_v32 = vand.u32 4294901760, %v2845_v37 }
  0x5c   : > { %15022 = vmatprep.subr.bf16.mxu0 %v15021_v26 }
  0x5d   : > { %15000 = vmatpush3.bf16.msra.mxu1 %v17157_v31  ;;  %19673 = vst [vmem:[#allocation27_spill] sm:$0xff] %v17203_v32 }
  0x5e   : > { %15002 = vmatprep.subr.bf16.mxu1 %v17161_v35 }
  0x61   : > { %15004 = vmatpush3.bf16.msra.mxu1 %v17161_v35 }
  0x62   : > { %15182 = vmatprep.subr.bf16.mxu1 %v16988_v40 }
  0xf7   : > { %v12967_v61 = vpop.f32.mrb[0].mxu1 }
  0xf8   : > { %v342_v13 = vpop.f32.mrb[1].mxu1 }
  0xfb   : > { %v12970_v47 = vpop.f32.mrb[2].mxu1 }
  0xfc   : > { %v362_v48 = vpop.f32.mrb[3].mxu1 }
 0x11f   : > { %v13017_v15 = vpop.f32.mrb[0].mxu0 }
 0x120   : > { %v17178_v33 = vadd.f32 %v13017_v15, %v12967_v61  ;;  %v835_v38 = vpop.f32.mrb[1].mxu0  ;;  %v2848_v61 = vsel %vm256_vm0, %v11812_v41, 0  ;;  %v17212_v15 = vsub.f32 %v2842_v49, %v17197_v42 }
 0x121   : > { %v17183_v0 = vadd.f32 %v835_v38, %v342_v13  ;;  %v2851_v38 = vsel %vm256_vm0, %v11813_v54, 0 }
 0x122   : > { %19674 = vst [vmem:[#allocation28_spill] sm:$0xff] %v17212_v15  ;;  %v17233_v53 = vand.u32 4294901760, %v2851_v38 }
 0x123   : > { %v13020_v39 = vpop.f32.mrb[2].mxu0 }
 0x124   : > { %v17189_v59 = vadd.f32 %v13020_v39, %v12970_v47  ;;  %v847_v12 = vpop.f32.mrb[3].mxu0  ;;  %v17218_v39 = vand.u32 4294901760, %v2848_v61  ;;  %19677 = vst [vmem:[#allocation31_spill] sm:$0xff] %v17233_v53 }
 0x125   : > { %v17191_v36 = vadd.f32 %v847_v12, %v362_v48 }
 0x126   : > { %19675 = vst [vmem:[#allocation29_spill] sm:$0xff] %v17218_v39 }
 0x127   : > { %v13077_v51 = vpop.f32.mrb[4].mxu1 }
 0x128   : > { %v1484_v63 = vsel %vm1479_vm1, %v13077_v51, 0  ;;  %v1448_v4 = vpop.f32.mrb[5].mxu1 }
 0x129   : > { %v17206_v13 = vand.u32 4294901760, %v1484_v63  ;;  %v1481_v47 = vsel %vm1479_vm1, %v1448_v4, 0  ;;  %v17226_v4 = vsub.f32 %v2845_v37, %v17203_v32 }
 0x12a   : > { %v17209_v48 = vand.u32 4294901760, %v1481_v47 }
 0x12b   : > { %v17216_v8 = vsub.f32 %v1484_v63, %v17206_v13  ;;  %v13080_v55 = vpop.f32.mrb[6].mxu1  ;;  %19676 = vst [vmem:[#allocation30_spill] sm:$0xff] %v17226_v4 }
 0x12c   : > { %v17221_v12 = vsub.f32 %v1481_v47, %v17209_v48  ;;  %v1490_v41 = vsel %vm1479_vm1, %v13080_v55, 0  ;;  %v1460_v51 = vpop.f32.mrb[7].mxu1  ;;  %13119 = vmatprep.mubr.f32.mxu0 %v17209_v48  ;;  %v17239_v55 = vand.u32 4294901760, %v17212_v15 }
 0x12d   : > { %v19568_v49 = vand.u32 4294901760, %v17216_v8  ;;  %v17229_v54 = vand.u32 4294901760, %v1490_v41  ;;  %v1487_v63 = vsel %vm1479_vm1, %v1460_v51, 0  ;;  %13120 = vmatmul.mubr.f32.vlgmr.msra.gmra.mrb[4].mxu0 %v17206_v13  ;;  %v17249_v51 = vsub.f32 %v2848_v61, %v17218_v39 }
 0x12e   : > { %v1567_v47 = vand.u32 4294901760, %v17221_v12  ;;  %v17236_v24 = vand.u32 4294901760, %v1487_v63  ;;  %15024 = vmatpush3.bf16.msra.mxu0 %v15021_v26  ;;  %19678 = vst [vmem:[#allocation32_spill] sm:$0xff] %v17239_v55  ;;  %v2923_v5 = vsub.f32 %v17212_v15, %v17239_v55 }
 0x12f   : > { %v1578_v37 = vsub.f32 %v17216_v8, %v19568_v49  ;;  %v17245_v23 = vsub.f32 %v1490_v41, %v17229_v54  ;;  %15026 = vmatprep.subr.bf16.mxu0 %v17163_v52  ;;  %19679 = vst [vmem:[#allocation33_spill] sm:$0xff] %v17249_v51  ;;  %v17259_v49 = vand.u32 4294901760, %v17226_v4  ;;  %v17262_v41 = vsub.f32 %v2851_v38, %v17233_v53 }
 0x130   : > { %v17252_v21 = vsub.f32 %v1487_v63, %v17236_v24  ;;  %13122 = vmatprep.mubr.f32.mxu0 %v17236_v24  ;;  %v1568_v26 = vsub.f32 %v17221_v12, %v1567_v47  ;;  %v17274_v38 = vand.u32 4294901760, %v17249_v51 }
 0x131   : > { %v19573_v6 = vand.u32 4294901760, %v17245_v23  ;;  %13123 = vmatmul.mubr.f32.gmra.mrb[6].mxu0 %v17229_v54  ;;  %19680 = vst [vmem:[#allocation34_spill] sm:$0xff] %v17259_v49  ;;  %19681 = vst [vmem:[#allocation35_spill] sm:$0xff] %v17262_v41  ;;  %v1579_v3 = vand.u32 4294901760, %v1578_v37 }
 0x132   : > { %v1587_v61 = vand.u32 4294901760, %v17252_v21  ;;  %15028 = vmatpush3.bf16.msra.mxu0 %v17163_v52  ;;  %13141 = vmatprep.mubr.f32.mxu0 %v17221_v12  ;;  %v1569_v63 = vand.u32 4294901760, %v1568_v26  ;;  %19682 = vst [vmem:[#allocation36_spill] sm:$0xff] %v17274_v38  ;;  %v2933_v52 = vsub.f32 %v17226_v4, %v17259_v49  ;;  %v17280_v12 = vand.u32 4294901760, %v17262_v41 }
 0x133   : > { %15030 = vmatprep.subr.bf16.mxu0 %v17167_v56  ;;  %v1598_v62 = vsub.f32 %v17245_v23, %v19573_v6  ;;  %v17284_v26 = vand.u32 4294901760, %v2923_v5 }
 0x134   : > { %13097 = vmatprep.mubr.f32.mxu1 %v1569_v63  ;;  %v1588_v34 = vsub.f32 %v17252_v21, %v1587_v61  ;;  %19683 = vst [vmem:[#allocation37_spill] sm:$0xff] %v17280_v12  ;;  %v2943_v63 = vsub.f32 %v17249_v51, %v17274_v38 }
 0x135   : > { %13098 = vmatmul.mubr.f32.vlgmr.msra.gmra.mrb[8].mxu1 %v1579_v3  ;;  %19684 = vst [vmem:[#allocation38_spill] sm:$0xff] %v17284_v26  ;;  %v1599_v6 = vand.u32 4294901760, %v1598_v62  ;;  %v17290_v3 = vand.u32 4294901760, %v2933_v52  ;;  %v861_v52 = vld [vmem:[%s19545_s3 + $0x20] sm:$0xff] }
 0x136   : > { %15032 = vmatpush3.bf16.msra.mxu0 %v17167_v56  ;;  %v1589_v37 = vand.u32 4294901760, %v1588_v34  ;;  %15184 = vmatpush3.bf16.msra.mxu1 %v16988_v40  ;;  %v2953_v56 = vsub.f32 %v17262_v41, %v17280_v12  ;;  %v17297_v34 = vand.u32 4294901760, %v2943_v63 }
 0x137   : > { %15034 = vmatprep.subr.bf16.mxu0 %v17170_v57  ;;  %15186 = vmatprep.subr.bf16.mxu1 %v17033_v1  ;;  %19685 = vst [vmem:[#allocation39_spill] sm:$0xff] %v17290_v3 }
 0x138   : > { %13100 = vmatprep.mubr.f32.mxu1 %v1589_v37  ;;  %19686 = vst [vmem:[#allocation40_spill] sm:$0xff] %v17297_v34  ;;  %v17301_v62 = vand.u32 4294901760, %v2953_v56  ;;  %v2165_v37 = vsel %vm1479_vm1, %v17191_v36, 0 }
 0x139   : > { %13101 = vmatmul.mubr.f32.gmra.mrb[10].mxu1 %v1599_v6  ;;  %v19690_v6 = vand.u32 4294901760, %v17216_v8 }
 0x13a   : > { %15036 = vmatpush3.bf16.msra.mxu0 %v17170_v57  ;;  %13349 = vmatprep.mubr.f32.mxu1 %v17284_v26  ;;  %19687 = vst [vmem:[#allocation41_spill] sm:$0xff] %v17301_v62 }
 0x13b   : > { %15038 = vmatprep.subr.bf16.mxu0 %v17117_v16 }
 0x13d   : > { %13142 = vmatmul.mubr.f32.vlgmr.msra.gmra.mrb[4].mxu0 %v17216_v8  ;;  %13350 = vmatmul.mubr.f32.vlgmr.msra.gmra.mrb[12].mxu1 %v17290_v3 }
 0x13e   : > { %13144 = vmatprep.mubr.f32.mxu0 %v17252_v21  ;;  %15040 = vmatpush3.bf16.msra.mxu0 %v17117_v16  ;;  %v19688_v21 = vand.u32 4294901760, %v17119_v17  ;;  %v857_v17 = vld [vmem:[%s19545_s3] sm:$0xff] }
 0x13f   : > { %15042 = vmatprep.subr.bf16.mxu0 %v17151_v30  ;;  %13352 = vmatprep.mubr.f32.mxu1 %v17297_v34 }
 0x140   : > { %15188 = vmatpush3.bf16.msra.mxu1 %v17033_v1  ;;  %v19689_v1 = vand.u32 4294901760, %v17121_v25  ;;  %v858_v25 = vld [vmem:[%s19545_s3 + $0x8] sm:$0xff] }
 0x141   : > { %13145 = vmatmul.mubr.f32.gmra.mrb[6].mxu0 %v17245_v23  ;;  %13353 = vmatmul.mubr.f32.gmra.mrb[14].mxu1 %v17301_v62 }
 0x142   : > { %15044 = vmatpush3.bf16.msra.mxu0 %v17151_v30  ;;  %13163 = vmatprep.mubr.f32.mxu0 %v1567_v47  ;;  %v15053_v5 = vpack.c.bf16 %v19689_v1, %v19688_v21  ;;  %v2162_v47 = vsel %vm1479_vm1, %v17178_v33, 0  ;;  %v863_v33 = vld [vmem:[%s19545_s3 + $0x30] sm:$0xff]  ;;  %v864_v21 = vld [vmem:[%s19545_s3 + $0x38] sm:$0xff] }
 0x143   : > { %15046 = vmatprep.subr.bf16.mxu0 %v17157_v31  ;;  %13359 = vmatprep.mubr.f32.mxu1 %v17197_v42  ;;  %v17418_v36 = vand.u32 4294901760, %v2162_v47 }
 0x144   : > { %15190 = vmatprep.subr.bf16.mxu1 %v17035_v2 }
 0x145   : > { %13360 = vmatmul.mubr.f32.vlgmr.msra.gmra.mrb[12].mxu1 %v17203_v32 }
 0x146   : > { %15048 = vmatpush3.bf16.msra.mxu0 %v17157_v31  ;;  %13362 = vmatprep.mubr.f32.mxu1 %v17218_v39 }
 0x147   : > { %15050 = vmatprep.subr.bf16.mxu0 %v17161_v35  ;;  %15192 = vmatpush3.bf16.msra.mxu1 %v17035_v2  ;;  %v19691_v2 = vand.u32 4294901760, %v17245_v23  ;;  %v2159_v23 = vsel %vm1479_vm1, %v17183_v0, 0 }
 0x148   : > { %15194 = vmatprep.subr.bf16.mxu1 %v16988_v40 }
 0x149   : > { %13363 = vmatmul.mubr.f32.gmra.mrb[14].mxu1 %v17233_v53 }
 0x14a   : > { %15052 = vmatpush3.bf16.msra.mxu0 %v17161_v35  ;;  %13369 = vmatprep.mubr.f32.mxu1 %v17212_v15 }
 0x14b   : > { %15054 = vmatprep.subr.bf16.mxu0 %v15053_v5 }
 0x14d   : > { %13164 = vmatmul.mubr.f32.vlgmr.msra.gmra.mrb[4].mxu0 %v19690_v6  ;;  %13370 = vmatmul.mubr.f32.vlgmr.msra.gmra.mrb[12].mxu1 %v17226_v4 }
 0x14e   : > { %13166 = vmatprep.mubr.f32.mxu0 %v1587_v61  ;;  %15056 = vmatpush3.bf16.msra.mxu0 %v15053_v5 }
 0x14f   : > { %15058 = vmatprep.subr.bf16.mxu0 %v17172_v43  ;;  %13372 = vmatprep.mubr.f32.mxu1 %v17249_v51 }
 0x150   : > { %15196 = vmatpush3.bf16.msra.mxu1 %v16988_v40 }
 0x151   : > { %13167 = vmatmul.mubr.f32.gmra.mrb[6].mxu0 %v19691_v2  ;;  %13373 = vmatmul.mubr.f32.gmra.mrb[14].mxu1 %v17262_v41  ;;  %v2183_v2 = vand.u32 4294901760, %v861_v52 }
 0x152   : > { %15060 = vmatpush3.bf16.msra.mxu0 %v17172_v43  ;;  %13185 = vmatprep.mubr.f32.mxu0 %v17209_v48  ;;  %v859_v43 = vld [vmem:[%s19545_s3 + $0x10] sm:$0xff] }
 0x153   : > { %15062 = vmatprep.subr.bf16.mxu0 %v17174_v45  ;;  %13379 = vmatprep.mubr.f32.mxu1 %v17239_v55 }
 0x154   : > { %15198 = vmatprep.subr.bf16.mxu1 %v17063_v7 }
 0x155   : > { %13380 = vmatmul.mubr.f32.vlgmr.msra.gmra.mrb[12].mxu1 %v17259_v49 }
 0x156   : > { %15064 = vmatpush3.bf16.msra.mxu0 %v17174_v45  ;;  %13382 = vmatprep.mubr.f32.mxu1 %v17274_v38  ;;  %v860_v45 = vld [vmem:[%s19545_s3 + $0x18] sm:$0xff] }
 0x157   : > { %15066 = vmatprep.subr.bf16.mxu0 %v17176_v60  ;;  %15200 = vmatpush3.bf16.msra.mxu1 %v17063_v7  ;;  %v17359_v7 = vand.u32 4294901760, %v2159_v23  ;;  %v2180_v8 = vand.u32 4294901760, %v860_v45 }
 0x158   : > { %15202 = vmatprep.subr.bf16.mxu1 %v16988_v40 }
 0x159   : > { %13383 = vmatmul.mubr.f32.gmra.mrb[14].mxu1 %v17280_v12  ;;  %v17375_v57 = vsub.f32 %v2159_v23, %v17359_v7  ;;  %v17416_v5 = vsub.f32 %v860_v45, %v2180_v8  ;;  %v2168_v23 = vsel %vm1479_vm1, %v17189_v59, 0 }
 0x15a   : > { %15068 = vmatpush3.bf16.msra.mxu0 %v17176_v60  ;;  %13389 = vmatprep.mubr.f32.mxu1 %v17197_v42 }
 0x15b   : > { %15070 = vmatprep.subr.bf16.mxu0 %v17117_v16  ;;  %v19574_v61 = vand.u32 4294901760, %v17375_v57 }
 0x15d   : > { %13186 = vmatmul.mubr.f32.vlgmr.msra.gmra.mrb[4].mxu0 %v17206_v13  ;;  %13390 = vmatmul.mubr.f32.vlgmr.msra.gmra.mrb[12].mxu1 %v17203_v32 }
 0x15e   : > { %13188 = vmatprep.mubr.f32.mxu0 %v17236_v24  ;;  %15072 = vmatpush3.bf16.msra.mxu0 %v17117_v16  ;;  %v2174_v16 = vand.u32 4294901760, %v858_v25 }
 0x15f   : > { %15074 = vmatprep.subr.bf16.mxu0 %v17151_v30  ;;  %13392 = vmatprep.mubr.f32.mxu1 %v17218_v39 }
 0x160   : > { %15204 = vmatpush3.bf16.msra.mxu1 %v16988_v40  ;;  %v2171_v40 = vand.u32 4294901760, %v857_v17  ;;  %v17386_v60 = vsub.f32 %v858_v25, %v2174_v16  ;;  %v2246_v25 = vsub.f32 %v17375_v57, %v19574_v61  ;;  %v17446_v61 = vsub.f32 %v2162_v47, %v17418_v36 }
 0x161   : > { %13189 = vmatmul.mubr.f32.gmra.mrb[6].mxu0 %v17229_v54  ;;  %13393 = vmatmul.mubr.f32.gmra.mrb[14].mxu1 %v17233_v53 }
 0x162   : > { %15076 = vmatpush3.bf16.msra.mxu0 %v17151_v30  ;;  %13207 = vmatprep.mubr.f32.mxu0 %v17209_v48  ;;  %v17384_v30 = vsub.f32 %v857_v17, %v2171_v40  ;;  %v17391_v0 = vpack.c.bf16 %v2174_v16, %v2171_v40  ;;  %v2177_v48 = vand.u32 4294901760, %v859_v43  ;;  %v19576_v56 = vand.u32 4294901760, %v17386_v60 }
 0x163   : > { %15078 = vmatprep.subr.bf16.mxu0 %v17157_v31  ;;  %13399 = vmatprep.mubr.f32.mxu1 %v17197_v42  ;;  %v17425_v17 = vand.u32 4294901760, %v2165_v37  ;;  %v2189_v40 = vand.u32 4294901760, %v863_v33  ;;  %v2192_v16 = vand.u32 4294901760, %v864_v21  ;;  %v2247_v12 = vand.u32 4294901760, %v2246_v25 }
 0x164   : > { %v19575_v63 = vand.u32 4294901760, %v17384_v30  ;;  %v17414_v1 = vsub.f32 %v859_v43, %v2177_v48  ;;  %v17421_v6 = vpack.c.bf16 %v2180_v8, %v2177_v48  ;;  %v2294_v45 = vsub.f32 %v17386_v60, %v19576_v56 }
 0x165   : > { %13400 = vmatmul.mubr.f32.vlgmr.msra.gmra.mrb[12].mxu1 %v17203_v32  ;;  %v17441_v8 = vsub.f32 %v861_v52, %v2183_v2  ;;  %v17457_v48 = vpack.c.bf16 %v2192_v16, %v2189_v40 }
 0x166   : > { %15080 = vmatpush3.bf16.msra.mxu0 %v17157_v31  ;;  %13402 = vmatprep.mubr.f32.mxu1 %v17218_v39  ;;  %v862_v31 = vld [vmem:[%s19545_s3 + $0x28] sm:$0xff]  ;;  %v2287_v43 = vsub.f32 %v17384_v30, %v19575_v63  ;;  %v19578_v59 = vand.u32 4294901760, %v17414_v1  ;;  %v17448_v63 = vand.u32 4294901760, %v2168_v23 }
 0x167   : > { %15082 = vmatprep.subr.bf16.mxu0 %v17161_v35  ;;  %v19693_v25 = vand.u32 4294901760, %v17441_v8 }
 0x168   : > { %v2288_v52 = vand.u32 4294901760, %v2287_v43  ;;  %v2301_v47 = vsub.f32 %v17414_v1, %v19578_v59  ;;  %v17470_v43 = vsub.f32 %v2168_v23, %v17448_v63 }
 0x169   : > { %13403 = vmatmul.mubr.f32.gmra.mrb[14].mxu1 %v17233_v53 }
 0x16a   : > { %15084 = vmatpush3.bf16.msra.mxu0 %v17161_v35  ;;  %v2186_v35 = vand.u32 4294901760, %v862_v31 }
 0x16b   : > { %15086 = vmatprep.subr.bf16.mxu0 %v17391_v0 }
 0x16c   : > { %v17451_v56 = vpack.c.bf16 %v2186_v35, %v2183_v2  ;;  %v19692_v2 = vand.u32 4294901760, %v17416_v5 }
 0x16d   : > { %13208 = vmatmul.mubr.f32.vlgmr.msra.gmra.mrb[4].mxu0 %v17206_v13  ;;  %v17443_v13 = vsub.f32 %v862_v31, %v2186_v35  ;;  %v2295_v31 = vand.u32 4294901760, %v2294_v45  ;;  %v17475_v45 = vsub.f32 %v864_v21, %v2192_v16 }
 0x16e   : > { %13210 = vmatprep.mubr.f32.mxu0 %v17236_v24  ;;  %15088 = vmatpush3.bf16.msra.mxu0 %v17391_v0  ;;  %v17454_v24 = vsub.f32 %v2165_v37, %v17425_v17  ;;  %v2308_v35 = vsub.f32 %v17416_v5, %v19692_v2  ;;  %v2302_v2 = vand.u32 4294901760, %v2301_v47 }
 0x16f   : > { %15090 = vmatprep.subr.bf16.mxu0 %v17421_v6  ;;  %v15101_v38 = vpack.c.bf16 %v2295_v31, %v2288_v52  ;;  %v19694_v23 = vand.u32 4294901760, %v17443_v13  ;;  %v19584_v52 = vand.u32 4294901760, %v17475_v45 }
 0x170   : > { %v19583_v59 = vand.u32 4294901760, %v17454_v24  ;;  %v2309_v37 = vand.u32 4294901760, %v2308_v35 }
 0x171   : > { %13211 = vmatmul.mubr.f32.gmra.mrb[6].mxu0 %v17229_v54  ;;  %v2315_v54 = vsub.f32 %v17441_v8, %v19693_v25  ;;  %v2322_v49 = vsub.f32 %v17443_v13, %v19694_v23  ;;  %v2336_v41 = vsub.f32 %v17475_v45, %v19584_v52  ;;  %v15117_v52 = vpack.c.bf16 %v17386_v60, %v17384_v30 }
 0x172   : > { %15092 = vmatpush3.bf16.msra.mxu0 %v17421_v6  ;;  %13229 = vmatprep.mubr.f32.mxu0 %v2247_v12  ;;  %v17473_v12 = vsub.f32 %v863_v33, %v2189_v40  ;;  %v19695_v33 = vand.u32 4294901760, %v17446_v61  ;;  %v2275_v40 = vand.u32 4294901760, %v17470_v43  ;;  %v2266_v31 = vsub.f32 %v17454_v24, %v19583_v59 }
 0x173   : > { %15094 = vmatprep.subr.bf16.mxu0 %v17451_v56  ;;  %v15105_v47 = vpack.c.bf16 %v2309_v37, %v2302_v2  ;;  %v2316_v35 = vand.u32 4294901760, %v2315_v54  ;;  %v2323_v25 = vand.u32 4294901760, %v2322_v49  ;;  %v2337_v2 = vand.u32 4294901760, %v2336_v41 }
 0x174   : > { %v2256_v21 = vsub.f32 %v17446_v61, %v19695_v33  ;;  %v2328_v16 = vand.u32 4294901760, %v17473_v12  ;;  %v2276_v33 = vsub.f32 %v17470_v43, %v2275_v40  ;;  %v2267_v59 = vand.u32 4294901760, %v2266_v31 }
 0x175   : > { %v15109_v49 = vpack.c.bf16 %v2323_v25, %v2316_v35  ;;  %v15129_v41 = vpack.c.bf16 %v17475_v45, %v17473_v12  ;;  %v19698_v31 = vand.u32 4294901760, %v17386_v60  ;;  %v19699_v35 = vand.u32 4294901760, %v17414_v1 }
 0x176   : > { %15096 = vmatpush3.bf16.msra.mxu0 %v17451_v56  ;;  %v2257_v23 = vand.u32 4294901760, %v2256_v21  ;;  %v2329_v55 = vsub.f32 %v17473_v12, %v2328_v16  ;;  %v2277_v37 = vand.u32 4294901760, %v2276_v33  ;;  %v19700_v25 = vand.u32 4294901760, %v17416_v5  ;;  %v11819_v12 = vld [vmem:[%s19545_s3 + $0xa8] sm:$0xff] }
 0x177   : > { %15098 = vmatprep.subr.bf16.mxu0 %v17457_v48  ;;  %v19702_v33 = vand.u32 4294901760, %v17454_v24  ;;  %v19704_v60 = vand.u32 4294901760, %v17443_v13 }
 0x178   : > { %v2330_v54 = vand.u32 4294901760, %v2329_v55  ;;  %v15125_v55 = vpack.c.bf16 %v17443_v13, %v17441_v8 }
 0x17a   : > { %15100 = vmatpush3.bf16.msra.mxu0 %v17457_v48  ;;  %v15113_v21 = vpack.c.bf16 %v2337_v2, %v2330_v54  ;;  %v3478_v54 = vand.u32 4294901760, %v11819_v12  ;;  %v11820_v2 = vld [vmem:[%s19545_s3 + $0xb0] sm:$0xff] }
 0x17b   : > { %15102 = vmatprep.subr.bf16.mxu0 %v15101_v38 }
 0x17d   : > { %13230 = vmatmul.mubr.f32.vlgmr.msra.gmra.mrb[4].mxu0 %v2257_v23  ;;  %v19701_v23 = vand.u32 4294901760, %v17446_v61 }
 0x17e   : > { %13232 = vmatprep.mubr.f32.mxu0 %v2267_v59  ;;  %15104 = vmatpush3.bf16.msra.mxu0 %v15101_v38  ;;  %v15121_v38 = vpack.c.bf16 %v17416_v5, %v17414_v1  ;;  %v19696_v59 = vand.u32 4294901760, %v17375_v57  ;;  %v11816_v5 = vld [vmem:[%s19545_s3 + $0x90] sm:$0xff] }
 0x17f   : > { %15106 = vmatprep.subr.bf16.mxu0 %v15105_v47  ;;  %v3469_v13 = vand.u32 4294901760, %v11816_v5 }
 0x181   : > { %13233 = vmatmul.mubr.f32.gmra.mrb[6].mxu0 %v2277_v37 }
 0x182   : > { %15108 = vmatpush3.bf16.msra.mxu0 %v15105_v47  ;;  %13251 = vmatprep.mubr.f32.mxu0 %v17359_v7 }
 0x183   : > { %15110 = vmatprep.subr.bf16.mxu0 %v15109_v49 }
 0x186   : > { %15112 = vmatpush3.bf16.msra.mxu0 %v15109_v49 }
 0x187   : > { %15114 = vmatprep.subr.bf16.mxu0 %v15113_v21 }
 0x18a   : > { %15116 = vmatpush3.bf16.msra.mxu0 %v15113_v21 }
 0x18b   : > { %15118 = vmatprep.subr.bf16.mxu0 %v15117_v52 }
 0x18d   : > { %13252 = vmatmul.mubr.f32.vlgmr.msra.gmra.mrb[4].mxu0 %v17418_v36 }
 0x18e   : > { %13254 = vmatprep.mubr.f32.mxu0 %v17425_v17  ;;  %15120 = vmatpush3.bf16.msra.mxu0 %v15117_v52  ;;  %v19697_v52 = vand.u32 4294901760, %v17384_v30  ;;  %v19703_v30 = vand.u32 4294901760, %v17441_v8  ;;  %v11817_v8 = vld [vmem:[%s19545_s3 + $0x98] sm:$0xff] }
 0x18f   : > { %15122 = vmatprep.subr.bf16.mxu0 %v15121_v38 }
 0x190   : > { %v15149_v47 = vpack.c.bf16 %v19698_v31, %v19697_v52  ;;  %v15157_v37 = vpack.c.bf16 %v19704_v60, %v19703_v30  ;;  %v3612_v52 = vsub.f32 %v11819_v12, %v3478_v54  ;;  %v3481_v31 = vand.u32 4294901760, %v11820_v2 }
 0x191   : > { %13255 = vmatmul.mubr.f32.gmra.mrb[6].mxu0 %v17448_v63 }
 0x192   : > { %15124 = vmatpush3.bf16.msra.mxu0 %v15121_v38  ;;  %13273 = vmatprep.mubr.f32.mxu0 %v17375_v57  ;;  %v15153_v57 = vpack.c.bf16 %v19700_v25, %v19699_v35 }
 0x193   : > { %15126 = vmatprep.subr.bf16.mxu0 %v15125_v55 }
 0x196   : > { %15128 = vmatpush3.bf16.msra.mxu0 %v15125_v55 }
 0x197   : > { %15130 = vmatprep.subr.bf16.mxu0 %v15129_v41 }
 0x19a   : > { %15132 = vmatpush3.bf16.msra.mxu0 %v15129_v41  ;;  %v11821_v41 = vld [vmem:[%s19545_s3 + $0xb8] sm:$0xff] }
 0x19b   : > { %15134 = vmatprep.subr.bf16.mxu0 %v17391_v0  ;;  %v3484_v35 = vand.u32 4294901760, %v11821_v41 }
 0x19d   : > { %13274 = vmatmul.mubr.f32.vlgmr.msra.gmra.mrb[4].mxu0 %v17446_v61  ;;  %v19705_v61 = vand.u32 4294901760, %v17475_v45  ;;  %v11814_v45 = vld [vmem:[%s19545_s3 + $0x80] sm:$0xff] }
 0x19e   : > { %13276 = vmatprep.mubr.f32.mxu0 %v17454_v24  ;;  %15136 = vmatpush3.bf16.msra.mxu0 %v17391_v0  ;;  %v3472_v24 = vand.u32 4294901760, %v11817_v8  ;;  %v3463_v38 = vand.u32 4294901760, %v11814_v45 }
 0x19f   : > { %15138 = vmatprep.subr.bf16.mxu0 %v17421_v6  ;;  %v15161_v1 = vpack.c.bf16 %v19705_v61, %v2328_v16 }
 0x1a0   : > { %v17580_v16 = vsub.f32 %v11817_v8, %v3472_v24  ;;  %v3577_v30 = vsub.f32 %v11814_v45, %v3463_v38  ;;  %v3626_v8 = vsub.f32 %v11821_v41, %v3484_v35  ;;  %v17605_v51 = vpack.c.bf16 %v3472_v24, %v3469_v13 }
 0x1a1   : > { %13277 = vmatmul.mubr.f32.gmra.mrb[6].mxu0 %v17470_v43  ;;  %v11818_v43 = vld [vmem:[%s19545_s3 + $0xa0] sm:$0xff] }
 0x1a2   : > { %15140 = vmatpush3.bf16.msra.mxu0 %v17421_v6  ;;  %13295 = vmatprep.mubr.f32.mxu0 %v19696_v59  ;;  %v3475_v49 = vand.u32 4294901760, %v11818_v43  ;;  %v3578_v4 = vand.u32 4294901760, %v3577_v30 }
 0x1a3   : > { %15142 = vmatprep.subr.bf16.mxu0 %v17451_v56 }
 0x1a4   : > { %v3605_v59 = vsub.f32 %v11818_v43, %v3475_v49  ;;  %v17613_v41 = vpack.c.bf16 %v3478_v54, %v3475_v49 }
 0x1a6   : > { %15144 = vmatpush3.bf16.msra.mxu0 %v17451_v56 }
 0x1a7   : > { %15146 = vmatprep.subr.bf16.mxu0 %v17457_v48 }
 0x1aa   : > { %15148 = vmatpush3.bf16.msra.mxu0 %v17457_v48 }
 0x1ab   : > { %15150 = vmatprep.subr.bf16.mxu0 %v15149_v47 }
 0x1ad   : > { %13296 = vmatmul.mubr.f32.vlgmr.msra.gmra.mrb[4].mxu0 %v19701_v23  ;;  %v3613_v23 = vand.u32 4294901760, %v3612_v52 }
 0x1ae   : > { %13298 = vmatprep.mubr.f32.mxu0 %v19702_v33  ;;  %15152 = vmatpush3.bf16.msra.mxu0 %v15149_v47 }
 0x1af   : > { %15154 = vmatprep.subr.bf16.mxu0 %v15153_v57 }
 0x1b1   : > { %13299 = vmatmul.mubr.f32.gmra.mrb[6].mxu0 %v2275_v40  ;;  %v17577_v40 = vsub.f32 %v11816_v5, %v3469_v13  ;;  %v3619_v5 = vsub.f32 %v11820_v2, %v3481_v31  ;;  %v3579_v13 = vsub.f32 %v3577_v30, %v3578_v4 }
 0x1b2   : > { %15156 = vmatpush3.bf16.msra.mxu0 %v15153_v57  ;;  %13317 = vmatprep.mubr.f32.mxu0 %v17359_v7  ;;  %v3606_v57 = vand.u32 4294901760, %v3605_v59 }
 0x1b3   : > { %15158 = vmatprep.subr.bf16.mxu0 %v15157_v37  ;;  %v19585_v21 = vand.u32 4294901760, %v17577_v40  ;;  %v15241_v54 = vpack.c.bf16 %v17580_v16, %v17577_v40 }
 0x1b4   : > { %v3607_v61 = vsub.f32 %v3605_v59, %v3606_v57 }
 0x1b6   : > { %15160 = vmatpush3.bf16.msra.mxu0 %v15157_v37 }
 0x1b7   : > { %15162 = vmatprep.subr.bf16.mxu0 %v15161_v1 }
 0x1ba   : > { %15164 = vmatpush3.bf16.msra.mxu0 %v15161_v1  ;;  %v3614_v1 = vsub.f32 %v3612_v52, %v3613_v23 }
 0x1bb   : > { %15166 = vmatprep.subr.bf16.mxu0 %v17391_v0 }
 0x1bc   : > { %v3615_v12 = vand.u32 4294901760, %v3614_v1 }
 0x1bd   : > { %13318 = vmatmul.mubr.f32.vlgmr.msra.gmra.mrb[4].mxu0 %v17418_v36 }
 0x1be   : > { %13320 = vmatprep.mubr.f32.mxu0 %v17425_v17  ;;  %15168 = vmatpush3.bf16.msra.mxu0 %v17391_v0  ;;  %v11815_v0 = vld [vmem:[%s19545_s3 + $0x88] sm:$0xff] }
 0x1bf   : > { %15170 = vmatprep.subr.bf16.mxu0 %v17421_v6  ;;  %v3466_v55 = vand.u32 4294901760, %v11815_v0 }
 0x1c1   : > { %13321 = vmatmul.mubr.f32.gmra.mrb[6].mxu0 %v17448_v63  ;;  %v17599_v33 = vpack.c.bf16 %v3466_v55, %v3463_v38  ;;  %v3584_v60 = vsub.f32 %v11815_v0, %v3466_v55 }
 0x1c2   : > { %15172 = vmatpush3.bf16.msra.mxu0 %v17421_v6  ;;  %13339 = vmatprep.mubr.f32.mxu0 %v17359_v7  ;;  %v3599_v6 = vand.u32 4294901760, %v17580_v16  ;;  %v3593_v7 = vsub.f32 %v17577_v40, %v19585_v21  ;;  %v3627_v21 = vand.u32 4294901760, %v3626_v8 }
 0x1c3   : > { %15174 = vmatprep.subr.bf16.mxu0 %v17451_v56  ;;  %v3585_v45 = vand.u32 4294901760, %v3584_v60 }
 0x1c4   : > { %v3600_v47 = vsub.f32 %v17580_v16, %v3599_v6  ;;  %v3594_v25 = vand.u32 4294901760, %v3593_v7  ;;  %v3620_v7 = vand.u32 4294901760, %v3619_v5  ;;  %v3628_v55 = vsub.f32 %v3626_v8, %v3627_v21 }
 0x1c5   : > { %v3586_v24 = vsub.f32 %v3584_v60, %v3585_v45  ;;  %v17625_v1 = vpack.c.bf16 %v3585_v45, %v3578_v4 }
 0x1c6   : > { %15176 = vmatpush3.bf16.msra.mxu0 %v17451_v56  ;;  %v3601_v37 = vand.u32 4294901760, %v3600_v47  ;;  %v3608_v56 = vand.u32 4294901760, %v3607_v61  ;;  %v3621_v38 = vsub.f32 %v3619_v5, %v3620_v7  ;;  %v3629_v2 = vand.u32 4294901760, %v3628_v55 }
 0x1c7   : > { %15178 = vmatprep.subr.bf16.mxu0 %v17457_v48  ;;  %v15249_v61 = vpack.c.bf16 %v3626_v8, %v3619_v5 }
 0x1c8   : > { %v17601_v43 = vpack.c.bf16 %v3601_v37, %v3594_v25  ;;  %v17607_v0 = vpack.c.bf16 %v3615_v12, %v3608_v56  ;;  %v3587_v25 = vand.u32 4294901760, %v3586_v24  ;;  %v15237_v37 = vpack.c.bf16 %v3584_v60, %v3577_v30 }
 0x1c9   : > { %v17631_v30 = vpack.c.bf16 %v3613_v23, %v3606_v57  ;;  %v17633_v60 = vpack.c.bf16 %v3627_v21, %v3620_v7 }
 0x1ca   : > { %15180 = vmatpush3.bf16.msra.mxu0 %v17457_v48  ;;  %v3622_v48 = vand.u32 4294901760, %v3621_v38 }
 0x1cb   : > { %15206 = vmatprep.subr.bf16.mxu0 %v17599_v33 }
 0x1cc   : > { %v15233_v47 = vpack.c.bf16 %v3629_v2, %v3622_v48 }
 0x1cd   : > { %13340 = vmatmul.mubr.f32.vlgmr.msra.gmra.mrb[4].mxu0 %v17418_v36  ;;  %v17618_v36 = vpack.c.bf16 %v3484_v35, %v3481_v31  ;;  %v19706_v31 = vand.u32 4294901760, %v17577_v40 }
 0x1ce   : > { %13342 = vmatprep.mubr.f32.mxu0 %v17425_v17  ;;  %15208 = vmatpush3.bf16.msra.mxu0 %v17599_v33  ;;  %v3580_v17 = vand.u32 4294901760, %v3579_v13 }
 0x1cf   : > { %15210 = vmatprep.subr.bf16.mxu0 %v17605_v51  ;;  %v17629_v35 = vpack.c.bf16 %v3599_v6, %v19706_v31 }
 0x1d0   : > { %v15221_v49 = vpack.c.bf16 %v3587_v25, %v3580_v17 }
 0x1d1   : > { %13343 = vmatmul.mubr.f32.gmra.mrb[6].mxu0 %v17448_v63  ;;  %v15245_v63 = vpack.c.bf16 %v3612_v52, %v3605_v59 }
 0x1d2   : > { %15212 = vmatpush3.bf16.msra.mxu0 %v17605_v51 }
 0x1d3   : > { %15214 = vmatprep.subr.bf16.mxu0 %v17613_v41 }
 0x1d6   : > { %15216 = vmatpush3.bf16.msra.mxu0 %v17613_v41 }
 0x1d7   : > { %15218 = vmatprep.subr.bf16.mxu0 %v17618_v36 }
 0x1da   : > { %15220 = vmatpush3.bf16.msra.mxu0 %v17618_v36 }
 0x1db   : > { %15222 = vmatprep.subr.bf16.mxu0 %v15221_v49 }
 0x208   : > { %v17635_v56 = vpop.f32.mrb[8].mxu1 }
 0x209   : > { %v17637_v12 = vpop.f32.mrb[9].mxu1 }
 0x20c   : > { %v17639_v16 = vpop.f32.mrb[10].mxu1 }
 0x20d   : > { %v17641_v38 = vpop.f32.mrb[11].mxu1 }
 0x238   : > { %v13401_v59 = vpop.f32.mrb[12].mxu1 }
 0x239   : > { %v3454_v4 = vsel %vm1479_vm1, %v13401_v59, 0  ;;  %v3419_v52 = vpop.f32.mrb[13].mxu1 }
 0x23a   : > { %v17644_v5 = vand.u32 4294901760, %v3454_v4  ;;  %v3451_v40 = vsel %vm1479_vm1, %v3419_v52, 0 }
 0x23b   : > { %v17647_v6 = vand.u32 4294901760, %v3451_v40 }
 0x23c   : > { %v3546_v21 = vsub.f32 %v3454_v4, %v17644_v5  ;;  %v13404_v57 = vpop.f32.mrb[14].mxu1 }
 0x23d   : > { %v3536_v23 = vsub.f32 %v3451_v40, %v17647_v6  ;;  %v3460_v8 = vsel %vm1479_vm1, %v13404_v57, 0  ;;  %v3431_v7 = vpop.f32.mrb[15].mxu1 }
 0x23e   : > { %v3547_v45 = vand.u32 4294901760, %v3546_v21  ;;  %v17652_v55 = vand.u32 4294901760, %v3460_v8  ;;  %v3457_v48 = vsel %vm1479_vm1, %v3431_v7, 0 }
 0x23f   : > { %v3537_v2 = vand.u32 4294901760, %v3536_v23  ;;  %v17655_v13 = vand.u32 4294901760, %v3457_v48 }
 0x240   : > { %v3548_v24 = vsub.f32 %v3546_v21, %v3547_v45  ;;  %v3566_v17 = vsub.f32 %v3460_v8, %v17652_v55 }
 0x241   : > { %v3556_v25 = vsub.f32 %v3457_v48, %v17655_v13  ;;  %v3538_v31 = vsub.f32 %v3536_v23, %v3537_v2 }
 0x242   : > { %v3567_v59 = vand.u32 4294901760, %v3566_v17  ;;  %v3549_v40 = vand.u32 4294901760, %v3548_v24 }
 0x243   : > { %v3557_v4 = vand.u32 4294901760, %v3556_v25  ;;  %v3539_v52 = vand.u32 4294901760, %v3538_v31 }
 0x244   : > { %v3568_v57 = vsub.f32 %v3566_v17, %v3567_v59 }
 0x245   : > { %13421 = vmatprep.mubr.f32.mxu0 %v3539_v52  ;;  %v3558_v15 = vsub.f32 %v3556_v25, %v3557_v4 }
 0x246   : > { %13422 = vmatmul.mubr.f32.vlgmr.msra.gmra.mrb[4].mxu0 %v3549_v40  ;;  %v3569_v7 = vand.u32 4294901760, %v3568_v57 }
 0x247   : > { %15224 = vmatpush3.bf16.msra.mxu0 %v15221_v49  ;;  %v3559_v53 = vand.u32 4294901760, %v3558_v15 }
 0x248   : > { %15226 = vmatprep.subr.bf16.mxu0 %v17601_v43 }
 0x249   : > { %13424 = vmatprep.mubr.f32.mxu0 %v3559_v53  ;;  %v4144_v53 = vld [vmem:[%s19544_s2] sm:$0xff] }
 0x24a   : > { %13425 = vmatmul.mubr.f32.gmra.mrb[6].mxu0 %v3569_v7  ;;  %v4148_v15 = vsel %vm4146_vm2, %v4144_v53, 0 }
 0x24b   : > { %15228 = vmatpush3.bf16.msra.mxu0 %v17601_v43  ;;  %13443 = vmatprep.mubr.f32.mxu0 %v17647_v6 }
 0x24c   : > { %15230 = vmatprep.subr.bf16.mxu0 %v17607_v0 }
 0x24f   : > { %15232 = vmatpush3.bf16.msra.mxu0 %v17607_v0 }
 0x250   : > { %15234 = vmatprep.subr.bf16.mxu0 %v15233_v47 }
 0x253   : > { %15236 = vmatpush3.bf16.msra.mxu0 %v15233_v47 }
 0x254   : > { %15238 = vmatprep.subr.bf16.mxu0 %v15237_v37 }
 0x256   : > { %13444 = vmatmul.mubr.f32.vlgmr.msra.gmra.mrb[4].mxu0 %v17644_v5 }
 0x257   : > { %13446 = vmatprep.mubr.f32.mxu0 %v17655_v13  ;;  %15240 = vmatpush3.bf16.msra.mxu0 %v15237_v37 }
 0x258   : > { %15242 = vmatprep.subr.bf16.mxu0 %v15241_v54 }
 0x25a   : > { %13447 = vmatmul.mubr.f32.gmra.mrb[6].mxu0 %v17652_v55 }
 0x25b   : > { %15244 = vmatpush3.bf16.msra.mxu0 %v15241_v54  ;;  %13465 = vmatprep.mubr.f32.mxu0 %v3536_v23 }
 0x25c   : > { %15246 = vmatprep.subr.bf16.mxu0 %v15245_v63 }
 0x25f   : > { %15248 = vmatpush3.bf16.msra.mxu0 %v15245_v63 }
 0x260   : > { %15250 = vmatprep.subr.bf16.mxu0 %v15249_v61 }
 0x263   : > { %15252 = vmatpush3.bf16.msra.mxu0 %v15249_v61 }
 0x264   : > { %15254 = vmatprep.subr.bf16.mxu0 %v17599_v33 }
 0x266   : > { %13466 = vmatmul.mubr.f32.vlgmr.msra.gmra.mrb[4].mxu0 %v3546_v21 }
 0x267   : > { %13468 = vmatprep.mubr.f32.mxu0 %v3556_v25  ;;  %15256 = vmatpush3.bf16.msra.mxu0 %v17599_v33 }
 0x268   : > { %15258 = vmatprep.subr.bf16.mxu0 %v17605_v51 }
 0x26a   : > { %13469 = vmatmul.mubr.f32.gmra.mrb[6].mxu0 %v3566_v17 }
 0x26b   : > { %15260 = vmatpush3.bf16.msra.mxu0 %v17605_v51  ;;  %13487 = vmatprep.mubr.f32.mxu0 %v3537_v2 }
 0x26c   : > { %15262 = vmatprep.subr.bf16.mxu0 %v17613_v41 }
 0x26f   : > { %15264 = vmatpush3.bf16.msra.mxu0 %v17613_v41 }
 0x270   : > { %15266 = vmatprep.subr.bf16.mxu0 %v17618_v36 }
 0x273   : > { %15268 = vmatpush3.bf16.msra.mxu0 %v17618_v36 }
 0x274   : > { %15270 = vmatprep.subr.bf16.mxu0 %v17625_v1 }
 0x276   : > { %13488 = vmatmul.mubr.f32.vlgmr.msra.gmra.mrb[4].mxu0 %v3547_v45 }
 0x277   : > { %13490 = vmatprep.mubr.f32.mxu0 %v3557_v4  ;;  %15272 = vmatpush3.bf16.msra.mxu0 %v17625_v1  ;;  %v4145_v1 = vld [vmem:[%s19544_s2 + $0x8] sm:$0xff] }
 0x278   : > { %15274 = vmatprep.subr.bf16.mxu0 %v17629_v35 }
 0x27a   : > { %13491 = vmatmul.mubr.f32.gmra.mrb[6].mxu0 %v3567_v59 }
 0x27b   : > { %15276 = vmatpush3.bf16.msra.mxu0 %v17629_v35  ;;  %13509 = vmatprep.mubr.f32.mxu0 %v17647_v6  ;;  %v11841_v35 = vld [vmem:[%s19544_s2 + $0x28] sm:$0xff] }
 0x27c   : > { %15278 = vmatprep.subr.bf16.mxu0 %v17631_v30 }
 0x27f   : > { %15280 = vmatpush3.bf16.msra.mxu0 %v17631_v30  ;;  %v4151_v30 = vsel %vm4146_vm2, %v4145_v1, 0 }
 0x280   : > { %15282 = vmatprep.subr.bf16.mxu0 %v17633_v60 }
 0x283   : > { %15284 = vmatpush3.bf16.msra.mxu0 %v17633_v60  ;;  %v6626_v60 = vsel %vm4146_vm2, %v11841_v35, 0 }
 0x284   : > { %15286 = vmatprep.subr.bf16.mxu0 %v17599_v33  ;;  %v17736_v8 = vand.u32 4294901760, %v6626_v60 }
 0x286   : > { %13510 = vmatmul.mubr.f32.vlgmr.msra.gmra.mrb[4].mxu0 %v17644_v5 }
 0x287   : > { %13512 = vmatprep.mubr.f32.mxu0 %v17655_v13  ;;  %15288 = vmatpush3.bf16.msra.mxu0 %v17599_v33  ;;  %v17706_v33 = vand.u32 4294901760, %v4148_v15 }
 0x288   : > { %15290 = vmatprep.subr.bf16.mxu0 %v17605_v51 }
 0x28a   : > { %13513 = vmatmul.mubr.f32.gmra.mrb[6].mxu0 %v17652_v55 }
 0x28b   : > { %15292 = vmatpush3.bf16.msra.mxu0 %v17605_v51  ;;  %13531 = vmatprep.mubr.f32.mxu0 %v17647_v6  ;;  %v11840_v51 = vld [vmem:[%s19544_s2 + $0x20] sm:$0xff] }
 0x28c   : > { %15294 = vmatprep.subr.bf16.mxu0 %v17613_v41  ;;  %v6623_v43 = vsel %vm4146_vm2, %v11840_v51, 0 }
 0x28d   : > { %v17709_v0 = vand.u32 4294901760, %v6623_v43 }
 0x28f   : > { %15296 = vmatpush3.bf16.msra.mxu0 %v17613_v41  ;;  %v17712_v41 = vsub.f32 %v4148_v15, %v17706_v33  ;;  %v17715_v47 = vsub.f32 %v6623_v43, %v17709_v0 }
 0x290   : > { %15298 = vmatprep.subr.bf16.mxu0 %v17618_v36 }
 0x291   : > { %v6699_v37 = vand.u32 4294901760, %v17715_v47 }
 0x293   : > { %15300 = vmatpush3.bf16.msra.mxu0 %v17618_v36  ;;  %v4224_v36 = vand.u32 4294901760, %v17712_v41  ;;  %v6700_v54 = vsub.f32 %v17715_v47, %v6699_v37 }
 0x295   : > { %v4225_v49 = vsub.f32 %v17712_v41, %v4224_v36  ;;  %v6701_v61 = vand.u32 4294901760, %v6700_v54 }
 0x296   : > { %13532 = vmatmul.mubr.f32.vlgmr.msra.gmra.mrb[4].mxu0 %v17644_v5  ;;  %v17733_v5 = vand.u32 4294901760, %v4151_v30 }
 0x297   : > { %13534 = vmatprep.mubr.f32.mxu0 %v17655_v13  ;;  %v4226_v63 = vand.u32 4294901760, %v4225_v49 }
 0x298   : > { %v17740_v48 = vsub.f32 %v4151_v30, %v17733_v5 }
 0x299   : > { %13545 = vmatprep.mubr.f32.mxu1 %v4226_v63 }
 0x29a   : > { %13535 = vmatmul.mubr.f32.gmra.mrb[6].mxu0 %v17652_v55  ;;  %v4234_v40 = vand.u32 4294901760, %v17740_v48 }
 0x29b   : > { %14097 = vmatprep.mubr.f32.mxu0 %v6701_v61 }
 0x29c   : > { %v4235_v61 = vsub.f32 %v17740_v48, %v4234_v40 }
 0x369   : > { %v13533_v6 = vpop.f32.mrb[4].mxu0 }
 0x36a   : > { %v16385_v21 = vadd.f32 %v13533_v6, %v17635_v56  ;;  %v4106_v23 = vpop.f32.mrb[5].mxu0  ;;  %v17746_v56 = vsub.f32 %v6626_v60, %v17736_v8 }
 0x36b   : > { %v16386_v45 = vadd.f32 %v4106_v23, %v17637_v12 }
 0x36c   : > { %vm4133_vm3 = vcmp.ge.f32.partialorder %v16385_v21, 0.0  ;;  %v4137_v55 = vmul.f32 0.1, %v16385_v21 }
 0x36d   : > { %vm4132_vm4 = vcmp.ge.f32.partialorder %v16386_v45, 0.0  ;;  %v4136_v2 = vmul.f32 0.1, %v16386_v45  ;;  %v13536_v13 = vpop.f32.mrb[6].mxu0 }
 0x36e   : > { %v17742_v24 = vsel %vm4133_vm3, %v16385_v21, %v4137_v55  ;;  %v16387_v17 = vadd.f32 %v13536_v13, %v17639_v16  ;;  %v4118_v25 = vpop.f32.mrb[7].mxu0  ;;  %v4236_v13 = vand.u32 4294901760, %v4235_v61  ;;  %v11822_v61 = vld [vmem:[%s19544_s2 + $0x10] sm:$0xff] }
 0x36f   : > { %19707 = vst [vmem:[#allocation42_spill] sm:$0xff] %v17742_v24  ;;  %v4157_v31 = vand.u32 4294901760, %v17742_v24  ;;  %v17749_v59 = vsel %vm4132_vm4, %v16386_v45, %v4136_v2  ;;  %v16388_v12 = vadd.f32 %v4118_v25, %v17641_v38  ;;  %v6709_v38 = vand.u32 4294901760, %v17746_v56 }
 0x370   : > { %19708 = vst [vmem:[#allocation43_spill] sm:$0xff] %v17749_v59  ;;  %v4154_v4 = vand.u32 4294901760, %v17749_v59  ;;  %vm4135_vm5 = vcmp.ge.f32.partialorder %v16387_v17, 0.0  ;;  %v4139_v52 = vmul.f32 0.1, %v16387_v17 }
 0x371   : > { %v17755_v57 = vsub.f32 %v17742_v24, %v4157_v31  ;;  %vm4134_vm6 = vcmp.ge.f32.partialorder %v16388_v12, 0.0  ;;  %v4138_v16 = vmul.f32 0.1, %v16388_v12  ;;  %v6710_v21 = vsub.f32 %v17746_v56, %v6709_v38 }
 0x372   : > { %v17757_v7 = vpack.c.bf16 %v4157_v31, %v4154_v4  ;;  %v17760_v53 = vsub.f32 %v17749_v59, %v4154_v4  ;;  %v17762_v15 = vsel %vm4135_vm5, %v16387_v17, %v4139_v52 }
 0x373   : > { %19709 = vst [vmem:[#allocation44_spill] sm:$0xff] %v17762_v15  ;;  %v4252_v51 = vand.u32 4294901760, %v17755_v57  ;;  %v4163_v43 = vand.u32 4294901760, %v17762_v15  ;;  %v17767_v49 = vsel %vm4134_vm6, %v16388_v12, %v4138_v16  ;;  %v6711_v12 = vand.u32 4294901760, %v6710_v21  ;;  %v17946_v21 = vld [vmem:[%s19546_s4 + $0xa8] sm:$0xff] }
 0x374   : > { %19710 = vst [vmem:[#allocation45_spill] sm:$0xff] %v17767_v49  ;;  %v4245_v54 = vand.u32 4294901760, %v17760_v53  ;;  %v4160_v63 = vand.u32 4294901760, %v17767_v49  ;;  %15302 = vmatprep.subr.bf16.mxu1 %v17757_v7  ;;  %15782 = vmatprep.subr.bf16.mxu0 %v17757_v7 }
 0x375   : > { %v4253_v1 = vsub.f32 %v17755_v57, %v4252_v51  ;;  %v17780_v35 = vsub.f32 %v17762_v15, %v4163_v43  ;;  %15304 = vmatpush3.bf16.msra.mxu1 %v17757_v7  ;;  %15784 = vmatpush3.bf16.msra.mxu0 %v17757_v7 }
 0x376   : > { %v4246_v30 = vsub.f32 %v17760_v53, %v4245_v54  ;;  %v17787_v60 = vpack.c.bf16 %v4163_v43, %v4160_v63  ;;  %v17790_v6 = vsub.f32 %v17767_v49, %v4160_v63  ;;  %v17815_v43 = vpack.c.bf16 %v17755_v57, %v17760_v53 }
 0x377   : > { %v4254_v23 = vand.u32 4294901760, %v4253_v1  ;;  %v4266_v45 = vand.u32 4294901760, %v17780_v35  ;;  %v4701_v1 = vsel %vm4146_vm2, %v11822_v61, 0 }
 0x378   : > { %v4247_v55 = vand.u32 4294901760, %v4246_v30  ;;  %v4259_v2 = vand.u32 4294901760, %v17790_v6  ;;  %15306 = vmatprep.subr.bf16.mxu1 %v17787_v60  ;;  %15786 = vmatprep.subr.bf16.mxu0 %v17787_v60  ;;  %v17824_v63 = vpack.c.bf16 %v17780_v35, %v17790_v6  ;;  %v11827_v30 = vld [vmem:[%s19546_s4 + $0x98] sm:$0xff] }
 0x379   : > { %v4267_v17 = vsub.f32 %v17780_v35, %v4266_v45  ;;  %15308 = vmatpush3.bf16.msra.mxu1 %v17787_v60  ;;  %15788 = vmatpush3.bf16.msra.mxu0 %v17787_v60  ;;  %v17856_v35 = vpack.c.bf16 %v4252_v51, %v4245_v54 }
 0x37a   : > { %v17802_v25 = vpack.c.bf16 %v4254_v23, %v4247_v55  ;;  %v4260_v31 = vsub.f32 %v17790_v6, %v4259_v2  ;;  %v17941_v6 = vld [vmem:[%s19546_s4 + $0xa0] sm:$0xff]  ;;  %v5261_v23 = vand.u32 4294901760, %v11827_v30 }
 0x37b   : > { %v4268_v4 = vand.u32 4294901760, %v4267_v17  ;;  %v5264_v55 = vand.u32 4294901760, %v17941_v6  ;;  %v17957_v17 = vld [vmem:[%s19546_s4 + $0xb0] sm:$0xff] }
 0x37c   : > { %v4261_v52 = vand.u32 4294901760, %v4260_v31  ;;  %13546 = vmatmul.mubr.f32.vlgmr.msra.gmra.mrb[16].mxu1 %v4236_v13  ;;  %15310 = vmatprep.subr.bf16.mxu1 %v17802_v25  ;;  %v18066_v49 = vsub.f32 %v11827_v30, %v5261_v23 }
 0x37d   : > { %15790 = vmatprep.subr.bf16.mxu0 %v17802_v25  ;;  %15312 = vmatpush3.bf16.msra.mxu1 %v17802_v25 }
 0x37e   : > { %v17808_v16 = vpack.c.bf16 %v4268_v4, %v4261_v52  ;;  %14098 = vmatmul.mubr.f32.vlgmr.msra.gmra.mrb[8].mxu0 %v6711_v12  ;;  %13556 = vmatprep.mubr.f32.mxu1 %v17706_v33  ;;  %v5270_v12 = vand.u32 4294901760, %v17957_v17  ;;  %v17974_v52 = vld [vmem:[%s19546_s4 + $0xc0] sm:$0xff] }
 0x37f   : > { %15792 = vmatpush3.bf16.msra.mxu0 %v17802_v25  ;;  %14108 = vmatprep.mubr.f32.mxu0 %v17709_v0 }
 0x380   : > { %15314 = vmatprep.subr.bf16.mxu1 %v17808_v16  ;;  %15794 = vmatprep.subr.bf16.mxu0 %v17808_v16 }
 0x381   : > { %15316 = vmatpush3.bf16.msra.mxu1 %v17808_v16 }
 0x382   : > { %15318 = vmatprep.subr.bf16.mxu1 %v17815_v43 }
 0x383   : > { %15796 = vmatpush3.bf16.msra.mxu0 %v17808_v16 }
 0x384   : > { %15798 = vmatprep.subr.bf16.mxu0 %v17815_v43  ;;  %13557 = vmatmul.mubr.f32.vlgmr.msra.gmra.mrb[16].mxu1 %v17733_v5 }
 0x385   : > { %15320 = vmatpush3.bf16.msra.mxu1 %v17815_v43  ;;  %13567 = vmatprep.mubr.f32.mxu1 %v17712_v41  ;;  %v17860_v41 = vand.u32 4294901760, %v4701_v1 }
 0x386   : > { %14109 = vmatmul.mubr.f32.vlgmr.msra.gmra.mrb[8].mxu0 %v17736_v8  ;;  %15322 = vmatprep.subr.bf16.mxu1 %v17824_v63 }
 0x387   : > { %15800 = vmatpush3.bf16.msra.mxu0 %v17815_v43  ;;  %14119 = vmatprep.mubr.f32.mxu0 %v17715_v47  ;;  %v17867_v47 = vpack.c.bf16 %v4266_v45, %v4259_v2  ;;  %v5267_v2 = vand.u32 4294901760, %v17946_v21 }
 0x388   : > { %15802 = vmatprep.subr.bf16.mxu0 %v17824_v63 }
 0x389   : > { %15324 = vmatpush3.bf16.msra.mxu1 %v17824_v63  ;;  %v17967_v31 = vpack.c.bf16 %v5267_v2, %v5264_v55  ;;  %v18081_v30 = vsub.f32 %v17946_v21, %v5267_v2 }
 0x38a   : > { %15326 = vmatprep.subr.bf16.mxu1 %v17757_v7 }
 0x38b   : > { %15804 = vmatpush3.bf16.msra.mxu0 %v17824_v63 }
 0x38c   : > { %15806 = vmatprep.subr.bf16.mxu0 %v17757_v7  ;;  %13568 = vmatmul.mubr.f32.vlgmr.msra.gmra.mrb[16].mxu1 %v17740_v48 }
 0x38d   : > { %15328 = vmatpush3.bf16.msra.mxu1 %v17757_v7  ;;  %13578 = vmatprep.mubr.f32.mxu1 %v4224_v36  ;;  %v11823_v36 = vld [vmem:[%s19544_s2 + $0x18] sm:$0xff] }
 0x38e   : > { %14120 = vmatmul.mubr.f32.vlgmr.msra.gmra.mrb[8].mxu0 %v17746_v56  ;;  %15330 = vmatprep.subr.bf16.mxu1 %v17787_v60  ;;  %v4704_v57 = vsel %vm4146_vm2, %v11823_v36, 0 }
 0x38f   : > { %15808 = vmatpush3.bf16.msra.mxu0 %v17757_v7  ;;  %14130 = vmatprep.mubr.f32.mxu0 %v6699_v37  ;;  %v4776_v37 = vsub.f32 %v4701_v1, %v17860_v41  ;;  %v4785_v48 = vand.u32 4294901760, %v4704_v57 }
 0x390   : > { %15810 = vmatprep.subr.bf16.mxu0 %v17787_v60 }
 0x391   : > { %15332 = vmatpush3.bf16.msra.mxu1 %v17787_v60  ;;  %v4786_v56 = vsub.f32 %v4704_v57, %v4785_v48  ;;  %v18015_v57 = vld [vmem:[%s19546_s4 + $0xe0] sm:$0xff] }
 0x392   : > { %15334 = vmatprep.subr.bf16.mxu1 %v17856_v35 }
 0x393   : > { %15812 = vmatpush3.bf16.msra.mxu0 %v17787_v60 }
 0x394   : > { %15814 = vmatprep.subr.bf16.mxu0 %v17856_v35  ;;  %13579 = vmatmul.mubr.f32.vlgmr.msra.gmra.mrb[16].mxu1 %v4234_v40  ;;  %v4777_v40 = vand.u32 4294901760, %v4776_v37 }
 0x395   : > { %15336 = vmatpush3.bf16.msra.mxu1 %v17856_v35  ;;  %13589 = vmatprep.mubr.f32.mxu1 %v17706_v33 }
 0x396   : > { %14131 = vmatmul.mubr.f32.vlgmr.msra.gmra.mrb[8].mxu0 %v6709_v38  ;;  %15338 = vmatprep.subr.bf16.mxu1 %v17867_v47  ;;  %v4778_v53 = vsub.f32 %v4776_v37, %v4777_v40  ;;  %v4787_v38 = vand.u32 4294901760, %v4786_v56 }
 0x397   : > { %15816 = vmatpush3.bf16.msra.mxu0 %v17856_v35  ;;  %14141 = vmatprep.mubr.f32.mxu0 %v17709_v0 }
 0x398   : > { %15818 = vmatprep.subr.bf16.mxu0 %v17867_v47  ;;  %v4779_v51 = vand.u32 4294901760, %v4778_v53 }
 0x399   : > { %15340 = vmatpush3.bf16.msra.mxu1 %v17867_v47 }
 0x39a   : > { %15342 = vmatprep.subr.bf16.mxu1 %v17757_v7 }
 0x39b   : > { %15820 = vmatpush3.bf16.msra.mxu0 %v17867_v47 }
 0x39c   : > { %15822 = vmatprep.subr.bf16.mxu0 %v17757_v7  ;;  %13590 = vmatmul.mubr.f32.vlgmr.msra.gmra.mrb[16].mxu1 %v17733_v5 }
 0x39d   : > { %15344 = vmatpush3.bf16.msra.mxu1 %v17757_v7  ;;  %13600 = vmatprep.mubr.f32.mxu1 %v17706_v33  ;;  %v4788_v33 = vsub.f32 %v4786_v56, %v4787_v38 }
 0x39e   : > { %14142 = vmatmul.mubr.f32.vlgmr.msra.gmra.mrb[8].mxu0 %v17736_v8  ;;  %15346 = vmatprep.subr.bf16.mxu1 %v17787_v60 }
 0x39f   : > { %15824 = vmatpush3.bf16.msra.mxu0 %v17757_v7  ;;  %14152 = vmatprep.mubr.f32.mxu0 %v17709_v0  ;;  %v4789_v0 = vand.u32 4294901760, %v4788_v33  ;;  %v18039_v33 = vld [vmem:[%s19546_s4 + $0xf0] sm:$0xff] }
 0x3a0   : > { %15826 = vmatprep.subr.bf16.mxu0 %v17787_v60 }
 0x3a1   : > { %15348 = vmatpush3.bf16.msra.mxu1 %v17787_v60 }
 0x3a2   : > { %15350 = vmatprep.subr.bf16.mxu1 %v17757_v7 }
 0x3a3   : > { %15828 = vmatpush3.bf16.msra.mxu0 %v17787_v60 }
 0x3a4   : > { %13601 = vmatmul.mubr.f32.vlgmr.msra.gmra.mrb[16].mxu1 %v17733_v5  ;;  %v11825_v5 = vld [vmem:[%s19546_s4 + $0x88] sm:$0xff] }
 0x3a5   : > { %15352 = vmatpush3.bf16.msra.mxu1 %v17757_v7  ;;  %13611 = vmatprep.mubr.f32.mxu1 %v4779_v51  ;;  %v5255_v54 = vand.u32 4294901760, %v11825_v5 }
 0x3a6   : > { %15354 = vmatprep.subr.bf16.mxu1 %v17787_v60  ;;  %14153 = vmatmul.mubr.f32.vlgmr.msra.gmra.mrb[8].mxu0 %v17736_v8  ;;  %v11826_v8 = vld [vmem:[%s19546_s4 + $0x90] sm:$0xff] }
 0x3a7   : > { %14369 = vmatprep.mubr.f32.mxu0 %v16991_v44  ;;  %v11824_v44 = vld [vmem:[%s19546_s4 + $0x80] sm:$0xff]  ;;  %v18034_v51 = vsub.f32 %v11825_v5, %v5255_v54 }
 0x3a9   : > { %15356 = vmatpush3.bf16.msra.mxu1 %v17787_v60  ;;  %v19601_v5 = vand.u32 4294901760, %v18034_v51 }
 0x3aa   : > { %15358 = vmatprep.subr.bf16.mxu1 %v17802_v25 }
 0x3ac   : > { %13612 = vmatmul.mubr.f32.vlgmr.msra.gmra.mrb[18].mxu1 %v4789_v0  ;;  %v18044_v0 = vld [vmem:[%s19546_s4 + $0xf8] sm:$0xff] }
 0x3ad   : > { %15360 = vmatpush3.bf16.msra.mxu1 %v17802_v25  ;;  %13622 = vmatprep.mubr.f32.mxu1 %v17860_v41  ;;  %v17962_v25 = vld [vmem:[%s19546_s4 + $0xb8] sm:$0xff] }
 0x3ae   : > { %15362 = vmatprep.subr.bf16.mxu1 %v17808_v16  ;;  %v5273_v4 = vand.u32 4294901760, %v17962_v25 }
 0x3b0   : > { %v18099_v2 = vsub.f32 %v17962_v25, %v5273_v4  ;;  %v19711_v25 = vand.u32 4294901760, %v17974_v52 }
 0x3b1   : > { %15364 = vmatpush3.bf16.msra.mxu1 %v17808_v16  ;;  %v17979_v16 = vld [vmem:[%s19546_s4 + $0xc8] sm:$0xff] }
 0x3b2   : > { %15366 = vmatprep.subr.bf16.mxu1 %v17815_v43  ;;  %v19591_v61 = vand.u32 4294901760, %v17979_v16 }
 0x3b4   : > { %13623 = vmatmul.mubr.f32.vlgmr.msra.gmra.mrb[18].mxu1 %v4785_v48 }
 0x3b5   : > { %15368 = vmatpush3.bf16.msra.mxu1 %v17815_v43  ;;  %13633 = vmatprep.mubr.f32.mxu1 %v4776_v37  ;;  %v17983_v43 = vpack.c.bf16 %v5273_v4, %v5270_v12  ;;  %v19712_v4 = vand.u32 4294901760, %v17979_v16 }
 0x3b6   : > { %15370 = vmatprep.subr.bf16.mxu1 %v17824_v63 }
 0x3b9   : > { %15372 = vmatpush3.bf16.msra.mxu1 %v17824_v63  ;;  %v19594_v63 = vand.u32 4294901760, %v17974_v52 }
 0x3ba   : > { %15374 = vmatprep.subr.bf16.mxu1 %v17757_v7 }
 0x3bb   : > { %v17993_v1 = vpack.c.bf16 %v19591_v61, %v19594_v63  ;;  %v19600_v61 = vand.u32 4294901760, %v18039_v33 }
 0x3bc   : > { %13634 = vmatmul.mubr.f32.vlgmr.msra.gmra.mrb[18].mxu1 %v4786_v56 }
 0x3bd   : > { %15376 = vmatpush3.bf16.msra.mxu1 %v17757_v7  ;;  %13644 = vmatprep.mubr.f32.mxu1 %v4777_v40  ;;  %v19593_v40 = vand.u32 4294901760, %v18015_v57 }
 0x3be   : > { %15378 = vmatprep.subr.bf16.mxu1 %v17787_v60 }
 0x3c1   : > { %15380 = vmatpush3.bf16.msra.mxu1 %v17787_v60 }
 0x3c2   : > { %15382 = vmatprep.subr.bf16.mxu1 %v17856_v35 }
 0x3c4   : > { %13645 = vmatmul.mubr.f32.vlgmr.msra.gmra.mrb[18].mxu1 %v4787_v38 }
 0x3c5   : > { %15384 = vmatpush3.bf16.msra.mxu1 %v17856_v35  ;;  %13655 = vmatprep.mubr.f32.mxu1 %v17860_v41  ;;  %v18001_v35 = vld [vmem:[%s19546_s4 + $0xd0] sm:$0xff] }
 0x3c6   : > { %15386 = vmatprep.subr.bf16.mxu1 %v17867_v47  ;;  %v5282_v36 = vand.u32 4294901760, %v18001_v35 }
 0x3c9   : > { %15388 = vmatpush3.bf16.msra.mxu1 %v17867_v47 }
 0x3ca   : > { %15390 = vmatprep.subr.bf16.mxu1 %v17757_v7 }
 0x3cc   : > { %13656 = vmatmul.mubr.f32.vlgmr.msra.gmra.mrb[18].mxu1 %v4785_v48 }
 0x3cd   : > { %15392 = vmatpush3.bf16.msra.mxu1 %v17757_v7  ;;  %13666 = vmatprep.mubr.f32.mxu1 %v17860_v41  ;;  %v5252_v7 = vand.u32 4294901760, %v11824_v44  ;;  %v18006_v41 = vld [vmem:[%s19546_s4 + $0xd8] sm:$0xff] }
 0x3ce   : > { %15394 = vmatprep.subr.bf16.mxu1 %v17787_v60  ;;  %v5285_v47 = vand.u32 4294901760, %v18006_v41 }
 0x3cf   : > { %v17948_v45 = vpack.c.bf16 %v5255_v54, %v5252_v7  ;;  %v18032_v38 = vsub.f32 %v11824_v44, %v5252_v7 }
 0x3d0   : > { %v18010_v37 = vpack.c.bf16 %v5285_v47, %v5282_v36 }
 0x3d1   : > { %15396 = vmatpush3.bf16.msra.mxu1 %v17787_v60  ;;  %v5258_v60 = vand.u32 4294901760, %v11826_v8  ;;  %v19604_v44 = vand.u32 4294901760, %v18032_v38 }
 0x3d2   : > { %15398 = vmatprep.subr.bf16.mxu1 %v17948_v45 }
 0x3d3   : > { %v17952_v13 = vpack.c.bf16 %v5261_v23, %v5258_v60  ;;  %v5356_v54 = vsub.f32 %v18032_v38, %v19604_v44  ;;  %v18064_v63 = vsub.f32 %v11826_v8, %v5258_v60  ;;  %v18078_v8 = vsub.f32 %v17941_v6, %v5264_v55 }
 0x3d4   : > { %13667 = vmatmul.mubr.f32.vlgmr.msra.gmra.mrb[18].mxu1 %v4785_v48  ;;  %v18020_v48 = vld [vmem:[%s19546_s4 + $0xe8] sm:$0xff]  ;;  %v18096_v55 = vsub.f32 %v17957_v17, %v5270_v12  ;;  %v18116_v12 = vsub.f32 %v17974_v52, %v19711_v25  ;;  %v18131_v52 = vsub.f32 %v18001_v35, %v5282_v36  ;;  %v18134_v25 = vsub.f32 %v18006_v41, %v5285_v47 }
 0x3d5   : > { %15400 = vmatpush3.bf16.msra.mxu1 %v17948_v45  ;;  %v19592_v56 = vand.u32 4294901760, %v18020_v48  ;;  %v5357_v15 = vand.u32 4294901760, %v5356_v54  ;;  %v19603_v24 = vand.u32 4294901760, %v18064_v63  ;;  %v19713_v41 = vand.u32 4294901760, %v18015_v57 }
 0x3d6   : > { %15402 = vmatprep.subr.bf16.mxu1 %v17952_v13 }
 0x3d7   : > { %v18030_v53 = vpack.c.bf16 %v19592_v56, %v19593_v40  ;;  %v19599_v56 = vand.u32 4294901760, %v18044_v0  ;;  %v5363_v40 = vsub.f32 %v18034_v51, %v19601_v5  ;;  %v5370_v5 = vsub.f32 %v18064_v63, %v19603_v24 }
 0x3d8   : > { %v19606_v24 = vand.u32 4294901760, %v18099_v2  ;;  %v18150_v36 = vsub.f32 %v18015_v57, %v19713_v41  ;;  %v19715_v41 = vand.u32 4294901760, %v18039_v33 }
 0x3d9   : > { %15404 = vmatpush3.bf16.msra.mxu1 %v17952_v13  ;;  %v18056_v7 = vpack.c.bf16 %v19599_v56, %v19600_v61  ;;  %v5364_v59 = vand.u32 4294901760, %v5363_v40  ;;  %v19602_v56 = vand.u32 4294901760, %v18066_v49  ;;  %v5371_v23 = vand.u32 4294901760, %v5370_v5 }
 0x3da   : > { %15406 = vmatprep.subr.bf16.mxu1 %v17967_v31  ;;  %v5405_v17 = vsub.f32 %v18099_v2, %v19606_v24 }
 0x3db   : > { %v18072_v61 = vpack.c.bf16 %v5364_v59, %v5357_v15  ;;  %v5377_v60 = vsub.f32 %v18066_v49, %v19602_v56  ;;  %v19611_v59 = vand.u32 4294901760, %v18078_v8  ;;  %v19605_v15 = vand.u32 4294901760, %v18081_v30 }
 0x3dd   : > { %15408 = vmatpush3.bf16.msra.mxu1 %v17967_v31  ;;  %v5378_v40 = vand.u32 4294901760, %v5377_v60  ;;  %v5384_v6 = vsub.f32 %v18078_v8, %v19611_v59  ;;  %v5391_v21 = vsub.f32 %v18081_v30, %v19605_v15  ;;  %v19609_v60 = vand.u32 4294901760, %v18096_v55 }
 0x3de   : > { %15410 = vmatprep.subr.bf16.mxu1 %v17983_v43 }
 0x3df   : > { %v18101_v5 = vpack.c.bf16 %v5378_v40, %v5371_v23  ;;  %v5385_v54 = vand.u32 4294901760, %v5384_v6  ;;  %v5392_v56 = vand.u32 4294901760, %v5391_v21  ;;  %v5398_v15 = vsub.f32 %v18096_v55, %v19609_v60 }
 0x3e0   : > { %v18121_v23 = vsub.f32 %v17979_v16, %v19712_v4  ;;  %v5406_v40 = vand.u32 4294901760, %v5405_v17  ;;  %v19608_v6 = vand.u32 4294901760, %v18116_v12  ;;  %v19610_v17 = vand.u32 4294901760, %v18131_v52 }
 0x3e1   : > { %15412 = vmatpush3.bf16.msra.mxu1 %v17983_v43  ;;  %v18105_v44 = vpack.c.bf16 %v5392_v56, %v5385_v54  ;;  %v5399_v56 = vand.u32 4294901760, %v5398_v15  ;;  %v19612_v4 = vand.u32 4294901760, %v18134_v25  ;;  %v19614_v60 = vand.u32 4294901760, %v18150_v36 }
 0x3e2   : > { %15414 = vmatprep.subr.bf16.mxu1 %v17993_v1  ;;  %v19607_v21 = vand.u32 4294901760, %v18121_v23  ;;  %v5412_v24 = vsub.f32 %v18116_v12, %v19608_v6 }
 0x3e3   : > { %v18125_v54 = vpack.c.bf16 %v5406_v40, %v5399_v56  ;;  %v5426_v40 = vsub.f32 %v18131_v52, %v19610_v17  ;;  %v5433_v35 = vsub.f32 %v18134_v25, %v19612_v4  ;;  %v5440_v4 = vsub.f32 %v18150_v36, %v19614_v60 }
 0x3e4   : > { %v5419_v16 = vsub.f32 %v18121_v23, %v19607_v21  ;;  %v5413_v15 = vand.u32 4294901760, %v5412_v24  ;;  %v19714_v24 = vand.u32 4294901760, %v18020_v48 }
 0x3e5   : > { %15416 = vmatpush3.bf16.msra.mxu1 %v17993_v1  ;;  %v5434_v6 = vand.u32 4294901760, %v5433_v35 }
 0x3e6   : > { %15418 = vmatprep.subr.bf16.mxu1 %v18010_v37  ;;  %v5420_v56 = vand.u32 4294901760, %v5419_v16  ;;  %v18155_v47 = vsub.f32 %v18020_v48, %v19714_v24  ;;  %v5427_v16 = vand.u32 4294901760, %v5426_v40  ;;  %v18168_v48 = vsub.f32 %v18039_v33, %v19715_v41 }
 0x3e7   : > { %v5441_v40 = vand.u32 4294901760, %v5440_v4  ;;  %v15465_v4 = vpack.c.bf16 %v18066_v49, %v18064_v63 }
 0x3e8   : > { %v15445_v21 = vpack.c.bf16 %v5420_v56, %v5413_v15  ;;  %v19613_v17 = vand.u32 4294901760, %v18155_v47  ;;  %v15449_v59 = vpack.c.bf16 %v5434_v6, %v5427_v16  ;;  %v19716_v15 = vand.u32 4294901760, %v18044_v0 }
 0x3e9   : > { %15420 = vmatpush3.bf16.msra.mxu1 %v18010_v37  ;;  %v19618_v35 = vand.u32 4294901760, %v18168_v48 }
 0x3ea   : > { %15422 = vmatprep.subr.bf16.mxu1 %v18030_v53  ;;  %v5447_v57 = vsub.f32 %v18155_v47, %v19613_v17  ;;  %v18173_v56 = vsub.f32 %v18044_v0, %v19716_v15  ;;  %v15461_v0 = vpack.c.bf16 %v18034_v51, %v18032_v38  ;;  %v15473_v15 = vpack.c.bf16 %v18099_v2, %v18096_v55 }
 0x3eb   : > { %v5454_v17 = vsub.f32 %v18168_v48, %v19618_v35 }
 0x3ec   : > { %v5448_v6 = vand.u32 4294901760, %v5447_v57  ;;  %v19617_v24 = vand.u32 4294901760, %v18173_v56  ;;  %v15469_v57 = vpack.c.bf16 %v18081_v30, %v18078_v8 }
 0x3ed   : > { %15424 = vmatpush3.bf16.msra.mxu1 %v18030_v53  ;;  %v5455_v41 = vand.u32 4294901760, %v5454_v17  ;;  %v15481_v17 = vpack.c.bf16 %v18134_v25, %v18131_v52 }
 0x3ee   : > { %15426 = vmatprep.subr.bf16.mxu1 %v18056_v7  ;;  %v15453_v16 = vpack.c.bf16 %v5448_v6, %v5441_v40  ;;  %v5461_v33 = vsub.f32 %v18173_v56, %v19617_v24  ;;  %v15477_v40 = vpack.c.bf16 %v18121_v23, %v18116_v12  ;;  %v15489_v6 = vpack.c.bf16 %v18173_v56, %v18168_v48 }
 0x3f0   : > { %v5462_v60 = vand.u32 4294901760, %v5461_v33 }
 0x3f1   : > { %15428 = vmatpush3.bf16.msra.mxu1 %v18056_v7 }
 0x3f2   : > { %15430 = vmatprep.subr.bf16.mxu1 %v18072_v61  ;;  %v15457_v39 = vpack.c.bf16 %v5462_v60, %v5455_v41  ;;  %v15485_v60 = vpack.c.bf16 %v18155_v47, %v18150_v36 }
 0x477   : > { %v18199_v33 = vpop.f32.mrb[16].mxu1 }
 0x478   : > { %v18201_v41 = vpop.f32.mrb[17].mxu1 }
 0x4a7   : > { %v13668_v24 = vpop.f32.mrb[18].mxu1 }
 0x4a8   : > { %v18203_v35 = vand.u32 4294901760, %v13668_v24  ;;  %v5224_v32 = vpop.f32.mrb[19].mxu1 }
 0x4a9   : > { %v18205_v42 = vand.u32 4294901760, %v5224_v32 }
 0x4aa   : > { %v18208_v62 = vsub.f32 %v13668_v24, %v18203_v35 }
 0x4ab   : > { %v5333_v34 = vsub.f32 %v5224_v32, %v18205_v42  ;;  %v19720_v32 = vand.u32 4294901760, %v18066_v49 }
 0x4ac   : > { %v5344_v3 = vand.u32 4294901760, %v18208_v62 }
 0x4ad   : > { %v5334_v26 = vand.u32 4294901760, %v5333_v34 }
 0x4ae   : > { %v5345_v29 = vsub.f32 %v18208_v62, %v5344_v3 }
 0x4af   : > { %v5335_v28 = vsub.f32 %v5333_v34, %v5334_v26 }
 0x4b0   : > { %v5346_v22 = vand.u32 4294901760, %v5345_v29  ;;  %v19719_v29 = vand.u32 4294901760, %v18064_v63  ;;  %v19724_v63 = vand.u32 4294901760, %v18099_v2 }
 0x4b1   : > { %v5336_v27 = vand.u32 4294901760, %v5335_v28 }
 0x4b3   : > { %13701 = vmatprep.mubr.f32.mxu1 %v5336_v27  ;;  %v19718_v27 = vand.u32 4294901760, %v18034_v51 }
 0x4b4   : > { %13702 = vmatmul.mubr.f32.vlgmr.msra.gmra.mrb[20].mxu1 %v5346_v22  ;;  %v19717_v22 = vand.u32 4294901760, %v18032_v38  ;;  %v19723_v38 = vand.u32 4294901760, %v18096_v55  ;;  %v19730_v55 = vand.u32 4294901760, %v18155_v47 }
 0x4b5   : > { %15432 = vmatpush3.bf16.msra.mxu1 %v18072_v61  ;;  %13736 = vmatprep.mubr.f32.mxu1 %v18205_v42 }
 0x4b6   : > { %15434 = vmatprep.subr.bf16.mxu1 %v18101_v5  ;;  %v15525_v28 = vpack.c.bf16 %v19718_v27, %v19717_v22  ;;  %v15537_v49 = vpack.c.bf16 %v19724_v63, %v19723_v38  ;;  %v18352_v22 = vld [vmem:[%s19546_s4 + $0x50] sm:$0xff]  ;;  %v18357_v27 = vld [vmem:[%s19546_s4 + $0x58] sm:$0xff]  ;;  %v18380_v38 = vand.u32 4294901760, %v18199_v33 }
 0x4b9   : > { %15436 = vmatpush3.bf16.msra.mxu1 %v18101_v5  ;;  %v19731_v5 = vand.u32 4294901760, %v18168_v48  ;;  %v4685_v48 = vld [vmem:[%s19546_s4 + $0x20] sm:$0xff] }
 0x4ba   : > { %15438 = vmatprep.subr.bf16.mxu1 %v18105_v44  ;;  %v5948_v24 = vand.u32 4294901760, %v4685_v48 }
 0x4bd   : > { %15440 = vmatpush3.bf16.msra.mxu1 %v18105_v44  ;;  %v19727_v44 = vand.u32 4294901760, %v18131_v52  ;;  %v4684_v52 = vld [vmem:[%s19546_s4 + $0x18] sm:$0xff] }
 0x4be   : > { %15442 = vmatprep.subr.bf16.mxu1 %v18125_v54 }
 0x4c1   : > { %15444 = vmatpush3.bf16.msra.mxu1 %v18125_v54  ;;  %v4683_v54 = vld [vmem:[%s19546_s4 + $0x10] sm:$0xff] }
 0x4c2   : > { %15446 = vmatprep.subr.bf16.mxu1 %v15445_v21 }
 0x4c5   : > { %15448 = vmatpush3.bf16.msra.mxu1 %v15445_v21  ;;  %v18288_v21 = vand.u32 4294901760, %v18201_v41 }
 0x4c6   : > { %15450 = vmatprep.subr.bf16.mxu1 %v15449_v59 }
 0x4c9   : > { %15452 = vmatpush3.bf16.msra.mxu1 %v15449_v59  ;;  %v19729_v59 = vand.u32 4294901760, %v18150_v36  ;;  %v5945_v36 = vand.u32 4294901760, %v4684_v52 }
 0x4ca   : > { %15454 = vmatprep.subr.bf16.mxu1 %v15453_v16 }
 0x4cb   : > { %v15549_v2 = vpack.c.bf16 %v19730_v55, %v19729_v59  ;;  %v18402_v59 = vsub.f32 %v4684_v52, %v5945_v36  ;;  %v18406_v55 = vsub.f32 %v18199_v33, %v18380_v38 }
 0x4cd   : > { %15456 = vmatpush3.bf16.msra.mxu1 %v15453_v16 }
 0x4ce   : > { %15458 = vmatprep.subr.bf16.mxu1 %v15457_v39 }
 0x4d1   : > { %15460 = vmatpush3.bf16.msra.mxu1 %v15457_v39  ;;  %v15529_v39 = vpack.c.bf16 %v19720_v32, %v19719_v29  ;;  %v18368_v29 = vld [vmem:[%s19546_s4 + $0x68] sm:$0xff] }
 0x4d2   : > { %15462 = vmatprep.subr.bf16.mxu1 %v15461_v0 }
 0x4d4   : > { %13737 = vmatmul.mubr.f32.vlgmr.msra.gmra.mrb[20].mxu1 %v18203_v35 }
 0x4d5   : > { %15464 = vmatpush3.bf16.msra.mxu1 %v15461_v0  ;;  %13771 = vmatprep.mubr.f32.mxu1 %v5333_v34  ;;  %v19722_v34 = vand.u32 4294901760, %v18081_v30 }
 0x4d6   : > { %15466 = vmatprep.subr.bf16.mxu1 %v15465_v4 }
 0x4d9   : > { %15468 = vmatpush3.bf16.msra.mxu1 %v15465_v4  ;;  %v4687_v4 = vld [vmem:[%s19546_s4 + $0x30] sm:$0xff] }
 0x4da   : > { %15470 = vmatprep.subr.bf16.mxu1 %v15469_v57 }
 0x4dd   : > { %15472 = vmatpush3.bf16.msra.mxu1 %v15469_v57  ;;  %v4688_v57 = vld [vmem:[%s19546_s4 + $0x38] sm:$0xff] }
 0x4de   : > { %15474 = vmatprep.subr.bf16.mxu1 %v15473_v15 }
 0x4e1   : > { %15476 = vmatpush3.bf16.msra.mxu1 %v15473_v15  ;;  %v5954_v15 = vand.u32 4294901760, %v4687_v4 }
 0x4e2   : > { %15478 = vmatprep.subr.bf16.mxu1 %v15477_v40 }
 0x4e5   : > { %15480 = vmatpush3.bf16.msra.mxu1 %v15477_v40  ;;  %v5957_v40 = vand.u32 4294901760, %v4688_v57 }
 0x4e6   : > { %15482 = vmatprep.subr.bf16.mxu1 %v15481_v17 }
 0x4e7   : > { %v18432_v52 = vsub.f32 %v4688_v57, %v5957_v40 }
 0x4e9   : > { %15484 = vmatpush3.bf16.msra.mxu1 %v15481_v17  ;;  %v4689_v17 = vld [vmem:[%s19546_s4 + $0x40] sm:$0xff]  ;;  %v19638_v57 = vand.u32 4294901760, %v18432_v52 }
 0x4ea   : > { %15486 = vmatprep.subr.bf16.mxu1 %v15485_v60 }
 0x4ed   : > { %15488 = vmatpush3.bf16.msra.mxu1 %v15485_v60  ;;  %v4690_v60 = vld [vmem:[%s19546_s4 + $0x48] sm:$0xff] }
 0x4ee   : > { %15490 = vmatprep.subr.bf16.mxu1 %v15489_v6 }
 0x4f1   : > { %15492 = vmatpush3.bf16.msra.mxu1 %v15489_v6  ;;  %v5960_v6 = vand.u32 4294901760, %v4689_v17 }
 0x4f2   : > { %15494 = vmatprep.subr.bf16.mxu1 %v17948_v45 }
 0x4f4   : > { %13772 = vmatmul.mubr.f32.vlgmr.msra.gmra.mrb[20].mxu1 %v18208_v62  ;;  %v19726_v62 = vand.u32 4294901760, %v18121_v23 }
 0x4f5   : > { %15496 = vmatpush3.bf16.msra.mxu1 %v17948_v45  ;;  %13806 = vmatprep.mubr.f32.mxu1 %v5334_v26  ;;  %v19721_v26 = vand.u32 4294901760, %v18078_v8  ;;  %v19728_v8 = vand.u32 4294901760, %v18134_v25 }
 0x4f6   : > { %15498 = vmatprep.subr.bf16.mxu1 %v17952_v13 }
 0x4f7   : > { %v15533_v61 = vpack.c.bf16 %v19722_v34, %v19721_v26  ;;  %v15545_v30 = vpack.c.bf16 %v19728_v8, %v19727_v44  ;;  %v5966_v34 = vand.u32 4294901760, %v18352_v22  ;;  %v18393_v44 = vld [vmem:[%s19546_s4 + $0x70] sm:$0xff]  ;;  %v18398_v8 = vld [vmem:[%s19546_s4 + $0x78] sm:$0xff] }
 0x4f9   : > { %15500 = vmatpush3.bf16.msra.mxu1 %v17952_v13 }
 0x4fa   : > { %15502 = vmatprep.subr.bf16.mxu1 %v17967_v31 }
 0x4fd   : > { %15504 = vmatpush3.bf16.msra.mxu1 %v17967_v31 }
 0x4fe   : > { %15506 = vmatprep.subr.bf16.mxu1 %v17983_v43 }
 0x501   : > { %15508 = vmatpush3.bf16.msra.mxu1 %v17983_v43 }
 0x502   : > { %15510 = vmatprep.subr.bf16.mxu1 %v17993_v1 }
 0x505   : > { %15512 = vmatpush3.bf16.msra.mxu1 %v17993_v1 }
 0x506   : > { %15514 = vmatprep.subr.bf16.mxu1 %v18010_v37 }
 0x509   : > { %15516 = vmatpush3.bf16.msra.mxu1 %v18010_v37 }
 0x50a   : > { %15518 = vmatprep.subr.bf16.mxu1 %v18030_v53 }
 0x50d   : > { %15520 = vmatpush3.bf16.msra.mxu1 %v18030_v53 }
 0x50e   : > { %15522 = vmatprep.subr.bf16.mxu1 %v18056_v7 }
 0x511   : > { %15524 = vmatpush3.bf16.msra.mxu1 %v18056_v7 }
 0x512   : > { %15526 = vmatprep.subr.bf16.mxu1 %v15525_v28 }
 0x514   : > { %13807 = vmatmul.mubr.f32.vlgmr.msra.gmra.mrb[20].mxu1 %v5344_v3  ;;  %v19725_v3 = vand.u32 4294901760, %v18116_v12  ;;  %v19732_v12 = vand.u32 4294901760, %v18173_v56  ;;  %v4686_v56 = vld [vmem:[%s19546_s4 + $0x28] sm:$0xff] }
 0x515   : > { %15528 = vmatpush3.bf16.msra.mxu1 %v15525_v28  ;;  %13841 = vmatprep.mubr.f32.mxu1 %v18205_v42  ;;  %v5951_v16 = vand.u32 4294901760, %v4686_v56  ;;  %v18363_v28 = vld [vmem:[%s19546_s4 + $0x60] sm:$0xff] }
 0x516   : > { %15530 = vmatprep.subr.bf16.mxu1 %v15529_v39  ;;  %v15541_v51 = vpack.c.bf16 %v19726_v62, %v19725_v3  ;;  %v15553_v23 = vpack.c.bf16 %v19732_v12, %v19731_v5  ;;  %v5972_v63 = vand.u32 4294901760, %v18363_v28  ;;  %v5978_v5 = vand.u32 4294901760, %v18393_v44 }
 0x517   : > { %v5981_v12 = vand.u32 4294901760, %v18398_v8 }
 0x519   : > { %15532 = vmatpush3.bf16.msra.mxu1 %v15529_v39 }
 0x51a   : > { %15534 = vmatprep.subr.bf16.mxu1 %v15533_v61 }
 0x51d   : > { %15536 = vmatpush3.bf16.msra.mxu1 %v15533_v61  ;;  %v5969_v61 = vand.u32 4294901760, %v18357_v27 }
 0x51e   : > { %15538 = vmatprep.subr.bf16.mxu1 %v15537_v49 }
 0x521   : > { %15540 = vmatpush3.bf16.msra.mxu1 %v15537_v49  ;;  %v5975_v49 = vand.u32 4294901760, %v18368_v29 }
 0x522   : > { %15542 = vmatprep.subr.bf16.mxu1 %v15541_v51 }
 0x525   : > { %15544 = vmatpush3.bf16.msra.mxu1 %v15541_v51  ;;  %v18388_v51 = vpack.c.bf16 %v5969_v61, %v5966_v34 }
 0x526   : > { %15546 = vmatprep.subr.bf16.mxu1 %v15545_v30 }
 0x529   : > { %15548 = vmatpush3.bf16.msra.mxu1 %v15545_v30 }
 0x52a   : > { %15550 = vmatprep.subr.bf16.mxu1 %v15549_v2 }
 0x52d   : > { %15552 = vmatpush3.bf16.msra.mxu1 %v15549_v2  ;;  %v18412_v2 = vpack.c.bf16 %v5975_v49, %v5972_v63 }
 0x52e   : > { %15554 = vmatprep.subr.bf16.mxu1 %v15553_v23 }
 0x531   : > { %15556 = vmatpush3.bf16.msra.mxu1 %v15553_v23 }
 0x532   : > { %15558 = vmatprep.subr.bf16.mxu1 %v17948_v45 }
 0x534   : > { %13842 = vmatmul.mubr.f32.vlgmr.msra.gmra.mrb[20].mxu1 %v18203_v35 }
 0x535   : > { %15560 = vmatpush3.bf16.msra.mxu1 %v17948_v45  ;;  %13876 = vmatprep.mubr.f32.mxu1 %v18205_v42  ;;  %v18294_v42 = vsub.f32 %v18201_v41, %v18288_v21  ;;  %v4681_v45 = vld [vmem:[%s19546_s4] sm:$0xff]  ;;  %v5963_v41 = vand.u32 4294901760, %v4690_v60 }
 0x536   : > { %15562 = vmatprep.subr.bf16.mxu1 %v17952_v13 }
 0x537   : > { %v18375_v26 = vpack.c.bf16 %v5963_v41, %v5960_v6 }
 0x539   : > { %15564 = vmatpush3.bf16.msra.mxu1 %v17952_v13  ;;  %v4682_v13 = vld [vmem:[%s19546_s4 + $0x8] sm:$0xff] }
 0x53a   : > { %15566 = vmatprep.subr.bf16.mxu1 %v17967_v31 }
 0x53d   : > { %15568 = vmatpush3.bf16.msra.mxu1 %v17967_v31  ;;  %v5936_v31 = vand.u32 4294901760, %v4681_v45 }
 0x53e   : > { %15570 = vmatprep.subr.bf16.mxu1 %v17983_v43 }
 0x53f   : > { %v18370_v32 = vsub.f32 %v4681_v45, %v5936_v31 }
 0x541   : > { %15572 = vmatpush3.bf16.msra.mxu1 %v17983_v43  ;;  %v5939_v43 = vand.u32 4294901760, %v4682_v13  ;;  %v19634_v3 = vand.u32 4294901760, %v18370_v32 }
 0x542   : > { %15574 = vmatprep.subr.bf16.mxu1 %v17993_v1 }
 0x543   : > { %v18313_v25 = vpack.c.bf16 %v5939_v43, %v5936_v31  ;;  %v18372_v39 = vsub.f32 %v4682_v13, %v5939_v43  ;;  %v6040_v23 = vsub.f32 %v18370_v32, %v19634_v3  ;;  %v19631_v13 = vand.u32 4294901760, %v18402_v59 }
 0x544   : > { %v18426_v31 = vsub.f32 %v4685_v48, %v5948_v24  ;;  %v18428_v43 = vsub.f32 %v4686_v56, %v5951_v16 }
 0x545   : > { %15576 = vmatpush3.bf16.msra.mxu1 %v17993_v1  ;;  %v6018_v1 = vand.u32 4294901760, %v18294_v42  ;;  %v19633_v62 = vand.u32 4294901760, %v18372_v39  ;;  %v6061_v56 = vsub.f32 %v18402_v59, %v19631_v13 }
 0x546   : > { %15578 = vmatprep.subr.bf16.mxu1 %v18010_v37 }
 0x547   : > { %v6019_v47 = vsub.f32 %v18294_v42, %v6018_v1  ;;  %v6047_v33 = vsub.f32 %v18372_v39, %v19633_v62 }
 0x549   : > { %15580 = vmatpush3.bf16.msra.mxu1 %v18010_v37  ;;  %v5942_v37 = vand.u32 4294901760, %v4683_v54  ;;  %v6020_v0 = vand.u32 4294901760, %v6019_v47  ;;  %v6041_v47 = vand.u32 4294901760, %v6040_v23  ;;  %v18457_v23 = vsub.f32 %v4689_v17, %v5960_v6 }
 0x54a   : > { %15582 = vmatprep.subr.bf16.mxu1 %v18030_v53  ;;  %v6089_v17 = vsub.f32 %v18432_v52, %v19638_v57 }
 0x54b   : > { %v18400_v30 = vsub.f32 %v4683_v54, %v5942_v37  ;;  %v18430_v54 = vsub.f32 %v4687_v4, %v5954_v15 }
 0x54c   : > { %v6090_v57 = vand.u32 4294901760, %v6089_v17 }
 0x54d   : > { %15584 = vmatpush3.bf16.msra.mxu1 %v18030_v53  ;;  %v18326_v53 = vpack.c.bf16 %v5945_v36, %v5942_v37  ;;  %v19632_v45 = vand.u32 4294901760, %v18400_v30  ;;  %v19639_v37 = vand.u32 4294901760, %v18406_v55  ;;  %v18440_v36 = vpack.c.bf16 %v5981_v12, %v5978_v5 }
 0x54e   : > { %15586 = vmatprep.subr.bf16.mxu1 %v18056_v7  ;;  %v19635_v4 = vand.u32 4294901760, %v18430_v54 }
 0x54f   : > { %v6054_v48 = vsub.f32 %v18400_v30, %v19632_v45  ;;  %v6062_v45 = vand.u32 4294901760, %v6061_v56 }
 0x551   : > { %15588 = vmatpush3.bf16.msra.mxu1 %v18056_v7  ;;  %v18337_v7 = vpack.c.bf16 %v5951_v16, %v5948_v24  ;;  %v19637_v24 = vand.u32 4294901760, %v18426_v31  ;;  %v19636_v16 = vand.u32 4294901760, %v18428_v43  ;;  %v6055_v13 = vand.u32 4294901760, %v6054_v48 }
 0x552   : > { %15590 = vmatprep.subr.bf16.mxu1 %v18313_v25 }
 0x553   : > { %v6068_v62 = vsub.f32 %v18426_v31, %v19637_v24  ;;  %v6075_v3 = vsub.f32 %v18428_v43, %v19636_v16  ;;  %v15625_v56 = vpack.c.bf16 %v6062_v45, %v6055_v13 }
 0x554   : > { %13877 = vmatmul.mubr.f32.vlgmr.msra.gmra.mrb[20].mxu1 %v18203_v35  ;;  %v18347_v35 = vpack.c.bf16 %v5957_v40, %v5954_v15  ;;  %v6029_v15 = vsub.f32 %v18406_v55, %v19639_v37 }
 0x555   : > { %15592 = vmatpush3.bf16.msra.mxu1 %v18313_v25  ;;  %13911 = vmatprep.mubr.f32.mxu1 %v6020_v0  ;;  %v6048_v0 = vand.u32 4294901760, %v6047_v33  ;;  %v18459_v33 = vsub.f32 %v4690_v60, %v5963_v41  ;;  %v6095_v60 = vand.u32 4294901760, %v18457_v23  ;;  %v18478_v41 = vsub.f32 %v18352_v22, %v5966_v34 }
 0x556   : > { %15594 = vmatprep.subr.bf16.mxu1 %v18326_v53  ;;  %v6030_v48 = vand.u32 4294901760, %v6029_v15  ;;  %v6076_v16 = vand.u32 4294901760, %v6075_v3  ;;  %v18495_v3 = vsub.f32 %v18363_v28, %v5972_v63  ;;  %v18515_v63 = vsub.f32 %v18393_v44, %v5978_v5 }
 0x557   : > { %v15621_v40 = vpack.c.bf16 %v6048_v0, %v6041_v47  ;;  %v6082_v47 = vsub.f32 %v18430_v54, %v19635_v4  ;;  %v6102_v6 = vand.u32 4294901760, %v18459_v33  ;;  %v18481_v0 = vsub.f32 %v18357_v27, %v5969_v61 }
 0x558   : > { %v6069_v4 = vand.u32 4294901760, %v6068_v62  ;;  %v6096_v37 = vsub.f32 %v18457_v23, %v6095_v60  ;;  %v6109_v27 = vand.u32 4294901760, %v18478_v41  ;;  %v18500_v62 = vsub.f32 %v18368_v29, %v5975_v49 }
 0x559   : > { %15596 = vmatpush3.bf16.msra.mxu1 %v18326_v53  ;;  %v6083_v24 = vand.u32 4294901760, %v6082_v47  ;;  %v6103_v22 = vsub.f32 %v18459_v33, %v6102_v6  ;;  %v6116_v34 = vand.u32 4294901760, %v18481_v0  ;;  %v6123_v28 = vand.u32 4294901760, %v18495_v3 }
 0x55a   : > { %15598 = vmatprep.subr.bf16.mxu1 %v18337_v7  ;;  %v15629_v61 = vpack.c.bf16 %v6076_v16, %v6069_v4  ;;  %v6097_v13 = vand.u32 4294901760, %v6096_v37  ;;  %v18508_v4 = vpop.f32.mrb[8].mxu0  ;;  %v6130_v29 = vand.u32 4294901760, %v18500_v62  ;;  %v18520_v49 = vsub.f32 %v18398_v8, %v5981_v12 }
 0x55b   : > { %v15633_v45 = vpack.c.bf16 %v6090_v57, %v6083_v24  ;;  %v6104_v15 = vand.u32 4294901760, %v6103_v22  ;;  %v6117_v16 = vsub.f32 %v18481_v0, %v6116_v34  ;;  %v18522_v37 = vpop.f32.mrb[9].mxu0  ;;  %v6124_v17 = vsub.f32 %v18495_v3, %v6123_v28 }
 0x55c   : > { %v6131_v44 = vsub.f32 %v18500_v62, %v6130_v29  ;;  %v6137_v5 = vand.u32 4294901760, %v18515_v63  ;;  %v6144_v8 = vand.u32 4294901760, %v18520_v49 }
 0x55d   : > { %15600 = vmatpush3.bf16.msra.mxu1 %v18337_v7  ;;  %v15637_v24 = vpack.c.bf16 %v6104_v15, %v6097_v13  ;;  %v6118_v47 = vand.u32 4294901760, %v6117_v16  ;;  %v15653_v16 = vpack.c.bf16 %v18372_v39, %v18370_v32 }
 0x55e   : > { %15602 = vmatprep.subr.bf16.mxu1 %v18347_v35  ;;  %v6138_v22 = vsub.f32 %v18515_v63, %v6137_v5 }
 0x560   : > { %v6139_v15 = vand.u32 4294901760, %v6138_v22  ;;  %v19735_v22 = vand.u32 4294901760, %v18400_v30 }
 0x561   : > { %15604 = vmatpush3.bf16.msra.mxu1 %v18347_v35 }
 0x562   : > { %15606 = vmatprep.subr.bf16.mxu1 %v18375_v26 }
 0x565   : > { %15608 = vmatpush3.bf16.msra.mxu1 %v18375_v26 }
 0x566   : > { %15610 = vmatprep.subr.bf16.mxu1 %v18388_v51 }
 0x569   : > { %15612 = vmatpush3.bf16.msra.mxu1 %v18388_v51 }
 0x56a   : > { %15614 = vmatprep.subr.bf16.mxu1 %v18412_v2 }
 0x56d   : > { %15616 = vmatpush3.bf16.msra.mxu1 %v18412_v2 }
 0x56e   : > { %15618 = vmatprep.subr.bf16.mxu1 %v18440_v36 }
 0x571   : > { %15620 = vmatpush3.bf16.msra.mxu1 %v18440_v36 }
 0x572   : > { %15622 = vmatprep.subr.bf16.mxu1 %v15621_v40 }
 0x574   : > { %13912 = vmatmul.mubr.f32.vlgmr.msra.gmra.mrb[20].mxu1 %v6030_v48  ;;  %v6125_v48 = vand.u32 4294901760, %v6124_v17  ;;  %v15669_v17 = vpack.c.bf16 %v18459_v33, %v18457_v23  ;;  %v11844_v23 = vld [vmem:[%s19546_s4 + $0x110] sm:$0xff]  ;;  %v11845_v33 = vld [vmem:[%s19546_s4 + $0x118] sm:$0xff] }
 0x575   : > { %15624 = vmatpush3.bf16.msra.mxu1 %v15621_v40  ;;  %13946 = vmatprep.mubr.f32.mxu1 %v18288_v21  ;;  %v6110_v40 = vsub.f32 %v18478_v41, %v6109_v27 }
 0x576   : > { %15626 = vmatprep.subr.bf16.mxu1 %v15625_v56 }
 0x577   : > { %v6111_v57 = vand.u32 4294901760, %v6110_v40 }
 0x579   : > { %15628 = vmatpush3.bf16.msra.mxu1 %v15625_v56  ;;  %v15641_v12 = vpack.c.bf16 %v6118_v47, %v6111_v57  ;;  %v6132_v56 = vand.u32 4294901760, %v6131_v44  ;;  %v15657_v57 = vpack.c.bf16 %v18402_v59, %v18400_v30  ;;  %v15665_v47 = vpack.c.bf16 %v18432_v52, %v18430_v54 }
 0x57a   : > { %15630 = vmatprep.subr.bf16.mxu1 %v15629_v61  ;;  %v15673_v44 = vpack.c.bf16 %v18481_v0, %v18478_v41  ;;  %v19741_v30 = vand.u32 4294901760, %v18432_v52  ;;  %v18622_v52 = vand.u32 4294901760, %v18522_v37  ;;  %v11846_v0 = vld [vmem:[%s19546_s4 + $0x120] sm:$0xff] }
 0x57b   : > { %v15645_v13 = vpack.c.bf16 %v6132_v56, %v6125_v48  ;;  %v15681_v48 = vpack.c.bf16 %v18520_v49, %v18515_v63 }
 0x57d   : > { %15632 = vmatpush3.bf16.msra.mxu1 %v15629_v61  ;;  %v6145_v61 = vsub.f32 %v18520_v49, %v6144_v8 }
 0x57e   : > { %15634 = vmatprep.subr.bf16.mxu1 %v15633_v45 }
 0x57f   : > { %v6146_v40 = vand.u32 4294901760, %v6145_v61  ;;  %v19736_v61 = vand.u32 4294901760, %v18402_v59 }
 0x581   : > { %15636 = vmatpush3.bf16.msra.mxu1 %v15633_v45  ;;  %v15649_v45 = vpack.c.bf16 %v6146_v40, %v6139_v15  ;;  %v19737_v15 = vand.u32 4294901760, %v18406_v55 }
 0x582   : > { %15638 = vmatprep.subr.bf16.mxu1 %v15637_v24 }
 0x585   : > { %15640 = vmatpush3.bf16.msra.mxu1 %v15637_v24  ;;  %v15661_v24 = vpack.c.bf16 %v18428_v43, %v18426_v31 }
 0x586   : > { %15642 = vmatprep.subr.bf16.mxu1 %v15641_v12 }
 0x589   : > { %15644 = vmatpush3.bf16.msra.mxu1 %v15641_v12  ;;  %v15677_v12 = vpack.c.bf16 %v18500_v62, %v18495_v3 }
 0x58a   : > { %15646 = vmatprep.subr.bf16.mxu1 %v15645_v13 }
 0x58d   : > { %15648 = vmatpush3.bf16.msra.mxu1 %v15645_v13  ;;  %v15721_v13 = vpack.c.bf16 %v19736_v61, %v19735_v22 }
 0x58e   : > { %15650 = vmatprep.subr.bf16.mxu1 %v15649_v45 }
 0x591   : > { %15652 = vmatpush3.bf16.msra.mxu1 %v15649_v45  ;;  %v19740_v45 = vand.u32 4294901760, %v18430_v54  ;;  %v15745_v54 = vpack.c.bf16 %v6144_v8, %v6137_v5  ;;  %v11851_v5 = vld [vmem:[%s19546_s4 + $0x148] sm:$0xff] }
 0x592   : > { %15654 = vmatprep.subr.bf16.mxu1 %v15653_v16 }
 0x593   : > { %v15729_v59 = vpack.c.bf16 %v19741_v30, %v19740_v45 }
 0x594   : > { %13947 = vmatmul.mubr.f32.vlgmr.msra.gmra.mrb[20].mxu1 %v18380_v38 }
 0x595   : > { %15656 = vmatpush3.bf16.msra.mxu1 %v15653_v16  ;;  %13981 = vmatprep.mubr.f32.mxu1 %v18294_v42  ;;  %v19733_v42 = vand.u32 4294901760, %v18370_v32  ;;  %v19738_v32 = vand.u32 4294901760, %v18426_v31  ;;  %v15737_v31 = vpack.c.bf16 %v6116_v34, %v6109_v27  ;;  %v11847_v27 = vld [vmem:[%s19546_s4 + $0x128] sm:$0xff]  ;;  %v7186_v34 = vand.u32 4294901760, %v11846_v0 }
 0x596   : > { %15658 = vmatprep.subr.bf16.mxu1 %v15657_v57  ;;  %v7189_v3 = vand.u32 4294901760, %v11847_v27  ;;  %v7201_v16 = vand.u32 4294901760, %v11851_v5 }
 0x599   : > { %15660 = vmatpush3.bf16.msra.mxu1 %v15657_v57  ;;  %v18686_v57 = vld [vmem:[%s19546_s4 + $0x150] sm:$0xff] }
 0x59a   : > { %15662 = vmatprep.subr.bf16.mxu1 %v15661_v24 }
 0x59d   : > { %15664 = vmatpush3.bf16.msra.mxu1 %v15661_v24  ;;  %v18691_v24 = vld [vmem:[%s19546_s4 + $0x158] sm:$0xff] }
 0x59e   : > { %15666 = vmatprep.subr.bf16.mxu1 %v15665_v47 }
 0x5a1   : > { %15668 = vmatpush3.bf16.msra.mxu1 %v15665_v47  ;;  %v18697_v47 = vld [vmem:[%s19546_s4 + $0x160] sm:$0xff] }
 0x5a2   : > { %15670 = vmatprep.subr.bf16.mxu1 %v15669_v17  ;;  %v7210_v22 = vand.u32 4294901760, %v18697_v47 }
 0x5a5   : > { %15672 = vmatpush3.bf16.msra.mxu1 %v15669_v17  ;;  %v18702_v17 = vld [vmem:[%s19546_s4 + $0x168] sm:$0xff] }
 0x5a6   : > { %15674 = vmatprep.subr.bf16.mxu1 %v15673_v44  ;;  %v7213_v61 = vand.u32 4294901760, %v18702_v17 }
 0x5a9   : > { %15676 = vmatpush3.bf16.msra.mxu1 %v15673_v44 }
 0x5aa   : > { %15678 = vmatprep.subr.bf16.mxu1 %v15677_v12 }
 0x5ad   : > { %15680 = vmatpush3.bf16.msra.mxu1 %v15677_v12 }
 0x5ae   : > { %15682 = vmatprep.subr.bf16.mxu1 %v15681_v48 }
 0x5b1   : > { %15684 = vmatpush3.bf16.msra.mxu1 %v15681_v48 }
 0x5b2   : > { %15686 = vmatprep.subr.bf16.mxu1 %v18313_v25 }
 0x5b4   : > { %13982 = vmatmul.mubr.f32.vlgmr.msra.gmra.mrb[20].mxu1 %v18406_v55  ;;  %v15733_v55 = vpack.c.bf16 %v6102_v6, %v6095_v60  ;;  %v7183_v6 = vand.u32 4294901760, %v11845_v33 }
 0x5b5   : > { %15688 = vmatpush3.bf16.msra.mxu1 %v18313_v25  ;;  %14016 = vmatprep.mubr.f32.mxu1 %v6018_v1  ;;  %v19734_v1 = vand.u32 4294901760, %v18372_v39  ;;  %v19739_v39 = vand.u32 4294901760, %v18428_v43  ;;  %v15741_v43 = vpack.c.bf16 %v6130_v29, %v6123_v28  ;;  %v11848_v28 = vld [vmem:[%s19546_s4 + $0x130] sm:$0xff]  ;;  %v11849_v29 = vld [vmem:[%s19546_s4 + $0x138] sm:$0xff] }
 0x5b6   : > { %15690 = vmatprep.subr.bf16.mxu1 %v18326_v53  ;;  %v7192_v63 = vand.u32 4294901760, %v11848_v28  ;;  %v7195_v49 = vand.u32 4294901760, %v11849_v29  ;;  %v18736_v30 = vsub.f32 %v11845_v33, %v7183_v6 }
 0x5b7   : > { %v15717_v56 = vpack.c.bf16 %v19734_v1, %v19733_v42  ;;  %v15725_v40 = vpack.c.bf16 %v19739_v39, %v19738_v32  ;;  %v7204_v42 = vand.u32 4294901760, %v18686_v57  ;;  %v7207_v1 = vand.u32 4294901760, %v18691_v24  ;;  %v18727_v39 = vld [vmem:[%s19546_s4 + $0x170] sm:$0xff] }
 0x5b8   : > { %v18766_v33 = vsub.f32 %v11849_v29, %v7195_v49 }
 0x5b9   : > { %15692 = vmatpush3.bf16.msra.mxu1 %v18326_v53  ;;  %v18722_v32 = vpack.c.bf16 %v7207_v1, %v7204_v42 }
 0x5ba   : > { %15694 = vmatprep.subr.bf16.mxu1 %v18337_v7  ;;  %v19647_v29 = vand.u32 4294901760, %v18766_v33 }
 0x5bd   : > { %15696 = vmatpush3.bf16.msra.mxu1 %v18337_v7 }
 0x5be   : > { %15698 = vmatprep.subr.bf16.mxu1 %v18347_v35 }
 0x5c1   : > { %15700 = vmatpush3.bf16.msra.mxu1 %v18347_v35 }
 0x5c2   : > { %15702 = vmatprep.subr.bf16.mxu1 %v18375_v26 }
 0x5c5   : > { %15704 = vmatpush3.bf16.msra.mxu1 %v18375_v26 }
 0x5c6   : > { %15706 = vmatprep.subr.bf16.mxu1 %v18388_v51 }
 0x5c9   : > { %15708 = vmatpush3.bf16.msra.mxu1 %v18388_v51 }
 0x5ca   : > { %15710 = vmatprep.subr.bf16.mxu1 %v18412_v2 }
 0x5cd   : > { %15712 = vmatpush3.bf16.msra.mxu1 %v18412_v2 }
 0x5ce   : > { %15714 = vmatprep.subr.bf16.mxu1 %v18440_v36 }
 0x5d1   : > { %15716 = vmatpush3.bf16.msra.mxu1 %v18440_v36 }
 0x5d2   : > { %15718 = vmatprep.subr.bf16.mxu1 %v15717_v56 }
 0x5d4   : > { %14017 = vmatmul.mubr.f32.vlgmr.msra.gmra.mrb[20].mxu1 %v19737_v15 }
 0x5d5   : > { %15720 = vmatpush3.bf16.msra.mxu1 %v15717_v56  ;;  %14051 = vmatprep.mubr.f32.mxu1 %v18288_v21  ;;  %v18714_v56 = vand.u32 4294901760, %v18508_v4 }
 0x5d6   : > { %15722 = vmatprep.subr.bf16.mxu1 %v15721_v13 }
 0x5d9   : > { %15724 = vmatpush3.bf16.msra.mxu1 %v15721_v13 }
 0x5da   : > { %15726 = vmatprep.subr.bf16.mxu1 %v15725_v40 }
 0x5dd   : > { %15728 = vmatpush3.bf16.msra.mxu1 %v15725_v40  ;;  %v18732_v40 = vld [vmem:[%s19546_s4 + $0x178] sm:$0xff] }
 0x5de   : > { %15730 = vmatprep.subr.bf16.mxu1 %v15729_v59 }
 0x5e1   : > { %15732 = vmatpush3.bf16.msra.mxu1 %v15729_v59  ;;  %v18740_v59 = vsub.f32 %v18508_v4, %v18714_v56 }
 0x5e2   : > { %15734 = vmatprep.subr.bf16.mxu1 %v15733_v55 }
 0x5e5   : > { %15736 = vmatpush3.bf16.msra.mxu1 %v15733_v55  ;;  %v18746_v55 = vpack.c.bf16 %v7213_v61, %v7210_v22 }
 0x5e6   : > { %15738 = vmatprep.subr.bf16.mxu1 %v15737_v31 }
 0x5e9   : > { %15740 = vmatpush3.bf16.msra.mxu1 %v15737_v31  ;;  %v7216_v31 = vand.u32 4294901760, %v18727_v39 }
 0x5ea   : > { %15742 = vmatprep.subr.bf16.mxu1 %v15741_v43 }
 0x5ed   : > { %15744 = vmatpush3.bf16.msra.mxu1 %v15741_v43  ;;  %v7219_v43 = vand.u32 4294901760, %v18732_v40 }
 0x5ee   : > { %15746 = vmatprep.subr.bf16.mxu1 %v15745_v54 }
 0x5f1   : > { %15748 = vmatpush3.bf16.msra.mxu1 %v15745_v54 }
 0x5f2   : > { %15750 = vmatprep.subr.bf16.mxu1 %v18313_v25 }
 0x5f4   : > { %14052 = vmatmul.mubr.f32.vlgmr.msra.gmra.mrb[20].mxu1 %v18380_v38 }
 0x5f5   : > { %15752 = vmatpush3.bf16.msra.mxu1 %v18313_v25  ;;  %14086 = vmatprep.mubr.f32.mxu1 %v18288_v21  ;;  %v18628_v21 = vsub.f32 %v18522_v37, %v18622_v52  ;;  %v11842_v25 = vld [vmem:[%s19546_s4 + $0x100] sm:$0xff] }
 0x5f6   : > { %15754 = vmatprep.subr.bf16.mxu1 %v18326_v53  ;;  %v11850_v37 = vld [vmem:[%s19546_s4 + $0x140] sm:$0xff] }
 0x5f7   : > { %v7198_v8 = vand.u32 4294901760, %v11850_v37 }
 0x5f9   : > { %15756 = vmatpush3.bf16.msra.mxu1 %v18326_v53  ;;  %v11843_v53 = vld [vmem:[%s19546_s4 + $0x108] sm:$0xff]  ;;  %v18709_v48 = vpack.c.bf16 %v7201_v16, %v7198_v8 }
 0x5fa   : > { %15758 = vmatprep.subr.bf16.mxu1 %v18337_v7 }
 0x5fd   : > { %15760 = vmatpush3.bf16.msra.mxu1 %v18337_v7  ;;  %v7174_v7 = vand.u32 4294901760, %v11842_v25 }
 0x5fe   : > { %15762 = vmatprep.subr.bf16.mxu1 %v18347_v35 }
 0x5ff   : > { %v18704_v44 = vsub.f32 %v11842_v25, %v7174_v7 }
 0x601   : > { %15764 = vmatpush3.bf16.msra.mxu1 %v18347_v35  ;;  %v7177_v35 = vand.u32 4294901760, %v11843_v53  ;;  %v19643_v13 = vand.u32 4294901760, %v18704_v44 }
 0x602   : > { %15766 = vmatprep.subr.bf16.mxu1 %v18375_v26 }
 0x603   : > { %v18647_v60 = vpack.c.bf16 %v7177_v35, %v7174_v7  ;;  %v18706_v12 = vsub.f32 %v11843_v53, %v7177_v35  ;;  %v7278_v54 = vsub.f32 %v18704_v44, %v19643_v13  ;;  %v19640_v53 = vand.u32 4294901760, %v18736_v30 }
 0x604   : > { %v18760_v7 = vsub.f32 %v11846_v0, %v7186_v34  ;;  %v18762_v35 = vsub.f32 %v11847_v27, %v7189_v3 }
 0x605   : > { %15768 = vmatpush3.bf16.msra.mxu1 %v18375_v26  ;;  %v7256_v26 = vand.u32 4294901760, %v18628_v21  ;;  %v19642_v15 = vand.u32 4294901760, %v18706_v12  ;;  %v7299_v27 = vsub.f32 %v18736_v30, %v19640_v53 }
 0x606   : > { %15770 = vmatprep.subr.bf16.mxu1 %v18388_v51 }
 0x607   : > { %v7257_v41 = vsub.f32 %v18628_v21, %v7256_v26  ;;  %v7285_v4 = vsub.f32 %v18706_v12, %v19642_v15 }
 0x609   : > { %15772 = vmatpush3.bf16.msra.mxu1 %v18388_v51  ;;  %v7180_v51 = vand.u32 4294901760, %v11844_v23  ;;  %v7258_v62 = vand.u32 4294901760, %v7257_v41  ;;  %v7279_v41 = vand.u32 4294901760, %v7278_v54  ;;  %v18791_v54 = vsub.f32 %v11850_v37, %v7198_v8 }
 0x60a   : > { %15774 = vmatprep.subr.bf16.mxu1 %v18412_v2  ;;  %v7327_v37 = vsub.f32 %v18766_v33, %v19647_v29 }
 0x60b   : > { %v18734_v45 = vsub.f32 %v11844_v23, %v7180_v51  ;;  %v18764_v23 = vsub.f32 %v11848_v28, %v7192_v63 }
 0x60c   : > { %v7328_v29 = vand.u32 4294901760, %v7327_v37 }
 0x60d   : > { %15776 = vmatpush3.bf16.msra.mxu1 %v18412_v2  ;;  %v18660_v2 = vpack.c.bf16 %v7183_v6, %v7180_v51  ;;  %v19641_v25 = vand.u32 4294901760, %v18734_v45  ;;  %v19648_v51 = vand.u32 4294901760, %v18740_v59  ;;  %v18774_v6 = vpack.c.bf16 %v7219_v43, %v7216_v31 }
 0x60e   : > { %15778 = vmatprep.subr.bf16.mxu1 %v18440_v36  ;;  %v19644_v28 = vand.u32 4294901760, %v18764_v23 }
 0x60f   : > { %v7292_v0 = vsub.f32 %v18734_v45, %v19641_v25  ;;  %v7300_v25 = vand.u32 4294901760, %v7299_v27 }
 0x611   : > { %15780 = vmatpush3.bf16.msra.mxu1 %v18440_v36  ;;  %v18671_v36 = vpack.c.bf16 %v7189_v3, %v7186_v34  ;;  %v19646_v34 = vand.u32 4294901760, %v18760_v7  ;;  %v19645_v3 = vand.u32 4294901760, %v18762_v35  ;;  %v7293_v53 = vand.u32 4294901760, %v7292_v0 }
 0x612   : > { %15830 = vmatprep.subr.bf16.mxu1 %v18647_v60 }
 0x613   : > { %v7306_v15 = vsub.f32 %v18760_v7, %v19646_v34  ;;  %v7313_v13 = vsub.f32 %v18762_v35, %v19645_v3  ;;  %v15865_v27 = vpack.c.bf16 %v7300_v25, %v7293_v53 }
 0x614   : > { %14087 = vmatmul.mubr.f32.vlgmr.msra.gmra.mrb[20].mxu1 %v18380_v38  ;;  %v18681_v38 = vpack.c.bf16 %v7195_v49, %v7192_v63  ;;  %v7267_v63 = vsub.f32 %v18740_v59, %v19648_v51 }
 0x615   : > { %15832 = vmatpush3.bf16.msra.mxu1 %v18647_v60  ;;  %14187 = vmatprep.mubr.f32.mxu1 %v7258_v62  ;;  %v7286_v62 = vand.u32 4294901760, %v7285_v4  ;;  %v18793_v4 = vsub.f32 %v11851_v5, %v7201_v16  ;;  %v7333_v5 = vand.u32 4294901760, %v18791_v54  ;;  %v18812_v16 = vsub.f32 %v18686_v57, %v7204_v42 }
 0x616   : > { %15834 = vmatprep.subr.bf16.mxu1 %v18660_v2  ;;  %v7268_v0 = vand.u32 4294901760, %v7267_v63  ;;  %v7314_v3 = vand.u32 4294901760, %v7313_v13  ;;  %v18829_v13 = vsub.f32 %v18697_v47, %v7210_v22 }
 0x617   : > { %v15861_v49 = vpack.c.bf16 %v7286_v62, %v7279_v41  ;;  %v7320_v41 = vsub.f32 %v18764_v23, %v19644_v28  ;;  %v7340_v8 = vand.u32 4294901760, %v18793_v4  ;;  %v18815_v62 = vsub.f32 %v18691_v24, %v7207_v1 }
 0x618   : > { %v7307_v28 = vand.u32 4294901760, %v7306_v15  ;;  %v7334_v51 = vsub.f32 %v18791_v54, %v7333_v5  ;;  %v7347_v24 = vand.u32 4294901760, %v18812_v16  ;;  %v18834_v15 = vsub.f32 %v18702_v17, %v7213_v61 }
 0x619   : > { %15836 = vmatpush3.bf16.msra.mxu1 %v18660_v2  ;;  %v7321_v34 = vand.u32 4294901760, %v7320_v41  ;;  %v7341_v57 = vsub.f32 %v18793_v4, %v7340_v8  ;;  %v7354_v42 = vand.u32 4294901760, %v18815_v62  ;;  %v7361_v47 = vand.u32 4294901760, %v18829_v13 }
 0x61a   : > { %15838 = vmatprep.subr.bf16.mxu1 %v18671_v36  ;;  %v15869_v1 = vpack.c.bf16 %v7314_v3, %v7307_v28  ;;  %v7335_v53 = vand.u32 4294901760, %v7334_v51  ;;  %v7368_v22 = vand.u32 4294901760, %v18834_v15  ;;  %v18847_v17 = vsub.f32 %v18727_v39, %v7216_v31 }
 0x61b   : > { %v15873_v25 = vpack.c.bf16 %v7328_v29, %v7321_v34  ;;  %v7342_v63 = vand.u32 4294901760, %v7341_v57  ;;  %v7355_v3 = vsub.f32 %v18815_v62, %v7354_v42  ;;  %v18852_v61 = vsub.f32 %v18732_v40, %v7219_v43 }
 0x61c   : > { %v7362_v29 = vsub.f32 %v18829_v13, %v7361_v47  ;;  %v7369_v41 = vsub.f32 %v18834_v15, %v7368_v22  ;;  %v7375_v39 = vand.u32 4294901760, %v18847_v17 }
 0x61d   : > { %15840 = vmatpush3.bf16.msra.mxu1 %v18671_v36  ;;  %v15877_v51 = vpack.c.bf16 %v7342_v63, %v7335_v53  ;;  %v7356_v28 = vand.u32 4294901760, %v7355_v3  ;;  %v7382_v31 = vand.u32 4294901760, %v18852_v61  ;;  %v15893_v63 = vpack.c.bf16 %v18706_v12, %v18704_v44 }
 0x61e   : > { %15842 = vmatprep.subr.bf16.mxu1 %v18681_v38  ;;  %v7363_v43 = vand.u32 4294901760, %v7362_v29  ;;  %v7370_v37 = vand.u32 4294901760, %v7369_v41  ;;  %v15901_v3 = vpack.c.bf16 %v18762_v35, %v18760_v7  ;;  %v15917_v29 = vpack.c.bf16 %v18834_v15, %v18829_v13 }
 0x61f   : > { %v15921_v41 = vpack.c.bf16 %v18852_v61, %v18847_v17 }
 0x620   : > { %v15885_v57 = vpack.c.bf16 %v7370_v37, %v7363_v43  ;;  %v19744_v43 = vand.u32 4294901760, %v18734_v45  ;;  %v19745_v37 = vand.u32 4294901760, %v18736_v30 }
 0x621   : > { %15844 = vmatpush3.bf16.msra.mxu1 %v18681_v38 }
 0x622   : > { %15846 = vmatprep.subr.bf16.mxu1 %v18709_v48 }
 0x625   : > { %15848 = vmatpush3.bf16.msra.mxu1 %v18709_v48 }
 0x626   : > { %15850 = vmatprep.subr.bf16.mxu1 %v18722_v32 }
 0x629   : > { %15852 = vmatpush3.bf16.msra.mxu1 %v18722_v32 }
 0x62a   : > { %15854 = vmatprep.subr.bf16.mxu1 %v18746_v55 }
 0x62d   : > { %15856 = vmatpush3.bf16.msra.mxu1 %v18746_v55 }
 0x62e   : > { %15858 = vmatprep.subr.bf16.mxu1 %v18774_v6 }
 0x631   : > { %15860 = vmatpush3.bf16.msra.mxu1 %v18774_v6 }
 0x632   : > { %15862 = vmatprep.subr.bf16.mxu1 %v15861_v49 }
 0x634   : > { %14188 = vmatmul.mubr.f32.vlgmr.msra.gmra.mrb[20].mxu1 %v7268_v0  ;;  %v7376_v0 = vsub.f32 %v18847_v17, %v7375_v39 }
 0x635   : > { %15864 = vmatpush3.bf16.msra.mxu1 %v15861_v49  ;;  %14222 = vmatprep.mubr.f32.mxu1 %v18622_v52  ;;  %v7348_v49 = vsub.f32 %v18812_v16, %v7347_v24 }
 0x636   : > { %15866 = vmatprep.subr.bf16.mxu1 %v15865_v27 }
 0x637   : > { %v7349_v34 = vand.u32 4294901760, %v7348_v49  ;;  %v15897_v49 = vpack.c.bf16 %v18736_v30, %v18734_v45  ;;  %v19750_v45 = vand.u32 4294901760, %v18766_v33 }
 0x639   : > { %15868 = vmatpush3.bf16.msra.mxu1 %v15865_v27  ;;  %v15881_v40 = vpack.c.bf16 %v7356_v28, %v7349_v34  ;;  %v7383_v27 = vsub.f32 %v18852_v61, %v7382_v31  ;;  %v15909_v34 = vpack.c.bf16 %v18793_v4, %v18791_v54  ;;  %v15913_v28 = vpack.c.bf16 %v18815_v62, %v18812_v16  ;;  %v16743_v54 = vld [vmem:[%s16947_s12] sm:$0xff]  ;;  %v19754_v61 = vld [vmem:[#allocation11_spill] sm:$0xff] }
 0x63a   : > { %15870 = vmatprep.subr.bf16.mxu1 %v15869_v1 }
 0x63b   : > { %v7384_v53 = vand.u32 4294901760, %v7383_v27  ;;  %v19746_v27 = vand.u32 4294901760, %v18740_v59 }
 0x63d   : > { %15872 = vmatpush3.bf16.msra.mxu1 %v15869_v1  ;;  %v7377_v1 = vand.u32 4294901760, %v7376_v0  ;;  %v15961_v0 = vpack.c.bf16 %v19745_v37, %v19744_v43  ;;  %v11860_v43 = vld [vmem:[%s19547_s5 + $0x50] sm:$0xff]  ;;  %v11861_v37 = vld [vmem:[%s19547_s5 + $0x58] sm:$0xff] }
 0x63e   : > { %15874 = vmatprep.subr.bf16.mxu1 %v15873_v25 }
 0x641   : > { %15876 = vmatpush3.bf16.msra.mxu1 %v15873_v25  ;;  %v15889_v25 = vpack.c.bf16 %v7384_v53, %v7377_v1  ;;  %v19749_v1 = vand.u32 4294901760, %v18764_v23  ;;  %v19764_v53 = vld [vmem:[#allocation12_spill] sm:$0xff] }
 0x642   : > { %15878 = vmatprep.subr.bf16.mxu1 %v15877_v51 }
 0x643   : > { %v15969_v30 = vpack.c.bf16 %v19750_v45, %v19749_v1 }
 0x645   : > { %15880 = vmatpush3.bf16.msra.mxu1 %v15877_v51  ;;  %v15905_v51 = vpack.c.bf16 %v18766_v33, %v18764_v23  ;;  %v15985_v23 = vpack.c.bf16 %v7382_v31, %v7375_v39  ;;  %v19758_v39 = vld [vmem:[#allocation24_spill] sm:$0xff]  ;;  %v19761_v31 = vld [vmem:[#allocation7_spill] sm:$0xff] }
 0x646   : > { %15882 = vmatprep.subr.bf16.mxu1 %v15881_v40 }
 0x649   : > { %15884 = vmatpush3.bf16.msra.mxu1 %v15881_v40 }
 0x64a   : > { %15886 = vmatprep.subr.bf16.mxu1 %v15885_v57 }
 0x64d   : > { %15888 = vmatpush3.bf16.msra.mxu1 %v15885_v57 }
 0x64e   : > { %15890 = vmatprep.subr.bf16.mxu1 %v15889_v25 }
 0x651   : > { %15892 = vmatpush3.bf16.msra.mxu1 %v15889_v25  ;;  %v19765_v25 = vld [vmem:[#allocation14_spill] sm:$0xff] }
 0x652   : > { %15894 = vmatprep.subr.bf16.mxu1 %v15893_v63 }
 0x654   : > { %14223 = vmatmul.mubr.f32.vlgmr.msra.gmra.mrb[20].mxu1 %v18714_v56 }
 0x655   : > { %15896 = vmatpush3.bf16.msra.mxu1 %v15893_v63  ;;  %14257 = vmatprep.mubr.f32.mxu1 %v18628_v21  ;;  %v19742_v21 = vand.u32 4294901760, %v18704_v44  ;;  %v19747_v44 = vand.u32 4294901760, %v18760_v7  ;;  %v15977_v7 = vpack.c.bf16 %v7354_v42, %v7347_v24  ;;  %v19766_v63 = vld [vmem:[#allocation17_spill] sm:$0xff] }
 0x656   : > { %15898 = vmatprep.subr.bf16.mxu1 %v15897_v49 }
 0x659   : > { %15900 = vmatpush3.bf16.msra.mxu1 %v15897_v49  ;;  %v19767_v49 = vld [vmem:[#allocation20_spill] sm:$0xff] }
 0x65a   : > { %15902 = vmatprep.subr.bf16.mxu1 %v15901_v3 }
 0x65d   : > { %15904 = vmatpush3.bf16.msra.mxu1 %v15901_v3  ;;  %v19768_v3 = vld [vmem:[#allocation15_spill] sm:$0xff] }
 0x65e   : > { %15906 = vmatprep.subr.bf16.mxu1 %v15905_v51 }
 0x661   : > { %15908 = vmatpush3.bf16.msra.mxu1 %v15905_v51  ;;  %v19769_v51 = vld [vmem:[#allocation16_spill] sm:$0xff] }
 0x662   : > { %15910 = vmatprep.subr.bf16.mxu1 %v15909_v34 }
 0x665   : > { %15912 = vmatpush3.bf16.msra.mxu1 %v15909_v34  ;;  %v19770_v34 = vld [vmem:[#allocation19_spill] sm:$0xff] }
 0x666   : > { %15914 = vmatprep.subr.bf16.mxu1 %v15913_v28 }
 0x669   : > { %15916 = vmatpush3.bf16.msra.mxu1 %v15913_v28  ;;  %v19771_v28 = vld [vmem:[#allocation22_spill] sm:$0xff] }
 0x66a   : > { %15918 = vmatprep.subr.bf16.mxu1 %v15917_v29 }
 0x66d   : > { %15920 = vmatpush3.bf16.msra.mxu1 %v15917_v29  ;;  %v11858_v29 = vld [vmem:[%s19547_s5 + $0x40] sm:$0xff] }
 0x66e   : > { %15922 = vmatprep.subr.bf16.mxu1 %v15921_v41 }
 0x671   : > { %15924 = vmatpush3.bf16.msra.mxu1 %v15921_v41  ;;  %v11859_v41 = vld [vmem:[%s19547_s5 + $0x48] sm:$0xff] }
 0x672   : > { %15926 = vmatprep.subr.bf16.mxu1 %v18647_v60 }
 0x674   : > { %14258 = vmatmul.mubr.f32.vlgmr.msra.gmra.mrb[20].mxu1 %v18740_v59  ;;  %v15973_v59 = vpack.c.bf16 %v7340_v8, %v7333_v5 }
 0x675   : > { %15928 = vmatpush3.bf16.msra.mxu1 %v18647_v60  ;;  %14292 = vmatprep.mubr.f32.mxu1 %v7256_v26  ;;  %v19743_v26 = vand.u32 4294901760, %v18706_v12  ;;  %v19748_v12 = vand.u32 4294901760, %v18762_v35  ;;  %v15981_v35 = vpack.c.bf16 %v7368_v22, %v7361_v47 }
 0x676   : > { %15930 = vmatprep.subr.bf16.mxu1 %v18660_v2 }
 0x677   : > { %v15957_v40 = vpack.c.bf16 %v19743_v26, %v19742_v21  ;;  %v15965_v57 = vpack.c.bf16 %v19748_v12, %v19747_v44  ;;  %v9073_v21 = vand.u32 4294901760, %v11858_v29  ;;  %v9076_v26 = vand.u32 4294901760, %v11859_v41  ;;  %v11862_v12 = vld [vmem:[%s19547_s5 + $0x60] sm:$0xff] }
 0x678   : > { %v9085_v1 = vand.u32 4294901760, %v11862_v12 }
 0x679   : > { %15932 = vmatpush3.bf16.msra.mxu1 %v18660_v2 }
 0x67a   : > { %15934 = vmatprep.subr.bf16.mxu1 %v18671_v36 }
 0x67d   : > { %15936 = vmatpush3.bf16.msra.mxu1 %v18671_v36 }
 0x67e   : > { %15938 = vmatprep.subr.bf16.mxu1 %v18681_v38 }
 0x681   : > { %15940 = vmatpush3.bf16.msra.mxu1 %v18681_v38 }
 0x682   : > { %15942 = vmatprep.subr.bf16.mxu1 %v18709_v48 }
 0x685   : > { %15944 = vmatpush3.bf16.msra.mxu1 %v18709_v48 }
 0x686   : > { %15946 = vmatprep.subr.bf16.mxu1 %v18722_v32 }
 0x689   : > { %15948 = vmatpush3.bf16.msra.mxu1 %v18722_v32 }
 0x68a   : > { %15950 = vmatprep.subr.bf16.mxu1 %v18746_v55 }
 0x68d   : > { %15952 = vmatpush3.bf16.msra.mxu1 %v18746_v55 }
 0x68e   : > { %15954 = vmatprep.subr.bf16.mxu1 %v18774_v6 }
 0x691   : > { %15956 = vmatpush3.bf16.msra.mxu1 %v18774_v6 }
 0x692   : > { %15958 = vmatprep.subr.bf16.mxu1 %v15957_v40 }
 0x694   : > { %14293 = vmatmul.mubr.f32.vlgmr.msra.gmra.mrb[20].mxu1 %v19746_v27  ;;  %v9082_v27 = vand.u32 4294901760, %v11861_v37 }
 0x695   : > { %15960 = vmatpush3.bf16.msra.mxu1 %v15957_v40  ;;  %14327 = vmatprep.mubr.f32.mxu1 %v18622_v52  ;;  %v19046_v40 = vpack.c.bf16 %v9076_v26, %v9073_v21 }
 0x696   : > { %15962 = vmatprep.subr.bf16.mxu1 %v15961_v0 }
 0x699   : > { %15964 = vmatpush3.bf16.msra.mxu1 %v15961_v0  ;;  %v9079_v0 = vand.u32 4294901760, %v11860_v43 }
 0x69a   : > { %15966 = vmatprep.subr.bf16.mxu1 %v15965_v57 }
 0x69b   : > { %v19056_v44 = vpack.c.bf16 %v9082_v27, %v9079_v0 }
 0x69d   : > { %15968 = vmatpush3.bf16.msra.mxu1 %v15965_v57  ;;  %v11863_v57 = vld [vmem:[%s19547_s5 + $0x68] sm:$0xff] }
 0x69e   : > { %15970 = vmatprep.subr.bf16.mxu1 %v15969_v30  ;;  %v9088_v45 = vand.u32 4294901760, %v11863_v57 }
 0x6a1   : > { %15972 = vmatpush3.bf16.msra.mxu1 %v15969_v30  ;;  %v19066_v30 = vpack.c.bf16 %v9088_v45, %v9085_v1 }
 0x6a2   : > { %15974 = vmatprep.subr.bf16.mxu1 %v15973_v59 }
 0x6a5   : > { %15976 = vmatpush3.bf16.msra.mxu1 %v15973_v59  ;;  %v9187_v59 = vsub.f32 %v11858_v29, %v9073_v21 }
 0x6a6   : > { %15978 = vmatprep.subr.bf16.mxu1 %v15977_v7 }
 0x6a9   : > { %15980 = vmatpush3.bf16.msra.mxu1 %v15977_v7  ;;  %v9194_v7 = vsub.f32 %v11859_v41, %v9076_v26 }
 0x6aa   : > { %15982 = vmatprep.subr.bf16.mxu1 %v15981_v35 }
 0x6ad   : > { %15984 = vmatpush3.bf16.msra.mxu1 %v15981_v35  ;;  %v11864_v35 = vld [vmem:[%s19547_s5 + $0x70] sm:$0xff] }
 0x6ae   : > { %15986 = vmatprep.subr.bf16.mxu1 %v15985_v23 }
 0x6b1   : > { %15988 = vmatpush3.bf16.msra.mxu1 %v15985_v23  ;;  %v11865_v23 = vld [vmem:[%s19547_s5 + $0x78] sm:$0xff] }
 0x6b2   : > { %15990 = vmatprep.subr.bf16.mxu1 %v18647_v60 }
 0x6b4   : > { %14328 = vmatmul.mubr.f32.vlgmr.msra.gmra.mrb[20].mxu1 %v18714_v56 }
 0x6b5   : > { %15992 = vmatpush3.bf16.msra.mxu1 %v18647_v60  ;;  %14362 = vmatprep.mubr.f32.mxu1 %v18622_v52 }
 0x6b6   : > { %15994 = vmatprep.subr.bf16.mxu1 %v18660_v2 }
 0x6b9   : > { %15996 = vmatpush3.bf16.msra.mxu1 %v18660_v2 }
 0x6ba   : > { %15998 = vmatprep.subr.bf16.mxu1 %v18671_v36 }
 0x6bd   : > { %16000 = vmatpush3.bf16.msra.mxu1 %v18671_v36 }
 0x6be   : > { %16002 = vmatprep.subr.bf16.mxu1 %v18681_v38 }
 0x6c1   : > { %16004 = vmatpush3.bf16.msra.mxu1 %v18681_v38 }
 0x6c2   : > { %16006 = vmatprep.subr.bf16.mxu1 %v18709_v48 }
 0x6c5   : > { %16008 = vmatpush3.bf16.msra.mxu1 %v18709_v48  ;;  %v16742_v48 = vld [vmem:[%s16947_s12 + $0x8] sm:$0xff] }
 0x6c6   : > { %16010 = vmatprep.subr.bf16.mxu1 %v18722_v32 }
 0x6c9   : > { %16012 = vmatpush3.bf16.msra.mxu1 %v18722_v32 }
 0x6ca   : > { %16014 = vmatprep.subr.bf16.mxu1 %v18746_v55 }
 0x6cd   : > { %16016 = vmatpush3.bf16.msra.mxu1 %v18746_v55 }
 0x6ce   : > { %16018 = vmatprep.subr.bf16.mxu1 %v18774_v6 }
 0x6d1   : > { %16020 = vmatpush3.bf16.msra.mxu1 %v18774_v6 }
 0x6d4   : > { %14363 = vmatmul.mubr.f32.vlgmr.msra.gmra.mrb[20].mxu1 %v18714_v56 }
 0x7a7   : > { %v14364_v52 = vpop.f32.mrb[20].mxu1 }
 0x7a8   : > { %vm7860_vm7 = vcmp.ge.f32.partialorder %v14364_v52, 0.0  ;;  %v7862_v60 = vmul.f32 0.1, %v14364_v52  ;;  %v7847_v2 = vpop.f32.mrb[21].mxu1 }
 0x7a9   : > { %vm7859_vm8 = vcmp.ge.f32.partialorder %v7847_v2, 0.0  ;;  %v7861_v36 = vmul.f32 0.1, %v7847_v2 }
 0x7aa   : > { %v7864_v38 = vsel %vm7860_vm7, %v14364_v52, %v7862_v60  ;;  %v9091_v52 = vand.u32 4294901760, %v11864_v35  ;;  %v9094_v60 = vand.u32 4294901760, %v11865_v23 }
 0x7ab   : > { %v7866_v32 = vsub.f32 %v7864_v38, %v16742_v48  ;;  %v7863_v33 = vsel %vm7859_vm8, %v7847_v2, %v7861_v36  ;;  %v9188_v2 = vand.u32 4294901760, %v9187_v59  ;;  %v9195_v36 = vand.u32 4294901760, %v9194_v7 }
 0x7ac   : > { %v7865_v4 = vsub.f32 %v7863_v33, %v16743_v54  ;;  %v19076_v38 = vpack.c.bf16 %v9094_v60, %v9091_v52  ;;  %v9201_v33 = vsub.f32 %v11860_v43, %v9079_v0  ;;  %v9208_v54 = vsub.f32 %v11861_v37, %v9082_v27 }
 0x7ad   : > { %v7871_v5 = vand.u32 4294901760, %v7866_v32  ;;  %v9189_v48 = vsub.f32 %v9187_v59, %v9188_v2  ;;  %v19083_v29 = vpack.c.bf16 %v9195_v36, %v9188_v2 }
 0x7ae   : > { %v7868_v55 = vand.u32 4294901760, %v7865_v4 }
 0x7af   : > { %v7983_v8 = vsub.f32 %v7866_v32, %v7871_v5  ;;  %v9196_v32 = vsub.f32 %v9194_v7, %v9195_v36 }
 0x7b0   : > { %v18961_v16 = vpack.c.bf16 %v7871_v5, %v7868_v55  ;;  %v7976_v6 = vsub.f32 %v7865_v4, %v7868_v55  ;;  %v9190_v4 = vand.u32 4294901760, %v9189_v48  ;;  %v9202_v55 = vand.u32 4294901760, %v9201_v33 }
 0x7b1   : > { %v7984_v62 = vand.u32 4294901760, %v7983_v8  ;;  %v9197_v5 = vand.u32 4294901760, %v9196_v32 }
 0x7b2   : > { %v7977_v56 = vand.u32 4294901760, %v7976_v6  ;;  %v18963_v24 = vpack.c.bf16 %v7983_v8, %v7976_v6  ;;  %16022 = vmatprep.subr.bf16.mxu0 %v18961_v16 }
 0x7b3   : > { %v7985_v42 = vsub.f32 %v7983_v8, %v7984_v62  ;;  %16024 = vmatpush3.bf16.msra.mxu0 %v18961_v16  ;;  %v9209_v8 = vand.u32 4294901760, %v9208_v54 }
 0x7b4   : > { %v7978_v13 = vsub.f32 %v7976_v6, %v7977_v56  ;;  %v18967_v15 = vpack.c.bf16 %v7984_v62, %v7977_v56  ;;  %v19080_v6 = vpack.c.bf16 %v9197_v5, %v9190_v4  ;;  %v9203_v62 = vsub.f32 %v9201_v33, %v9202_v55 }
 0x7b5   : > { %v7986_v47 = vand.u32 4294901760, %v7985_v42  ;;  %v9215_v56 = vsub.f32 %v11862_v12, %v9085_v1  ;;  %v9222_v42 = vsub.f32 %v11863_v57, %v9088_v45  ;;  %v19085_v41 = vpack.c.bf16 %v9209_v8, %v9202_v55 }
 0x7b6   : > { %v7979_v22 = vand.u32 4294901760, %v7978_v13  ;;  %14370 = vmatmul.mubr.f32.vlgmr.msra.gmra.mrb[10].mxu0 %v16996_v46  ;;  %v19751_v46 = vld [vmem:[#allocation6_spill] sm:$0xff]  ;;  %v9210_v13 = vsub.f32 %v9208_v54, %v9209_v8 }
 0x7b7   : > { %14372 = vmatprep.mubr.f32.mxu0 %v17003_v50  ;;  %v19752_v50 = vld [vmem:[#allocation9_spill] sm:$0xff] }
 0x7b8   : > { %v18971_v17 = vpack.c.bf16 %v7986_v47, %v7979_v22  ;;  %v9204_v47 = vand.u32 4294901760, %v9203_v62  ;;  %v9216_v22 = vand.u32 4294901760, %v9215_v56 }
 0x7ba   : > { %14373 = vmatmul.mubr.f32.gmra.mrb[12].mxu0 %v17020_v58  ;;  %16026 = vmatprep.subr.bf16.mxu0 %v18971_v17  ;;  %v19753_v58 = vld [vmem:[#allocation10_spill] sm:$0xff] }
 0x7bb   : > { %16028 = vmatpush3.bf16.msra.mxu0 %v18971_v17  ;;  %14379 = vmatprep.mubr.f32.mxu0 %v16917_v9 }
 0x7bc   : > { %16030 = vmatprep.subr.bf16.mxu0 %v18963_v24 }
 0x7be   : > { %14380 = vmatmul.mubr.f32.vlgmr.msra.gmra.mrb[10].mxu0 %v16919_v10 }
 0x7bf   : > { %16032 = vmatpush3.bf16.msra.mxu0 %v18963_v24  ;;  %14382 = vmatprep.mubr.f32.mxu0 %v16921_v11 }
 0x7c0   : > { %16034 = vmatprep.subr.bf16.mxu0 %v18961_v16 }
 0x7c2   : > { %14383 = vmatmul.mubr.f32.gmra.mrb[12].mxu0 %v16927_v14 }
 0x7c3   : > { %14389 = vmatprep.mubr.f32.mxu0 %v16933_v18  ;;  %v19755_v18 = vld [vmem:[#allocation13_spill] sm:$0xff] }
 0x7c6   : > { %14390 = vmatmul.mubr.f32.vlgmr.msra.gmra.mrb[10].mxu0 %v16936_v19  ;;  %v19756_v19 = vld [vmem:[#allocation21_spill] sm:$0xff] }
 0x7c7   : > { %16036 = vmatpush3.bf16.msra.mxu0 %v18961_v16  ;;  %14392 = vmatprep.mubr.f32.mxu0 %v16939_v20  ;;  %v19757_v20 = vld [vmem:[#allocation23_spill] sm:$0xff] }
 0x7c8   : > { %16038 = vmatprep.subr.bf16.mxu0 %v18967_v15 }
 0x7ca   : > { %14393 = vmatmul.mubr.f32.gmra.mrb[12].mxu0 %v19751_v46  ;;  %v9223_v46 = vand.u32 4294901760, %v9222_v42 }
 0x7cb   : > { %14399 = vmatprep.mubr.f32.mxu0 %v19752_v50  ;;  %v9211_v50 = vand.u32 4294901760, %v9210_v13 }
 0x7cc   : > { %v19087_v21 = vpack.c.bf16 %v9223_v46, %v9216_v22 }
 0x7ce   : > { %14400 = vmatmul.mubr.f32.vlgmr.msra.gmra.mrb[10].mxu0 %v19753_v58  ;;  %v9217_v58 = vsub.f32 %v9215_v56, %v9216_v22 }
 0x7cf   : > { %16040 = vmatpush3.bf16.msra.mxu0 %v18967_v15  ;;  %14402 = vmatprep.mubr.f32.mxu0 %v19754_v61  ;;  %v9224_v61 = vsub.f32 %v9222_v42, %v9223_v46 }
 0x7d0   : > { %16042 = vmatprep.subr.bf16.mxu0 %v18961_v16 }
 0x7d2   : > { %14403 = vmatmul.mubr.f32.gmra.mrb[12].mxu0 %v19755_v18  ;;  %v9229_v18 = vsub.f32 %v11864_v35, %v9091_v52 }
 0x7d3   : > { %14409 = vmatprep.mubr.f32.mxu0 %v16917_v9 }
 0x7d6   : > { %14410 = vmatmul.mubr.f32.vlgmr.msra.gmra.mrb[10].mxu0 %v16919_v10 }
 0x7d7   : > { %16044 = vmatpush3.bf16.msra.mxu0 %v18961_v16  ;;  %14412 = vmatprep.mubr.f32.mxu0 %v16921_v11 }
 0x7d8   : > { %16046 = vmatprep.subr.bf16.mxu0 %v18961_v16 }
 0x7da   : > { %14413 = vmatmul.mubr.f32.gmra.mrb[12].mxu0 %v16927_v14 }
 0x7db   : > { %14419 = vmatprep.mubr.f32.mxu0 %v16917_v9  ;;  %v19759_v9 = vld [vmem:[#allocation25_spill] sm:$0xff] }
 0x7de   : > { %14420 = vmatmul.mubr.f32.vlgmr.msra.gmra.mrb[10].mxu0 %v16919_v10  ;;  %v19760_v10 = vld [vmem:[#allocation5_spill] sm:$0xff] }
 0x7df   : > { %16048 = vmatpush3.bf16.msra.mxu0 %v18961_v16  ;;  %14422 = vmatprep.mubr.f32.mxu0 %v16921_v11  ;;  %v19762_v11 = vld [vmem:[#allocation8_spill] sm:$0xff] }
 0x7e0   : > { %16050 = vmatprep.subr.bf16.mxu0 %v18971_v17 }
 0x7e2   : > { %14423 = vmatmul.mubr.f32.gmra.mrb[12].mxu0 %v16927_v14  ;;  %v19763_v14 = vld [vmem:[#allocation18_spill] sm:$0xff] }
 0x7e3   : > { %14429 = vmatprep.mubr.f32.mxu0 %v19756_v19  ;;  %v9236_v19 = vsub.f32 %v11865_v23, %v9094_v60 }
 0x7e6   : > { %14430 = vmatmul.mubr.f32.vlgmr.msra.gmra.mrb[14].mxu0 %v19757_v20  ;;  %v16089_v20 = vpack.c.bf16 %v9211_v50, %v9204_v47 }
 0x7e7   : > { %16052 = vmatpush3.bf16.msra.mxu0 %v18971_v17  ;;  %14432 = vmatprep.mubr.f32.mxu0 %v19758_v39  ;;  %v9218_v39 = vand.u32 4294901760, %v9217_v58 }
 0x7e8   : > { %16054 = vmatprep.subr.bf16.mxu0 %v18963_v24 }
 0x7ea   : > { %14433 = vmatmul.mubr.f32.gmra.mrb[16].mxu0 %v19759_v9  ;;  %v9225_v9 = vand.u32 4294901760, %v9224_v61  ;;  %v8455_v61 = vld [vmem:[%s19547_s5] sm:$0xff] }
 0x7eb   : > { %14439 = vmatprep.mubr.f32.mxu0 %v19760_v10 }
 0x7ee   : > { %14440 = vmatmul.mubr.f32.vlgmr.msra.gmra.mrb[14].mxu0 %v19761_v31 }
 0x7ef   : > { %16056 = vmatpush3.bf16.msra.mxu0 %v18963_v24  ;;  %14442 = vmatprep.mubr.f32.mxu0 %v19762_v11 }
 0x7f0   : > { %16058 = vmatprep.subr.bf16.mxu0 %v18961_v16 }
 0x7f2   : > { %14443 = vmatmul.mubr.f32.gmra.mrb[16].mxu0 %v19763_v14 }
 0x7f3   : > { %14449 = vmatprep.mubr.f32.mxu0 %v19764_v53 }
 0x7f6   : > { %14450 = vmatmul.mubr.f32.vlgmr.msra.gmra.mrb[14].mxu0 %v19765_v25 }
 0x7f7   : > { %16060 = vmatpush3.bf16.msra.mxu0 %v18961_v16  ;;  %14452 = vmatprep.mubr.f32.mxu0 %v19766_v63 }
 0x7f8   : > { %16062 = vmatprep.subr.bf16.mxu0 %v18967_v15 }
 0x7fa   : > { %14453 = vmatmul.mubr.f32.gmra.mrb[16].mxu0 %v19767_v49 }
 0x7fb   : > { %14459 = vmatprep.mubr.f32.mxu0 %v19768_v3  ;;  %v16101_v3 = vpack.c.bf16 %v9194_v7, %v9187_v59 }
 0x7fe   : > { %14460 = vmatmul.mubr.f32.vlgmr.msra.gmra.mrb[14].mxu0 %v19769_v51  ;;  %v16105_v51 = vpack.c.bf16 %v9208_v54, %v9201_v33 }
 0x7ff   : > { %16064 = vmatpush3.bf16.msra.mxu0 %v18967_v15  ;;  %14462 = vmatprep.mubr.f32.mxu0 %v19770_v34  ;;  %v16109_v34 = vpack.c.bf16 %v9222_v42, %v9215_v56 }
 0x800   : > { %16066 = vmatprep.subr.bf16.mxu0 %v18961_v16 }
 0x802   : > { %14463 = vmatmul.mubr.f32.gmra.mrb[16].mxu0 %v19771_v28  ;;  %v16113_v28 = vpack.c.bf16 %v9236_v19, %v9229_v18 }
 0x803   : > { %14469 = vmatprep.mubr.f32.mxu0 %v19760_v10 }
 0x806   : > { %14470 = vmatmul.mubr.f32.vlgmr.msra.gmra.mrb[14].mxu0 %v19761_v31 }
 0x807   : > { %16068 = vmatpush3.bf16.msra.mxu0 %v18961_v16  ;;  %14472 = vmatprep.mubr.f32.mxu0 %v19762_v11 }
 0x808   : > { %16070 = vmatprep.subr.bf16.mxu0 %v19046_v40 }
 0x80a   : > { %14473 = vmatmul.mubr.f32.gmra.mrb[16].mxu0 %v19763_v14 }
 0x80b   : > { %14479 = vmatprep.mubr.f32.mxu0 %v19760_v10  ;;  %v9230_v10 = vand.u32 4294901760, %v9229_v18 }
 0x80e   : > { %14480 = vmatmul.mubr.f32.vlgmr.msra.gmra.mrb[14].mxu0 %v19761_v31  ;;  %v9237_v31 = vand.u32 4294901760, %v9236_v19 }
 0x80f   : > { %14482 = vmatprep.mubr.f32.mxu0 %v19762_v11  ;;  %16072 = vmatpush3.bf16.msra.mxu0 %v19046_v40  ;;  %v16093_v11 = vpack.c.bf16 %v9225_v9, %v9218_v39  ;;  %v8457_v39 = vld [vmem:[%s19547_s5 + $0x10] sm:$0xff]  ;;  %v8458_v9 = vld [vmem:[%s19547_s5 + $0x18] sm:$0xff] }
 0x810   : > { %16074 = vmatprep.subr.bf16.mxu0 %v19056_v44  ;;  %v9238_v53 = vsub.f32 %v9236_v19, %v9237_v31  ;;  %v19089_v26 = vpack.c.bf16 %v9237_v31, %v9230_v10 }
 0x812   : > { %14483 = vmatmul.mubr.f32.gmra.mrb[16].mxu0 %v19763_v14  ;;  %v9231_v14 = vsub.f32 %v9229_v18, %v9230_v10  ;;  %v9239_v63 = vand.u32 4294901760, %v9238_v53  ;;  %v8456_v18 = vld [vmem:[%s19547_s5 + $0x8] sm:$0xff]  ;;  %v9760_v53 = vand.u32 4294901760, %v8458_v9 }
 0x813   : > { %16076 = vmatpush3.bf16.msra.mxu0 %v19056_v44  ;;  %v9754_v19 = vand.u32 4294901760, %v8456_v18 }
 0x814   : > { %16078 = vmatprep.subr.bf16.mxu0 %v19066_v30  ;;  %v9232_v25 = vand.u32 4294901760, %v9231_v14  ;;  %v9757_v14 = vand.u32 4294901760, %v8457_v39 }
 0x815   : > { %v19170_v31 = vsub.f32 %v8456_v18, %v9754_v19 }
 0x816   : > { %v16097_v49 = vpack.c.bf16 %v9239_v63, %v9232_v25  ;;  %v8459_v63 = vld [vmem:[%s19547_s5 + $0x20] sm:$0xff] }
 0x817   : > { %16080 = vmatpush3.bf16.msra.mxu0 %v19066_v30 }
 0x818   : > { %16082 = vmatprep.subr.bf16.mxu0 %v19076_v38 }
 0x81b   : > { %16084 = vmatpush3.bf16.msra.mxu0 %v19076_v38 }
 0x81c   : > { %16086 = vmatprep.subr.bf16.mxu0 %v19080_v6 }
 0x8b1   : > { %v19091_v43 = vpop.f32.mrb[10].mxu0 }
 0x8b2   : > { %v19093_v37 = vpop.f32.mrb[11].mxu0 }
 0x8b5   : > { %v19095_v0 = vpop.f32.mrb[12].mxu0 }
 0x8b6   : > { %v19097_v27 = vpop.f32.mrb[13].mxu0 }
 0x8e1   : > { %v14481_v12 = vpop.f32.mrb[14].mxu0 }
 0x8e2   : > { %v9064_v57 = vsel %vm1479_vm1, %v14481_v12, 0  ;;  %v9029_v1 = vpop.f32.mrb[15].mxu0 }
 0x8e3   : > { %v19100_v45 = vand.u32 4294901760, %v9064_v57  ;;  %v9061_v59 = vsel %vm1479_vm1, %v9029_v1, 0 }
 0x8e4   : > { %v19103_v7 = vand.u32 4294901760, %v9061_v59 }
 0x8e5   : > { %v9156_v35 = vsub.f32 %v9064_v57, %v19100_v45  ;;  %v14484_v23 = vpop.f32.mrb[16].mxu0 }
 0x8e6   : > { %v9146_v52 = vsub.f32 %v9061_v59, %v19103_v7  ;;  %v9070_v60 = vsel %vm1479_vm1, %v14484_v23, 0  ;;  %v9041_v2 = vpop.f32.mrb[17].mxu0 }
 0x8e7   : > { %v9157_v36 = vand.u32 4294901760, %v9156_v35  ;;  %v19108_v48 = vand.u32 4294901760, %v9070_v60  ;;  %v9067_v32 = vsel %vm1479_vm1, %v9041_v2, 0 }
 0x8e8   : > { %v9147_v33 = vand.u32 4294901760, %v9146_v52  ;;  %v19111_v54 = vand.u32 4294901760, %v9067_v32 }
 0x8e9   : > { %v9158_v4 = vsub.f32 %v9156_v35, %v9157_v36  ;;  %v9176_v5 = vsub.f32 %v9070_v60, %v19108_v48 }
 0x8ea   : > { %v9166_v55 = vsub.f32 %v9067_v32, %v19111_v54  ;;  %v9148_v8 = vsub.f32 %v9146_v52, %v9147_v33 }
 0x8eb   : > { %v9177_v62 = vand.u32 4294901760, %v9176_v5  ;;  %v9159_v13 = vand.u32 4294901760, %v9158_v4 }
 0x8ec   : > { %v9167_v56 = vand.u32 4294901760, %v9166_v55  ;;  %v9149_v42 = vand.u32 4294901760, %v9148_v8 }
 0x8ed   : > { %v9178_v47 = vsub.f32 %v9176_v5, %v9177_v62 }
 0x8ee   : > { %14501 = vmatprep.mubr.f32.mxu0 %v9149_v42  ;;  %v9168_v22 = vsub.f32 %v9166_v55, %v9167_v56 }
 0x8ef   : > { %14502 = vmatmul.mubr.f32.vlgmr.msra.gmra.mrb[18].mxu0 %v9159_v13  ;;  %v9179_v50 = vand.u32 4294901760, %v9178_v47 }
 0x8f0   : > { %16088 = vmatpush3.bf16.msra.mxu0 %v19080_v6  ;;  %v9169_v46 = vand.u32 4294901760, %v9168_v22  ;;  %v9739_v6 = vsel %vm1479_vm1, %v19093_v37, 0 }
 0x8f1   : > { %16090 = vmatprep.subr.bf16.mxu0 %v16089_v20  ;;  %v19144_v58 = vand.u32 4294901760, %v9739_v6 }
 0x8f2   : > { %14504 = vmatprep.mubr.f32.mxu0 %v9169_v46 }
 0x8f3   : > { %14505 = vmatmul.mubr.f32.gmra.mrb[20].mxu0 %v9179_v50 }
 0x8f4   : > { %16092 = vmatpush3.bf16.msra.mxu0 %v16089_v20  ;;  %14523 = vmatprep.mubr.f32.mxu0 %v19103_v7  ;;  %v19157_v20 = vsub.f32 %v9739_v6, %v19144_v58 }
 0x8f5   : > { %16094 = vmatprep.subr.bf16.mxu0 %v16093_v11 }
 0x8f6   : > { %v9825_v25 = vand.u32 4294901760, %v19157_v20 }
 0x8f8   : > { %16096 = vmatpush3.bf16.msra.mxu0 %v16093_v11 }
 0x8f9   : > { %16098 = vmatprep.subr.bf16.mxu0 %v16097_v49 }
 0x8fc   : > { %16100 = vmatpush3.bf16.msra.mxu0 %v16097_v49 }
 0x8fd   : > { %16102 = vmatprep.subr.bf16.mxu0 %v16101_v3 }
 0x8ff   : > { %14524 = vmatmul.mubr.f32.vlgmr.msra.gmra.mrb[18].mxu0 %v19100_v45 }
 0x900   : > { %14526 = vmatprep.mubr.f32.mxu0 %v19111_v54  ;;  %16104 = vmatpush3.bf16.msra.mxu0 %v16101_v3  ;;  %v9748_v3 = vsel %vm1479_vm1, %v19095_v0, 0 }
 0x901   : > { %16106 = vmatprep.subr.bf16.mxu0 %v16105_v51  ;;  %v19212_v57 = vand.u32 4294901760, %v9748_v3 }
 0x903   : > { %14527 = vmatmul.mubr.f32.gmra.mrb[20].mxu0 %v19108_v48 }
 0x904   : > { %16108 = vmatpush3.bf16.msra.mxu0 %v16105_v51  ;;  %14545 = vmatprep.mubr.f32.mxu0 %v9146_v52  ;;  %v9745_v51 = vsel %vm1479_vm1, %v19097_v27, 0  ;;  %v9826_v27 = vsub.f32 %v19157_v20, %v9825_v25 }
 0x905   : > { %16110 = vmatprep.subr.bf16.mxu0 %v16109_v34  ;;  %v19204_v0 = vand.u32 4294901760, %v9745_v51 }
 0x906   : > { %v9827_v32 = vand.u32 4294901760, %v9826_v27 }
 0x908   : > { %16112 = vmatpush3.bf16.msra.mxu0 %v16109_v34  ;;  %v8461_v34 = vld [vmem:[%s19547_s5 + $0x30] sm:$0xff] }
 0x909   : > { %16114 = vmatprep.subr.bf16.mxu0 %v16113_v28  ;;  %v9769_v1 = vand.u32 4294901760, %v8461_v34 }
 0x90b   : > { %v19252_v42 = vsub.f32 %v8461_v34, %v9769_v1 }
 0x90c   : > { %16116 = vmatpush3.bf16.msra.mxu0 %v16113_v28  ;;  %v8462_v28 = vld [vmem:[%s19547_s5 + $0x38] sm:$0xff] }
 0x90d   : > { %16118 = vmatprep.subr.bf16.mxu0 %v19046_v40  ;;  %v9772_v59 = vand.u32 4294901760, %v8462_v28 }
 0x90f   : > { %14546 = vmatmul.mubr.f32.vlgmr.msra.gmra.mrb[18].mxu0 %v9156_v35  ;;  %v19240_v4 = vpack.c.bf16 %v9772_v59, %v9769_v1  ;;  %v19254_v13 = vsub.f32 %v8462_v28, %v9772_v59 }
 0x910   : > { %14548 = vmatprep.mubr.f32.mxu0 %v9166_v55  ;;  %16120 = vmatpush3.bf16.msra.mxu0 %v19046_v40 }
 0x911   : > { %16122 = vmatprep.subr.bf16.mxu0 %v19056_v44 }
 0x913   : > { %14549 = vmatmul.mubr.f32.gmra.mrb[20].mxu0 %v9176_v5 }
 0x914   : > { %16124 = vmatpush3.bf16.msra.mxu0 %v19056_v44  ;;  %14567 = vmatprep.mubr.f32.mxu0 %v9147_v33 }
 0x915   : > { %16126 = vmatprep.subr.bf16.mxu0 %v19066_v30 }
 0x918   : > { %16128 = vmatpush3.bf16.msra.mxu0 %v19066_v30 }
 0x919   : > { %16130 = vmatprep.subr.bf16.mxu0 %v19076_v38 }
 0x91c   : > { %16132 = vmatpush3.bf16.msra.mxu0 %v19076_v38 }
 0x91d   : > { %16134 = vmatprep.subr.bf16.mxu0 %v19083_v29 }
 0x91f   : > { %14568 = vmatmul.mubr.f32.vlgmr.msra.gmra.mrb[18].mxu0 %v9157_v36  ;;  %v19233_v36 = vsub.f32 %v9745_v51, %v19204_v0 }
 0x920   : > { %14570 = vmatprep.mubr.f32.mxu0 %v9167_v56  ;;  %16136 = vmatpush3.bf16.msra.mxu0 %v19083_v29 }
 0x921   : > { %16138 = vmatprep.subr.bf16.mxu0 %v19085_v41  ;;  %v9845_v47 = vand.u32 4294901760, %v19233_v36 }
 0x923   : > { %14571 = vmatmul.mubr.f32.gmra.mrb[20].mxu0 %v9177_v62 }
 0x924   : > { %16140 = vmatpush3.bf16.msra.mxu0 %v19085_v41  ;;  %14589 = vmatprep.mubr.f32.mxu0 %v19103_v7  ;;  %v9873_v41 = vand.u32 4294901760, %v19170_v31 }
 0x925   : > { %16142 = vmatprep.subr.bf16.mxu0 %v19087_v21 }
 0x926   : > { %v9874_v35 = vsub.f32 %v19170_v31, %v9873_v41 }
 0x928   : > { %16144 = vmatpush3.bf16.msra.mxu0 %v19087_v21  ;;  %v19197_v21 = vsub.f32 %v8457_v39, %v9757_v14  ;;  %v9875_v55 = vand.u32 4294901760, %v9874_v35  ;;  %v9915_v39 = vand.u32 4294901760, %v19254_v13 }
 0x929   : > { %16146 = vmatprep.subr.bf16.mxu0 %v19089_v26 }
 0x92a   : > { %v9880_v23 = vand.u32 4294901760, %v19197_v21  ;;  %v9916_v51 = vsub.f32 %v19254_v13, %v9915_v39 }
 0x92c   : > { %16148 = vmatpush3.bf16.msra.mxu0 %v19089_v26  ;;  %v19199_v26 = vsub.f32 %v8458_v9, %v9760_v53  ;;  %v9881_v8 = vsub.f32 %v19197_v21, %v9880_v23  ;;  %v9846_v9 = vsub.f32 %v19233_v36, %v9845_v47  ;;  %v9917_v27 = vand.u32 4294901760, %v9916_v51 }
 0x92d   : > { %16150 = vmatprep.subr.bf16.mxu0 %v19046_v40 }
 0x92e   : > { %v9887_v52 = vand.u32 4294901760, %v19199_v26  ;;  %v9882_v6 = vand.u32 4294901760, %v9881_v8  ;;  %v9847_v34 = vand.u32 4294901760, %v9846_v9  ;;  %v11870_v8 = vld [vmem:[%s19547_s5 + $0xa0] sm:$0xff] }
 0x92f   : > { %14590 = vmatmul.mubr.f32.vlgmr.msra.gmra.mrb[18].mxu0 %v19100_v45 }
 0x930   : > { %14592 = vmatprep.mubr.f32.mxu0 %v19111_v54  ;;  %16152 = vmatpush3.bf16.msra.mxu0 %v19046_v40  ;;  %v9751_v40 = vand.u32 4294901760, %v8455_v61  ;;  %v9888_v62 = vsub.f32 %v19199_v26, %v9887_v52 }
 0x931   : > { %16154 = vmatprep.subr.bf16.mxu0 %v19056_v44 }
 0x932   : > { %v19168_v10 = vsub.f32 %v8455_v61, %v9751_v40  ;;  %v19173_v11 = vpack.c.bf16 %v9754_v19, %v9751_v40  ;;  %v9889_v61 = vand.u32 4294901760, %v9888_v62  ;;  %v9908_v19 = vand.u32 4294901760, %v19252_v42  ;;  %v11871_v62 = vld [vmem:[%s19547_s5 + $0xa8] sm:$0xff] }
 0x933   : > { %14593 = vmatmul.mubr.f32.gmra.mrb[20].mxu0 %v19108_v48 }
 0x934   : > { %16156 = vmatpush3.bf16.msra.mxu0 %v19056_v44  ;;  %14611 = vmatprep.mubr.f32.mxu0 %v19103_v7  ;;  %v9742_v44 = vsel %vm1479_vm1, %v19091_v43, 0  ;;  %v9866_v29 = vand.u32 4294901760, %v19168_v10  ;;  %v19202_v43 = vpack.c.bf16 %v9760_v53, %v9757_v14  ;;  %v16185_v53 = vpack.c.bf16 %v9889_v61, %v9882_v6 }
 0x935   : > { %16158 = vmatprep.subr.bf16.mxu0 %v19066_v30  ;;  %v19182_v49 = vand.u32 4294901760, %v9742_v44  ;;  %v16197_v59 = vpack.c.bf16 %v19170_v31, %v19168_v10  ;;  %v16241_v31 = vpack.c.bf16 %v9915_v39, %v9908_v19 }
 0x936   : > { %v9867_v7 = vsub.f32 %v19168_v10, %v9866_v29 }
 0x937   : > { %v19210_v12 = vsub.f32 %v9742_v44, %v19182_v49 }
 0x938   : > { %16160 = vmatpush3.bf16.msra.mxu0 %v19066_v30  ;;  %v8460_v30 = vld [vmem:[%s19547_s5 + $0x28] sm:$0xff]  ;;  %v9868_v5 = vand.u32 4294901760, %v9867_v7  ;;  %v16201_v7 = vpack.c.bf16 %v19199_v26, %v19197_v21  ;;  %v19778_v21 = vld [vmem:[#allocation29_spill] sm:$0xff]  ;;  %v19779_v26 = vld [vmem:[#allocation31_spill] sm:$0xff] }
 0x939   : > { %16162 = vmatprep.subr.bf16.mxu0 %v19076_v38  ;;  %v9766_v37 = vand.u32 4294901760, %v8460_v30  ;;  %v9835_v33 = vand.u32 4294901760, %v19210_v12 }
 0x93a   : > { %v16181_v50 = vpack.c.bf16 %v9875_v55, %v9868_v5  ;;  %v16229_v5 = vpack.c.bf16 %v9873_v41, %v9866_v29  ;;  %v19775_v29 = vld [vmem:[#allocation41_spill] sm:$0xff]  ;;  %v19777_v41 = vld [vmem:[#allocation27_spill] sm:$0xff] }
 0x93b   : > { %v19230_v2 = vsub.f32 %v8460_v30, %v9766_v37  ;;  %v9836_v22 = vsub.f32 %v19210_v12, %v9835_v33 }
 0x93c   : > { %16164 = vmatpush3.bf16.msra.mxu0 %v19076_v38  ;;  %v9763_v38 = vand.u32 4294901760, %v8459_v63 }
 0x93d   : > { %16166 = vmatprep.subr.bf16.mxu0 %v19173_v11  ;;  %v9837_v44 = vand.u32 4294901760, %v9836_v22  ;;  %v11872_v22 = vld [vmem:[%s19547_s5 + $0xb0] sm:$0xff] }
 0x93e   : > { %v19228_v60 = vsub.f32 %v8459_v63, %v9763_v38 }
 0x93f   : > { %14612 = vmatmul.mubr.f32.vlgmr.msra.gmra.mrb[18].mxu0 %v19100_v45  ;;  %v19226_v45 = vpack.c.bf16 %v9766_v37, %v9763_v38 }
 0x940   : > { %14614 = vmatprep.mubr.f32.mxu0 %v19111_v54  ;;  %16168 = vmatpush3.bf16.msra.mxu0 %v19173_v11  ;;  %v19237_v54 = vsub.f32 %v9748_v3, %v19212_v57  ;;  %v9894_v56 = vand.u32 4294901760, %v19228_v60  ;;  %v9909_v3 = vsub.f32 %v19252_v42, %v9908_v19  ;;  %v16205_v35 = vpack.c.bf16 %v19230_v2, %v19228_v60 }
 0x941   : > { %16170 = vmatprep.subr.bf16.mxu0 %v19202_v43 }
 0x942   : > { %v9855_v46 = vand.u32 4294901760, %v19237_v54  ;;  %v9895_v18 = vsub.f32 %v19228_v60, %v9894_v56  ;;  %v9910_v37 = vand.u32 4294901760, %v9909_v3 }
 0x943   : > { %14615 = vmatmul.mubr.f32.gmra.mrb[20].mxu0 %v19108_v48  ;;  %v9901_v48 = vand.u32 4294901760, %v19230_v2 }
 0x944   : > { %16172 = vmatpush3.bf16.msra.mxu0 %v19202_v43  ;;  %14633 = vmatprep.mubr.f32.mxu0 %v9827_v32  ;;  %v9856_v14 = vsub.f32 %v19237_v54, %v9855_v46  ;;  %v9896_v63 = vand.u32 4294901760, %v9895_v18  ;;  %v16193_v1 = vpack.c.bf16 %v9917_v27, %v9910_v37  ;;  %v16209_v32 = vpack.c.bf16 %v19254_v13, %v19252_v42 }
 0x945   : > { %16174 = vmatprep.subr.bf16.mxu0 %v19226_v45  ;;  %v9902_v40 = vsub.f32 %v19230_v2, %v9901_v48  ;;  %v16237_v10 = vpack.c.bf16 %v9901_v48, %v9894_v56  ;;  %v11038_v56 = vand.u32 4294901760, %v11870_v8  ;;  %v11041_v48 = vand.u32 4294901760, %v11871_v62 }
 0x946   : > { %v9857_v28 = vand.u32 4294901760, %v9856_v14 }
 0x947   : > { %v9903_v30 = vand.u32 4294901760, %v9902_v40  ;;  %v19410_v42 = vpack.c.bf16 %v11041_v48, %v11038_v56 }
 0x948   : > { %16176 = vmatpush3.bf16.msra.mxu0 %v19226_v45 }
 0x949   : > { %16178 = vmatprep.subr.bf16.mxu0 %v19240_v4  ;;  %v16189_v38 = vpack.c.bf16 %v9903_v30, %v9896_v63 }
 0x94c   : > { %16180 = vmatpush3.bf16.msra.mxu0 %v19240_v4 }
 0x94d   : > { %16182 = vmatprep.subr.bf16.mxu0 %v16181_v50 }
 0x94f   : > { %14634 = vmatmul.mubr.f32.vlgmr.msra.gmra.mrb[18].mxu0 %v9837_v44 }
 0x950   : > { %14636 = vmatprep.mubr.f32.mxu0 %v9847_v34  ;;  %16184 = vmatpush3.bf16.msra.mxu0 %v16181_v50  ;;  %v11044_v50 = vand.u32 4294901760, %v11872_v22  ;;  %v11168_v34 = vsub.f32 %v11870_v8, %v11038_v56 }
 0x951   : > { %16186 = vmatprep.subr.bf16.mxu0 %v16185_v53 }
 0x952   : > { %v11169_v27 = vand.u32 4294901760, %v11168_v34 }
 0x953   : > { %14637 = vmatmul.mubr.f32.gmra.mrb[20].mxu0 %v9857_v28  ;;  %v11175_v28 = vsub.f32 %v11871_v62, %v11041_v48 }
 0x954   : > { %16188 = vmatpush3.bf16.msra.mxu0 %v16185_v53  ;;  %14655 = vmatprep.mubr.f32.mxu0 %v19144_v58 }
 0x955   : > { %16190 = vmatprep.subr.bf16.mxu0 %v16189_v38 }
 0x958   : > { %16192 = vmatpush3.bf16.msra.mxu0 %v16189_v38 }
 0x959   : > { %16194 = vmatprep.subr.bf16.mxu0 %v16193_v1 }
 0x95c   : > { %16196 = vmatpush3.bf16.msra.mxu0 %v16193_v1  ;;  %v11176_v1 = vand.u32 4294901760, %v11175_v28 }
 0x95d   : > { %16198 = vmatprep.subr.bf16.mxu0 %v16197_v59 }
 0x95f   : > { %14656 = vmatmul.mubr.f32.vlgmr.msra.gmra.mrb[18].mxu0 %v19182_v49 }
 0x960   : > { %14658 = vmatprep.mubr.f32.mxu0 %v19204_v0  ;;  %16200 = vmatpush3.bf16.msra.mxu0 %v16197_v59 }
 0x961   : > { %16202 = vmatprep.subr.bf16.mxu0 %v16201_v7 }
 0x963   : > { %14659 = vmatmul.mubr.f32.gmra.mrb[20].mxu0 %v19212_v57 }
 0x964   : > { %16204 = vmatpush3.bf16.msra.mxu0 %v16201_v7  ;;  %14677 = vmatprep.mubr.f32.mxu0 %v19157_v20  ;;  %v16233_v20 = vpack.c.bf16 %v9887_v52, %v9880_v23  ;;  %v11867_v23 = vld [vmem:[%s19547_s5 + $0x88] sm:$0xff]  ;;  %v11170_v7 = vsub.f32 %v11168_v34, %v11169_v27 }
 0x965   : > { %16206 = vmatprep.subr.bf16.mxu0 %v16205_v35  ;;  %v19785_v52 = vld [vmem:[#allocation34_spill] sm:$0xff]  ;;  %v11029_v2 = vand.u32 4294901760, %v11867_v23 }
 0x968   : > { %16208 = vmatpush3.bf16.msra.mxu0 %v16205_v35  ;;  %v11177_v35 = vsub.f32 %v11175_v28, %v11176_v1 }
 0x969   : > { %16210 = vmatprep.subr.bf16.mxu0 %v16209_v32 }
 0x96c   : > { %16212 = vmatpush3.bf16.msra.mxu0 %v16209_v32  ;;  %v11182_v32 = vsub.f32 %v11872_v22, %v11044_v50 }
 0x96d   : > { %16214 = vmatprep.subr.bf16.mxu0 %v19173_v11 }
 0x96f   : > { %14678 = vmatmul.mubr.f32.vlgmr.msra.gmra.mrb[18].mxu0 %v19210_v12  ;;  %v19783_v12 = vld [vmem:[#allocation35_spill] sm:$0xff] }
 0x970   : > { %14680 = vmatprep.mubr.f32.mxu0 %v19233_v36  ;;  %16216 = vmatpush3.bf16.msra.mxu0 %v19173_v11  ;;  %v19787_v36 = vld [vmem:[#allocation37_spill] sm:$0xff] }
 0x971   : > { %16218 = vmatprep.subr.bf16.mxu0 %v19202_v43 }
 0x973   : > { %14681 = vmatmul.mubr.f32.gmra.mrb[20].mxu0 %v19237_v54 }
 0x974   : > { %16220 = vmatpush3.bf16.msra.mxu0 %v19202_v43  ;;  %14699 = vmatprep.mubr.f32.mxu0 %v9825_v25  ;;  %v19774_v25 = vld [vmem:[#allocation40_spill] sm:$0xff] }
 0x975   : > { %16222 = vmatprep.subr.bf16.mxu0 %v19226_v45 }
 0x978   : > { %16224 = vmatpush3.bf16.msra.mxu0 %v19226_v45 }
 0x979   : > { %16226 = vmatprep.subr.bf16.mxu0 %v19240_v4 }
 0x97c   : > { %16228 = vmatpush3.bf16.msra.mxu0 %v19240_v4 }
 0x97d   : > { %16230 = vmatprep.subr.bf16.mxu0 %v16229_v5 }
 0x97f   : > { %14700 = vmatmul.mubr.f32.vlgmr.msra.gmra.mrb[18].mxu0 %v9835_v33 }
 0x980   : > { %14702 = vmatprep.mubr.f32.mxu0 %v9845_v47  ;;  %16232 = vmatpush3.bf16.msra.mxu0 %v16229_v5  ;;  %v11147_v47 = vsub.f32 %v11867_v23, %v11029_v2  ;;  %v19428_v23 = vpack.c.bf16 %v11176_v1, %v11169_v27 }
 0x981   : > { %16234 = vmatprep.subr.bf16.mxu0 %v16233_v20 }
 0x982   : > { %v11148_v18 = vand.u32 4294901760, %v11147_v47 }
 0x983   : > { %14703 = vmatmul.mubr.f32.gmra.mrb[20].mxu0 %v9855_v46  ;;  %v11873_v46 = vld [vmem:[%s19547_s5 + $0xb8] sm:$0xff] }
 0x984   : > { %16236 = vmatpush3.bf16.msra.mxu0 %v16233_v20  ;;  %14721 = vmatprep.mubr.f32.mxu0 %v19144_v58  ;;  %v11047_v6 = vand.u32 4294901760, %v11873_v46  ;;  %v11149_v39 = vsub.f32 %v11147_v47, %v11148_v18 }
 0x985   : > { %16238 = vmatprep.subr.bf16.mxu0 %v16237_v10 }
 0x986   : > { %v19420_v40 = vpack.c.bf16 %v11047_v6, %v11044_v50  ;;  %v11150_v53 = vand.u32 4294901760, %v11149_v39  ;;  %v11189_v5 = vsub.f32 %v11873_v46, %v11047_v6 }
 0x988   : > { %16240 = vmatpush3.bf16.msra.mxu0 %v16237_v10  ;;  %v11171_v10 = vand.u32 4294901760, %v11170_v7 }
 0x989   : > { %16242 = vmatprep.subr.bf16.mxu0 %v16241_v31 }
 0x98c   : > { %16244 = vmatpush3.bf16.msra.mxu0 %v16241_v31  ;;  %v11178_v31 = vand.u32 4294901760, %v11177_v35 }
 0x98d   : > { %16246 = vmatprep.subr.bf16.mxu0 %v19173_v11 }
 0x98f   : > { %14722 = vmatmul.mubr.f32.vlgmr.msra.gmra.mrb[18].mxu0 %v19182_v49 }
 0x990   : > { %14724 = vmatprep.mubr.f32.mxu0 %v19204_v0  ;;  %16248 = vmatpush3.bf16.msra.mxu0 %v19173_v11  ;;  %v19773_v11 = vld [vmem:[#allocation39_spill] sm:$0xff] }
 0x991   : > { %16250 = vmatprep.subr.bf16.mxu0 %v19202_v43 }
 0x993   : > { %14725 = vmatmul.mubr.f32.gmra.mrb[20].mxu0 %v19212_v57 }
 0x994   : > { %16252 = vmatpush3.bf16.msra.mxu0 %v19202_v43  ;;  %14743 = vmatprep.mubr.f32.mxu0 %v19144_v58  ;;  %v19772_v58 = vld [vmem:[#allocation38_spill] sm:$0xff]  ;;  %v19780_v43 = vld [vmem:[#allocation28_spill] sm:$0xff] }
 0x995   : > { %16254 = vmatprep.subr.bf16.mxu0 %v19226_v45 }
 0x998   : > { %16256 = vmatpush3.bf16.msra.mxu0 %v19226_v45  ;;  %v19786_v45 = vld [vmem:[#allocation36_spill] sm:$0xff] }
 0x999   : > { %16258 = vmatprep.subr.bf16.mxu0 %v19240_v4 }
 0x99c   : > { %16260 = vmatpush3.bf16.msra.mxu0 %v19240_v4 }
 0x99d   : > { %16262 = vmatprep.subr.bf16.mxu0 %v18961_v16 }
 0x99f   : > { %14744 = vmatmul.mubr.f32.vlgmr.msra.gmra.mrb[18].mxu0 %v19182_v49  ;;  %v19776_v49 = vld [vmem:[#allocation26_spill] sm:$0xff] }
 0x9a0   : > { %14746 = vmatprep.mubr.f32.mxu0 %v19204_v0  ;;  %16264 = vmatpush3.bf16.msra.mxu0 %v18961_v16  ;;  %v19782_v0 = vld [vmem:[#allocation33_spill] sm:$0xff] }
 0x9a1   : > { %16266 = vmatprep.subr.bf16.mxu0 %v18971_v17 }
 0x9a3   : > { %14747 = vmatmul.mubr.f32.gmra.mrb[20].mxu0 %v19212_v57  ;;  %v19784_v57 = vld [vmem:[#allocation32_spill] sm:$0xff] }
 0x9a4   : > { %14753 = vmatprep.mubr.f32.mxu0 %v19772_v58  ;;  %v11183_v58 = vand.u32 4294901760, %v11182_v32 }
 0x9a7   : > { %14754 = vmatmul.mubr.f32.vlgmr.msra.gmra.mrb[22].mxu0 %v19773_v11  ;;  %v11190_v11 = vand.u32 4294901760, %v11189_v5 }
 0x9a8   : > { %16268 = vmatpush3.bf16.msra.mxu0 %v18971_v17  ;;  %14756 = vmatprep.mubr.f32.mxu0 %v19774_v25  ;;  %v19781_v17 = vld [vmem:[#allocation30_spill] sm:$0xff]  ;;  %v16309_v25 = vpack.c.bf16 %v11178_v31, %v11171_v10  ;;  %v19791_v10 = vld [vmem:[#allocation45_spill] sm:$0xff] }
 0x9a9   : > { %16270 = vmatprep.subr.bf16.mxu0 %v18963_v24 }
 0x9ab   : > { %14757 = vmatmul.mubr.f32.gmra.mrb[24].mxu0 %v19775_v29  ;;  %v11184_v29 = vsub.f32 %v11182_v32, %v11183_v58 }
 0x9ac   : > { %14763 = vmatprep.mubr.f32.mxu0 %v19776_v49 }
 0x9af   : > { %14764 = vmatmul.mubr.f32.vlgmr.msra.gmra.mrb[22].mxu0 %v19777_v41 }
 0x9b0   : > { %16272 = vmatpush3.bf16.msra.mxu0 %v18963_v24  ;;  %14766 = vmatprep.mubr.f32.mxu0 %v19778_v21  ;;  %v11866_v24 = vld [vmem:[%s19547_s5 + $0x80] sm:$0xff] }
 0x9b1   : > { %16274 = vmatprep.subr.bf16.mxu0 %v18961_v16  ;;  %v11026_v60 = vand.u32 4294901760, %v11866_v24 }
 0x9b3   : > { %14767 = vmatmul.mubr.f32.gmra.mrb[24].mxu0 %v19779_v26  ;;  %v19382_v33 = vpack.c.bf16 %v11029_v2, %v11026_v60  ;;  %v11140_v13 = vsub.f32 %v11866_v24, %v11026_v60 }
 0x9b4   : > { %14773 = vmatprep.mubr.f32.mxu0 %v19780_v43 }
 0x9b5   : > { %v11141_v61 = vand.u32 4294901760, %v11140_v13  ;;  %v16317_v43 = vpack.c.bf16 %v11147_v47, %v11140_v13 }
 0x9b7   : > { %14774 = vmatmul.mubr.f32.vlgmr.msra.gmra.mrb[22].mxu0 %v19781_v17  ;;  %v11142_v19 = vsub.f32 %v11140_v13, %v11141_v61 }
 0x9b8   : > { %16276 = vmatpush3.bf16.msra.mxu0 %v18961_v16  ;;  %14776 = vmatprep.mubr.f32.mxu0 %v19782_v0  ;;  %v16325_v0 = vpack.c.bf16 %v11175_v28, %v11168_v34  ;;  %v19788_v34 = vld [vmem:[#allocation42_spill] sm:$0xff] }
 0x9b9   : > { %16278 = vmatprep.subr.bf16.mxu0 %v18967_v15  ;;  %v11143_v14 = vand.u32 4294901760, %v11142_v19 }
 0x9bb   : > { %14777 = vmatmul.mubr.f32.gmra.mrb[24].mxu0 %v19783_v12  ;;  %v16301_v3 = vpack.c.bf16 %v11150_v53, %v11143_v14  ;;  %v16329_v12 = vpack.c.bf16 %v11189_v5, %v11182_v32  ;;  %v19790_v32 = vld [vmem:[#allocation44_spill] sm:$0xff] }
 0x9bc   : > { %14783 = vmatprep.mubr.f32.mxu0 %v19784_v57  ;;  %v19424_v57 = vpack.c.bf16 %v11148_v18, %v11141_v61 }
 0x9bf   : > { %14784 = vmatmul.mubr.f32.vlgmr.msra.gmra.mrb[22].mxu0 %v19785_v52  ;;  %v19430_v52 = vpack.c.bf16 %v11190_v11, %v11183_v58 }
 0x9c0   : > { %16280 = vmatpush3.bf16.msra.mxu0 %v18967_v15  ;;  %14786 = vmatprep.mubr.f32.mxu0 %v19786_v45  ;;  %v11869_v15 = vld [vmem:[%s19547_s5 + $0x98] sm:$0xff] }
 0x9c1   : > { %16282 = vmatprep.subr.bf16.mxu0 %v18961_v16  ;;  %v11035_v4 = vand.u32 4294901760, %v11869_v15 }
 0x9c3   : > { %14787 = vmatmul.mubr.f32.gmra.mrb[24].mxu0 %v19787_v36  ;;  %v11161_v44 = vsub.f32 %v11869_v15, %v11035_v4 }
 0x9c4   : > { %14793 = vmatprep.mubr.f32.mxu0 %v19776_v49 }
 0x9c5   : > { %v11162_v30 = vand.u32 4294901760, %v11161_v44 }
 0x9c7   : > { %14794 = vmatmul.mubr.f32.vlgmr.msra.gmra.mrb[22].mxu0 %v19777_v41  ;;  %v11163_v38 = vsub.f32 %v11161_v44, %v11162_v30 }
 0x9c8   : > { %16284 = vmatpush3.bf16.msra.mxu0 %v18961_v16  ;;  %14796 = vmatprep.mubr.f32.mxu0 %v19778_v21  ;;  %v11868_v16 = vld [vmem:[%s19547_s5 + $0x90] sm:$0xff] }
 0x9c9   : > { %16286 = vmatprep.subr.bf16.mxu0 %v19382_v33  ;;  %v11032_v54 = vand.u32 4294901760, %v11868_v16  ;;  %v11164_v59 = vand.u32 4294901760, %v11163_v38 }
 0x9cb   : > { %14797 = vmatmul.mubr.f32.gmra.mrb[24].mxu0 %v19779_v26  ;;  %v19400_v55 = vpack.c.bf16 %v11035_v4, %v11032_v54  ;;  %v11154_v9 = vsub.f32 %v11868_v16, %v11032_v54 }
 0x9cc   : > { %14803 = vmatprep.mubr.f32.mxu0 %v19776_v49  ;;  %v11191_v49 = vsub.f32 %v11189_v5, %v11190_v11 }
 0x9cd   : > { %v11155_v63 = vand.u32 4294901760, %v11154_v9  ;;  %v16321_v17 = vpack.c.bf16 %v11161_v44, %v11154_v9 }
 0x9cf   : > { %14804 = vmatmul.mubr.f32.vlgmr.msra.gmra.mrb[22].mxu0 %v19777_v41  ;;  %v11156_v51 = vsub.f32 %v11154_v9, %v11155_v63  ;;  %v11185_v41 = vand.u32 4294901760, %v11184_v29  ;;  %v19426_v24 = vpack.c.bf16 %v11162_v30, %v11155_v63 }
 0x9d0   : > { %14806 = vmatprep.mubr.f32.mxu0 %v19778_v21  ;;  %16288 = vmatpush3.bf16.msra.mxu0 %v19382_v33  ;;  %v11192_v21 = vand.u32 4294901760, %v11191_v49 }
 0x9d1   : > { %16290 = vmatprep.subr.bf16.mxu0 %v19400_v55  ;;  %v11157_v37 = vand.u32 4294901760, %v11156_v51 }
 0x9d3   : > { %14807 = vmatmul.mubr.f32.gmra.mrb[24].mxu0 %v19779_v26  ;;  %v16305_v20 = vpack.c.bf16 %v11164_v59, %v11157_v37  ;;  %v16313_v26 = vpack.c.bf16 %v11192_v21, %v11185_v41  ;;  %v19789_v37 = vld [vmem:[#allocation43_spill] sm:$0xff] }
 0x9d4   : > { %16292 = vmatpush3.bf16.msra.mxu0 %v19400_v55 }
 0x9d5   : > { %16294 = vmatprep.subr.bf16.mxu0 %v19410_v42 }
 0x9d8   : > { %16296 = vmatpush3.bf16.msra.mxu0 %v19410_v42 }
 0x9d9   : > { %16298 = vmatprep.subr.bf16.mxu0 %v19420_v40 }
 0x9dc   : > { %16300 = vmatpush3.bf16.msra.mxu0 %v19420_v40 }
 0x9dd   : > { %16302 = vmatprep.subr.bf16.mxu0 %v16301_v3 }
 0xaa2   : > { %v14805_v45 = vpop.f32.mrb[22].mxu0 }
 0xaa3   : > { %v11017_v60 = vsel %vm1479_vm1, %v14805_v45, 0  ;;  %v10982_v2 = vpop.f32.mrb[23].mxu0 }
 0xaa4   : > { %v19433_v36 = vand.u32 4294901760, %v11017_v60  ;;  %v11014_v16 = vsel %vm1479_vm1, %v10982_v2, 0 }
 0xaa5   : > { %v19436_v15 = vand.u32 4294901760, %v11014_v16 }
 0xaa6   : > { %v11109_v54 = vsub.f32 %v11017_v60, %v19433_v36  ;;  %v14808_v4 = vpop.f32.mrb[24].mxu0 }
 0xaa7   : > { %v11099_v8 = vsub.f32 %v11014_v16, %v19436_v15  ;;  %v11023_v62 = vsel %vm1479_vm1, %v14808_v4, 0  ;;  %v10994_v56 = vpop.f32.mrb[25].mxu0 }
 0xaa8   : > { %v11110_v48 = vand.u32 4294901760, %v11109_v54  ;;  %v19441_v13 = vand.u32 4294901760, %v11023_v62  ;;  %v11020_v47 = vsel %vm1479_vm1, %v10994_v56, 0 }
 0xaa9   : > { %v11100_v22 = vand.u32 4294901760, %v11099_v8  ;;  %v19444_v46 = vand.u32 4294901760, %v11020_v47 }
 0xaaa   : > { %v11111_v50 = vsub.f32 %v11109_v54, %v11110_v48  ;;  %v11129_v6 = vsub.f32 %v11023_v62, %v19441_v13 }
 0xaab   : > { %v11119_v61 = vsub.f32 %v11020_v47, %v19444_v46  ;;  %v11101_v18 = vsub.f32 %v11099_v8, %v11100_v22 }
 0xaac   : > { %v11130_v19 = vand.u32 4294901760, %v11129_v6  ;;  %v11112_v44 = vand.u32 4294901760, %v11111_v50 }
 0xaad   : > { %v11120_v39 = vand.u32 4294901760, %v11119_v61  ;;  %v11102_v9 = vand.u32 4294901760, %v11101_v18 }
 0xaae   : > { %v11131_v14 = vsub.f32 %v11129_v6, %v11130_v19 }
 0xaaf   : > { %14825 = vmatprep.mubr.f32.mxu0 %v11102_v9  ;;  %v11121_v53 = vsub.f32 %v11119_v61, %v11120_v39 }
 0xab0   : > { %14826 = vmatmul.mubr.f32.vlgmr.msra.gmra.mrb[18].mxu0 %v11112_v44  ;;  %v11132_v30 = vand.u32 4294901760, %v11131_v14 }
 0xab1   : > { %16304 = vmatpush3.bf16.msra.mxu0 %v16301_v3  ;;  %v11122_v63 = vand.u32 4294901760, %v11121_v53 }
 0xab2   : > { %16306 = vmatprep.subr.bf16.mxu0 %v16305_v20 }
 0xab3   : > { %14828 = vmatprep.mubr.f32.mxu0 %v11122_v63 }
 0xab4   : > { %14829 = vmatmul.mubr.f32.gmra.mrb[20].mxu0 %v11132_v30 }
 0xab5   : > { %16308 = vmatpush3.bf16.msra.mxu0 %v16305_v20  ;;  %14847 = vmatprep.mubr.f32.mxu0 %v19436_v15 }
 0xab6   : > { %16310 = vmatprep.subr.bf16.mxu0 %v16309_v25 }
 0xab9   : > { %16312 = vmatpush3.bf16.msra.mxu0 %v16309_v25 }
 0xaba   : > { %16314 = vmatprep.subr.bf16.mxu0 %v16313_v26 }
 0xabd   : > { %16316 = vmatpush3.bf16.msra.mxu0 %v16313_v26 }
 0xabe   : > { %16318 = vmatprep.subr.bf16.mxu0 %v16317_v43 }
 0xac0   : > { %14848 = vmatmul.mubr.f32.vlgmr.msra.gmra.mrb[18].mxu0 %v19433_v36 }
 0xac1   : > { %14850 = vmatprep.mubr.f32.mxu0 %v19444_v46  ;;  %16320 = vmatpush3.bf16.msra.mxu0 %v16317_v43 }
 0xac2   : > { %16322 = vmatprep.subr.bf16.mxu0 %v16321_v17 }
 0xac4   : > { %14851 = vmatmul.mubr.f32.gmra.mrb[20].mxu0 %v19441_v13 }
 0xac5   : > { %16324 = vmatpush3.bf16.msra.mxu0 %v16321_v17  ;;  %14869 = vmatprep.mubr.f32.mxu0 %v11099_v8 }
 0xac6   : > { %16326 = vmatprep.subr.bf16.mxu0 %v16325_v0 }
 0xac9   : > { %16328 = vmatpush3.bf16.msra.mxu0 %v16325_v0 }
 0xaca   : > { %16330 = vmatprep.subr.bf16.mxu0 %v16329_v12 }
 0xacd   : > { %16332 = vmatpush3.bf16.msra.mxu0 %v16329_v12 }
 0xace   : > { %16334 = vmatprep.subr.bf16.mxu0 %v19382_v33 }
 0xad0   : > { %14870 = vmatmul.mubr.f32.vlgmr.msra.gmra.mrb[18].mxu0 %v11109_v54 }
 0xad1   : > { %14872 = vmatprep.mubr.f32.mxu0 %v11119_v61  ;;  %16336 = vmatpush3.bf16.msra.mxu0 %v19382_v33 }
 0xad2   : > { %16338 = vmatprep.subr.bf16.mxu0 %v19400_v55 }
 0xad4   : > { %14873 = vmatmul.mubr.f32.gmra.mrb[20].mxu0 %v11129_v6 }
 0xad5   : > { %16340 = vmatpush3.bf16.msra.mxu0 %v19400_v55  ;;  %14891 = vmatprep.mubr.f32.mxu0 %v11100_v22 }
 0xad6   : > { %16342 = vmatprep.subr.bf16.mxu0 %v19410_v42 }
 0xad9   : > { %16344 = vmatpush3.bf16.msra.mxu0 %v19410_v42 }
 0xada   : > { %16346 = vmatprep.subr.bf16.mxu0 %v19420_v40 }
 0xadd   : > { %16348 = vmatpush3.bf16.msra.mxu0 %v19420_v40 }
 0xade   : > { %16350 = vmatprep.subr.bf16.mxu0 %v19424_v57 }
 0xae0   : > { %14892 = vmatmul.mubr.f32.vlgmr.msra.gmra.mrb[18].mxu0 %v11110_v48 }
 0xae1   : > { %14894 = vmatprep.mubr.f32.mxu0 %v11120_v39  ;;  %16352 = vmatpush3.bf16.msra.mxu0 %v19424_v57 }
 0xae2   : > { %16354 = vmatprep.subr.bf16.mxu0 %v19426_v24 }
 0xae4   : > { %14895 = vmatmul.mubr.f32.gmra.mrb[20].mxu0 %v11130_v19 }
 0xae5   : > { %16356 = vmatpush3.bf16.msra.mxu0 %v19426_v24  ;;  %14913 = vmatprep.mubr.f32.mxu0 %v19436_v15 }
 0xae6   : > { %16358 = vmatprep.subr.bf16.mxu0 %v19428_v23 }
 0xae9   : > { %16360 = vmatpush3.bf16.msra.mxu0 %v19428_v23 }
 0xaea   : > { %16362 = vmatprep.subr.bf16.mxu0 %v19430_v52 }
 0xaed   : > { %16364 = vmatpush3.bf16.msra.mxu0 %v19430_v52 }
 0xaee   : > { %16366 = vmatprep.subr.bf16.mxu0 %v19382_v33 }
 0xaf0   : > { %14914 = vmatmul.mubr.f32.vlgmr.msra.gmra.mrb[18].mxu0 %v19433_v36 }
 0xaf1   : > { %14916 = vmatprep.mubr.f32.mxu0 %v19444_v46  ;;  %16368 = vmatpush3.bf16.msra.mxu0 %v19382_v33 }
 0xaf2   : > { %16370 = vmatprep.subr.bf16.mxu0 %v19400_v55 }
 0xaf4   : > { %14917 = vmatmul.mubr.f32.gmra.mrb[20].mxu0 %v19441_v13 }
 0xaf5   : > { %16372 = vmatpush3.bf16.msra.mxu0 %v19400_v55  ;;  %14935 = vmatprep.mubr.f32.mxu0 %v19436_v15 }
 0xaf6   : > { %16374 = vmatprep.subr.bf16.mxu0 %v19410_v42 }
 0xaf9   : > { %16376 = vmatpush3.bf16.msra.mxu0 %v19410_v42 }
 0xafa   : > { %16378 = vmatprep.subr.bf16.mxu0 %v19420_v40 }
 0xafd   : > { %16380 = vmatpush3.bf16.msra.mxu0 %v19420_v40 }
 0xb00   : > { %14936 = vmatmul.mubr.f32.vlgmr.msra.gmra.mrb[18].mxu0 %v19433_v36 }
 0xb01   : > { %14938 = vmatprep.mubr.f32.mxu0 %v19444_v46 }
 0xb04   : > { %14939 = vmatmul.mubr.f32.gmra.mrb[20].mxu0 %v19441_v13 }
 0xbd3   : > { %v14937_v33 = vpop.f32.mrb[18].mxu0 }
 0xbd4   : > { %vm11696_vm9 = vcmp.ge.f32.partialorder %v14937_v33, 0.0  ;;  %v11700_v55 = vmul.f32 0.1, %v14937_v33  ;;  %v11669_v3 = vpop.f32.mrb[19].mxu0 }
 0xbd5   : > { %vm11695_vm10 = vcmp.ge.f32.partialorder %v11669_v3, 0.0  ;;  %v11699_v42 = vmul.f32 0.1, %v11669_v3 }
 0xbd6   : > { %v11704_v51 = vsel %vm11696_vm9, %v14937_v33, %v11700_v55 }
 0xbd7   : > { %v11708_v28 = vadd.f32 %v11704_v51, %v19788_v34  ;;  %v11703_v40 = vsel %vm11695_vm10, %v11669_v3, %v11699_v42  ;;  %v14940_v38 = vpop.f32.mrb[20].mxu0 }
 0xbd8   : > { %v11707_v27 = vadd.f32 %v11703_v40, %v19789_v37  ;;  %vm11698_vm11 = vcmp.ge.f32.partialorder %v14940_v38, 0.0  ;;  %v11702_v1 = vmul.f32 0.1, %v14940_v38  ;;  %v11681_v59 = vpop.f32.mrb[21].mxu0 }
 0xbd9   : > { %11712 = vst [vmem:[%s244_s15 + $0x8] sm:$0xff] %v11708_v28  ;;  %vm11697_vm12 = vcmp.ge.f32.partialorder %v11681_v59, 0.0  ;;  %v11701_v7 = vmul.f32 0.1, %v11681_v59 }
 0xbda   : > { %11711 = vst [vmem:[%s244_s15] sm:$0xff] %v11707_v27  ;;  %v11706_v35 = vsel %vm11698_vm11, %v14940_v38, %v11702_v1 }
 0xbdb   : > { %v11710_v5 = vadd.f32 %v11706_v35, %v19790_v32  ;;  %v11705_v20 = vsel %vm11697_vm12, %v11681_v59, %v11701_v7 }
 0xbdc   : > { %v11709_v31 = vadd.f32 %v11705_v20, %v19791_v10 }
 0xbdd   : > { %11714 = vst [vmem:[%s244_s15 + $0x18] sm:$0xff] %v11710_v5 }
 0xbde   : > { %11713 = vst [vmem:[%s244_s15 + $0x10] sm:$0xff] %v11709_v31 }
 0xbdf   : > { %16757 = shalt.err (!%p16754_p3)
}
 0xbe0   : > { %s16758_s12 = scalar_lea.hbm %s19496_s20, 512  ;;  %s16762_s13 = scalar_lea.hbm %s19548_s6, 1024 }
 0xbe1   : > { %p16759_p4 = scmp.ne.s32.totalorder %s19496_s20, %s16758_s12  ;;  %p16763_p9 = scmp.lt.u32.totalorder %s19496_s20, %s19548_s6 }
 0xbe2   : > { %p16764_p10 = scmp.lt.u32.totalorder %s16762_s13, %s16758_s12  ;;  %p16766_p12 = scmp.lt.u32.totalorder %s16758_s12, %s19496_s20 }
 0xbe3   : > { %p16760_p7 = pnand %p16759_p4, %p16884_p5 }
 0xbe4   : > { %p16765_p11 = por %p16764_p10, %p16763_p9 }
 0xbe5   : > { %p16761_p8 = pneg %p16760_p7 }
 0xbe6   : > { %p16767_p13 = por %p16766_p12, %p16765_p11 }
 0xbe8   : > { %p16768_p0 = pnand %p16767_p13, %p16761_p8 }
 0xbea   : > { %16771 = shalt.err (!%p16768_p0)
}
 0xbeb   : > { %s16809_s17 = smov 128   ;;  %s16810_s18 = smov 8  }
 0xbec   : > { %16701 = dma.vmem_to_hbm [thread:$0]  (%p16884_p5), %s19490_s16, 512, %s19496_s20, %s19501_s25, %s16809_s17, %s16809_s17, %s16810_s18  }
 0xbed PF: > { %p16707_p1 = scmp.ge.s32.totalorder %s16806_s24, 2  ;;  %s11744_s19 = sand.u32 1, %s16794_s21  }
 0xbee   : > { %s11745_s26 = scalar_lea.sflag [#allocation3], %s11744_s19 }
 0xbef   : > { %p16704_p2 = pnand %p16707_p1, %p16888_p6 }
 0xbf1   : > { %16789 = dma.done.wait (!%p16704_p2), %s11745_s26, 512  }
 0xbf2   : > { %16791 = vsyncadd (!%p16704_p2), %s11745_s26, 4294966784  ;;  %p16_p3 = scmp.ge.s32.totalorder %s16871_s27, 4   ;;  %s19792_s21 = smov %s16798_s22 }
 0xbf3   : > { %s19793_s22 = smov %s16802_s23  ;;  %s19794_s23 = smov %s16882_s30 }
 0xbf4   : > { %s19795_s24 = smov %s16871_s27  ;;  %18 = sbr.rel (!%p16_p3) target bundleno = 3 (0x3), region = 89 }
 0xbfb   :  { %11750 = vsyncpa [#allocation3], 1 }
 0xbfc   :  { %11752 = vsyncpa [#allocation3 + $0x1], 1 }

</bundles_post_ra>
